<compile_context>
chip_gen: v7x
topology: tpu7x:2x2x1
jax: 0.10.0
libtpu: 0.0.40
codegen_flags: <defaults>
</compile_context>

<pallas_src>
import math
import functools

import jax
import jax.numpy as jnp
from jax import lax
from jax.experimental import pallas as pl
from jax.experimental.pallas import tpu as pltpu

# ---------------------------- config (small) ----------------------------
HIDDEN = 32
NUM_HEADS = 4
HEAD_DIM = HIDDEN // NUM_HEADS
INTERMEDIATE = 64
NUM_LAYERS = 2
VOCAB = 50
VOCAB_PAD = 64       # pad vocab rows -> aligned contraction dim for one-hot gather
MAX_POS = 16
LN_EPS = 1e-5        # nn.LayerNorm default in DecoderLayer
EMB_LN_EPS = 1e-12   # Embeddings layer norm
NEG_FILL = -1e30     # finite stand-in for -inf (avoids NaN on fully-masked rows)


# ---------------------------- in-kernel helpers ----------------------------

def _layernorm(x, g, b, eps):
    mu = jnp.mean(x, axis=-1, keepdims=True)
    var = jnp.mean((x - mu) ** 2, axis=-1, keepdims=True)
    return (x - mu) * lax.rsqrt(var + eps) * g + b


def _gelu(x):
    # exact (erf) GELU, matching torch.nn.GELU() default
    return 0.5 * x * (1.0 + lax.erf(x * (1.0 / math.sqrt(2.0))))


def _softmax_with_bias(scores, bias):
    # bias is the precomputed additive mask (0 where valid, NEG_FILL where masked)
    s = scores + bias
    s = s - jnp.max(s, axis=-1, keepdims=True)
    e = jnp.exp(s)
    # exact reciprocal (not approx) to stay numerically close to the reference softmax
    return e * pl.reciprocal(jnp.sum(e, axis=-1, keepdims=True), approx=False)


# ---------------------------- fused forward kernel ----------------------------

def _decoder_kernel(ids_ref, pos_ids_ref,
                    mem_ref, dec_mask_ref, enc_mask_ref,
                    tok_emb_ref, pos_emb_ref, emb_g_ref, emb_b_ref,
                    ln1_g_ref, ln1_b_ref, ln2_g_ref, ln2_b_ref,
                    ln3_g_ref, ln3_b_ref,
                    wqkv_ref, bqkv_ref, wo_ref, bo_ref,
                    cwq_ref, cbq_ref, cwkv_ref, cbkv_ref,
                    w1_ref, b1_ref, w2_ref, b2_ref,
                    o_ref, *, B, T, S):
    f32 = jnp.float32
    H, NH, d = HIDDEN, NUM_HEADS, HEAD_DIM
    R = B * T

    # ---- Embeddings: token/position gather as one-hot MXU matmuls ----
    ids = ids_ref[...]                                   # (R, 1) int32
    pos_ids = pos_ids_ref[...]                           # (R, 1) int32
    tok_oh = (lax.broadcasted_iota(jnp.int32, (R, VOCAB_PAD), 1) == ids).astype(f32)
    x = jnp.dot(tok_oh, tok_emb_ref[...], preferred_element_type=f32)
    pos_oh = (lax.broadcasted_iota(jnp.int32, (R, MAX_POS), 1) == pos_ids).astype(f32)
    x = x + jnp.dot(pos_oh, pos_emb_ref[...], preferred_element_type=f32)
    x = _layernorm(x, emb_g_ref[...], emb_b_ref[...], EMB_LN_EPS)
    # dropout = identity (inference)

    # ---- hoisted per-call constants (reused by every layer) ----
    dec_bias = jnp.where(dec_mask_ref[...] == 0.0, NEG_FILL, 0.0).astype(f32)   # (B, T, T)
    enc_bias = jnp.where(enc_mask_ref[...] == 0.0, NEG_FILL, 0.0).astype(f32)   # (B, T, S)
    mem2d = mem_ref[...]                                                        # (B*S, H)

    for l in range(NUM_LAYERS):                          # static unroll (2 layers)
        # ---- layer_norm_1 + multi-head self-attention + residual ----
        # (attention scale already folded into the Q columns of wqkv)
        x = _layernorm(x, ln1_g_ref[l], ln1_b_ref[l], LN_EPS)
        qkv = jnp.dot(x, wqkv_ref[l], preferred_element_type=f32) + bqkv_ref[l]  # (R, 3H)

        head_ctx = []
        for h in range(NH):
            qh = qkv[:, h * d:(h + 1) * d].reshape(B, T, d)
            kh = qkv[:, H + h * d:H + (h + 1) * d].reshape(B, T, d)
            vh = qkv[:, 2 * H + h * d:2 * H + (h + 1) * d].reshape(B, T, d)
            s = jnp.einsum('bqd,bkd->bqk', qh, kh, preferred_element_type=f32)   # (B, T, T)
            w = _softmax_with_bias(s, dec_bias)
            head_ctx.append(jnp.einsum('bqk,bkd->bqd', w, vh,
                                       preferred_element_type=f32))              # (B, T, d)
        attn = jnp.concatenate(head_ctx, axis=-1).reshape(R, H)                  # head order
        x = x + jnp.dot(attn, wo_ref[l], preferred_element_type=f32) + bo_ref[l]

        # ---- layer_norm_2 + single-head cross-attention + residual ----
        # TODO(synk): reference cross-attn wiring is buggy; interpreted as a
        # single head with embed_dim = head_dim = HIDDEN, enc_mask as its mask.
        x = _layernorm(x, ln2_g_ref[l], ln2_b_ref[l], LN_EPS)
        cq = (jnp.dot(x, cwq_ref[l], preferred_element_type=f32)
              + cbq_ref[l]).reshape(B, T, H)                                     # scale folded
        ckv = jnp.dot(mem2d, cwkv_ref[l], preferred_element_type=f32) + cbkv_ref[l]  # (B*S, 2H)
        ck = ckv[:, 0:H].reshape(B, S, H)
        cv = ckv[:, H:2 * H].reshape(B, S, H)
        s = jnp.einsum('bqd,bkd->bqk', cq, ck, preferred_element_type=f32)       # (B, T, S)
        w = _softmax_with_bias(s, enc_bias)
        ctx = jnp.einsum('bqk,bkd->bqd', w, cv, preferred_element_type=f32).reshape(R, H)
        x = x + ctx

        # ---- layer_norm_3 + feed-forward + residual ----
        x = _layernorm(x, ln3_g_ref[l], ln3_b_ref[l], LN_EPS)
        h1 = _gelu(jnp.dot(x, w1_ref[l], preferred_element_type=f32) + b1_ref[l])
        x = x + jnp.dot(h1, w2_ref[l], preferred_element_type=f32) + b2_ref[l]

    o_ref[...] = x


# ---------------------------- parameters ----------------------------

def _linear_params(key, fan_in, fan_out):
    k1, k2 = jax.random.split(key)
    bound = 1.0 / math.sqrt(fan_in)
    w = jax.random.uniform(k1, (fan_in, fan_out), jnp.float32, -bound, bound)
    b = jax.random.uniform(k2, (fan_out,), jnp.float32, -bound, bound)
    return w, b


def init_params(key):
    keys = jax.random.split(key, 4 + NUM_LAYERS)
    tok = jax.random.normal(keys[0], (VOCAB, HIDDEN), jnp.float32)
    params = {
        # zero-pad vocab rows so the one-hot embedding matmul contracts an aligned dim
        "tok_emb": jnp.pad(tok, ((0, VOCAB_PAD - VOCAB), (0, 0))),
        "pos_emb": jax.random.normal(keys[1], (MAX_POS, HIDDEN), jnp.float32),
        "emb_ln_g": jnp.ones((1, HIDDEN), jnp.float32),
        "emb_ln_b": jnp.zeros((1, HIDDEN), jnp.float32),
    }
    names = ["ln1_g", "ln1_b", "ln2_g", "ln2_b", "ln3_g", "ln3_b",
             "wqkv", "bqkv", "wo", "bo", "cwq", "cbq", "cwkv", "cbkv",
             "w1", "b1", "w2", "b2"]
    stacked = {n: [] for n in names}
    q_scale = 1.0 / math.sqrt(HEAD_DIM)   # self-attn score scale, folded into Q proj
    cq_scale = 1.0 / math.sqrt(HIDDEN)    # cross-attn score scale, folded into Q proj
    for l in range(NUM_LAYERS):
        lk = jax.random.split(keys[4 + l], 16)
        # per-head self-attention projections, stacked column-wise in head order
        wqs, bqs, wks, bks, wvs, bvs = [], [], [], [], [], []
        for h in range(NUM_HEADS):
            wq, bq = _linear_params(lk[h], HIDDEN, HEAD_DIM)
            wk, bk = _linear_params(jax.random.fold_in(lk[h], 1), HIDDEN, HEAD_DIM)
            wv, bv = _linear_params(jax.random.fold_in(lk[h], 2), HIDDEN, HEAD_DIM)
            wqs.append(wq * q_scale); bqs.append(bq * q_scale)   # scale folded here
            wks.append(wk); bks.append(bk)
            wvs.append(wv); bvs.append(bv)
        wq = jnp.concatenate(wqs, 1); bq = jnp.concatenate(bqs)
        wk = jnp.concatenate(wks, 1); bk = jnp.concatenate(bks)
        wv = jnp.concatenate(wvs, 1); bv = jnp.concatenate(bvs)
        wo, bo = _linear_params(lk[8], HIDDEN, HIDDEN)
        cwq, cbq = _linear_params(lk[9], HIDDEN, HIDDEN)
        cwk, cbk = _linear_params(lk[10], HIDDEN, HIDDEN)
        cwv, cbv = _linear_params(lk[11], HIDDEN, HIDDEN)
        w1, b1 = _linear_params(lk[12], HIDDEN, INTERMEDIATE)
        w2, b2 = _linear_params(lk[13], INTERMEDIATE, HIDDEN)

        stacked["ln1_g"].append(jnp.ones((1, HIDDEN), jnp.float32))
        stacked["ln1_b"].append(jnp.zeros((1, HIDDEN), jnp.float32))
        stacked["ln2_g"].append(jnp.ones((1, HIDDEN), jnp.float32))
        stacked["ln2_b"].append(jnp.zeros((1, HIDDEN), jnp.float32))
        stacked["ln3_g"].append(jnp.ones((1, HIDDEN), jnp.float32))
        stacked["ln3_b"].append(jnp.zeros((1, HIDDEN), jnp.float32))
        stacked["wqkv"].append(jnp.concatenate([wq, wk, wv], axis=1))            # (H, 3H)
        stacked["bqkv"].append(jnp.concatenate([bq, bk, bv]).reshape(1, 3 * HIDDEN))
        stacked["wo"].append(wo)
        stacked["bo"].append(bo.reshape(1, HIDDEN))
        stacked["cwq"].append(cwq * cq_scale)
        stacked["cbq"].append((cbq * cq_scale).reshape(1, HIDDEN))
        stacked["cwkv"].append(jnp.concatenate([cwk, cwv], axis=1))              # (H, 2H)
        stacked["cbkv"].append(jnp.concatenate([cbk, cbv]).reshape(1, 2 * HIDDEN))
        stacked["w1"].append(w1)
        stacked["b1"].append(b1.reshape(1, INTERMEDIATE))
        stacked["w2"].append(w2)
        stacked["b2"].append(b2.reshape(1, HIDDEN))
    for n in names:
        params[n] = jnp.stack(stacked[n], axis=0)
    return params


# ---------------------------- forward (single fused pallas_call) ----------------------------

def decoder_forward(params, dec_in, memory, dec_mask=None, enc_mask=None):
    B, T = dec_in.shape
    S = memory.shape[1]
    assert T <= MAX_POS, "sequence length exceeds max_position_embeddings"
    R = B * T
    S_pad = ((S + 7) // 8) * 8   # sublane-align encoder length; padded keys masked out

    ids = dec_in.reshape(R, 1).astype(jnp.int32)
    pos_ids = jnp.tile(jnp.arange(T, dtype=jnp.int32), B).reshape(R, 1)

    mem = jnp.asarray(memory, jnp.float32)
    if dec_mask is None:
        dm = jnp.ones((B, T, T), jnp.float32)
    else:
        dm = jnp.broadcast_to(jnp.asarray(dec_mask, jnp.float32), (B, T, T))
    if enc_mask is None:
        em = jnp.ones((B, T, S), jnp.float32)
    else:
        em = jnp.broadcast_to(jnp.asarray(enc_mask, jnp.float32), (B, T, S))
    if S_pad != S:
        mem = jnp.pad(mem, ((0, 0), (0, S_pad - S), (0, 0)))
        em = jnp.pad(em, ((0, 0), (0, 0), (0, S_pad - S)))   # pad = 0 -> masked out
    mem2d = mem.reshape(B * S_pad, HIDDEN)

    inputs = (ids, pos_ids, mem2d, dm, em,
              params["tok_emb"], params["pos_emb"], params["emb_ln_g"], params["emb_ln_b"],
              params["ln1_g"], params["ln1_b"], params["ln2_g"], params["ln2_b"],
              params["ln3_g"], params["ln3_b"],
              params["wqkv"], params["bqkv"], params["wo"], params["bo"],
              params["cwq"], params["cbq"], params["cwkv"], params["cbkv"],
              params["w1"], params["b1"], params["w2"], params["b2"])

    vmem = pltpu.MemorySpace.VMEM
    kernel = functools.partial(_decoder_kernel, B=B, T=T, S=S_pad)
    out = pl.pallas_call(
        kernel,
        out_shape=jax.ShapeDtypeStruct((R, HIDDEN), jnp.float32),
        in_specs=[pl.BlockSpec(memory_space=vmem) for _ in inputs],
        out_specs=pl.BlockSpec(memory_space=vmem),
    )(*inputs)
    return out.reshape(B, T, HIDDEN)


# ---------------------------- demo ----------------------------

if __name__ == "__main__":
    key = jax.random.PRNGKey(0)
    kp, kin, kmem = jax.random.split(key, 3)

    B, T, S = 2, 8, 10
    params = init_params(kp)
    dec_in = jax.random.randint(kin, (B, T), 0, VOCAB, dtype=jnp.int32)
    memory = jax.random.normal(kmem, (B, S, HIDDEN), jnp.float32)

    # causal decoder mask (B, T, T); encoder mask all-valid (B, T, S)
    dec_mask = jnp.broadcast_to(jnp.tril(jnp.ones((T, T), jnp.float32)), (B, T, T))
    enc_mask = jnp.ones((B, T, S), jnp.float32)

    fwd = jax.jit(decoder_forward)
    out = fwd(params, dec_in, memory, dec_mask, enc_mask)
    jax.block_until_ready(out)
    assert out.shape == (B, T, HIDDEN) and out.dtype == jnp.float32
    assert bool(jnp.all(jnp.isfinite(out)))
    print("KERNEL_OK")
</pallas_src>

<mosaic_0001>
module attributes {stable_mosaic.version = 11 : i64} {
  func.func @_decoder_kernel(%arg0: memref<16x1xi32, #tpu.memory_space<vmem>>, %arg1: memref<16x1xi32, #tpu.memory_space<vmem>>, %arg2: memref<32x32xf32, #tpu.memory_space<vmem>>, %arg3: memref<2x8x8xf32, #tpu.memory_space<vmem>>, %arg4: memref<2x8x16xf32, #tpu.memory_space<vmem>>, %arg5: memref<64x32xf32, #tpu.memory_space<vmem>>, %arg6: memref<16x32xf32, #tpu.memory_space<vmem>>, %arg7: memref<1x32xf32, #tpu.memory_space<vmem>>, %arg8: memref<1x32xf32, #tpu.memory_space<vmem>>, %arg9: memref<2x1x32xf32, #tpu.memory_space<vmem>>, %arg10: memref<2x1x32xf32, #tpu.memory_space<vmem>>, %arg11: memref<2x1x32xf32, #tpu.memory_space<vmem>>, %arg12: memref<2x1x32xf32, #tpu.memory_space<vmem>>, %arg13: memref<2x1x32xf32, #tpu.memory_space<vmem>>, %arg14: memref<2x1x32xf32, #tpu.memory_space<vmem>>, %arg15: memref<2x32x96xf32, #tpu.memory_space<vmem>>, %arg16: memref<2x1x96xf32, #tpu.memory_space<vmem>>, %arg17: memref<2x32x32xf32, #tpu.memory_space<vmem>>, %arg18: memref<2x1x32xf32, #tpu.memory_space<vmem>>, %arg19: memref<2x32x32xf32, #tpu.memory_space<vmem>>, %arg20: memref<2x1x32xf32, #tpu.memory_space<vmem>>, %arg21: memref<2x32x64xf32, #tpu.memory_space<vmem>>, %arg22: memref<2x1x64xf32, #tpu.memory_space<vmem>>, %arg23: memref<2x32x64xf32, #tpu.memory_space<vmem>>, %arg24: memref<2x1x64xf32, #tpu.memory_space<vmem>>, %arg25: memref<2x64x32xf32, #tpu.memory_space<vmem>>, %arg26: memref<2x1x32xf32, #tpu.memory_space<vmem>>, %arg27: memref<16x32xf32, #tpu.memory_space<vmem>>) attributes {dimension_semantics = [], scalar_prefetch = 0 : i64, scratch_operands = 0 : i64, tpu.core_type = #tpu.core_type<tc>} {
    %c0 = arith.constant 0 : index
    %c0_0 = arith.constant 0 : index
    %0 = vector.load %arg0[%c0, %c0_0] : memref<16x1xi32, #tpu.memory_space<vmem>>, vector<16x1xi32>
    %c0_1 = arith.constant 0 : index
    %c0_2 = arith.constant 0 : index
    %1 = vector.load %arg1[%c0_1, %c0_2] : memref<16x1xi32, #tpu.memory_space<vmem>>, vector<16x1xi32>
    %2 = tpu.iota {dimensions = array<i32: 1>} : vector<16x64xi32>
    %3 = vector.broadcast %0 : vector<16x1xi32> to vector<16x64xi32>
    %4 = arith.cmpi eq, %2, %3 : vector<16x64xi32>
    %5 = arith.extui %4 : vector<16x64xi1> to vector<16x64xi32>
    %6 = arith.sitofp %5 : vector<16x64xi32> to vector<16x64xf32>
    %c0_3 = arith.constant 0 : index
    %c0_4 = arith.constant 0 : index
    %7 = vector.load %arg5[%c0_3, %c0_4] : memref<64x32xf32, #tpu.memory_space<vmem>>, vector<64x32xf32>
    %cst = arith.constant dense<0.000000e+00> : vector<16x32xf32>
    %8 = tpu.matmul %6, %7, %cst {dimension_numbers = #tpu.dot_dimension_numbers<[1], [0], [0], [1], [0, 0, 1, 1], [], []>} : vector<16x64xf32>, vector<64x32xf32>, vector<16x32xf32> -> vector<16x32xf32>
    %9 = tpu.iota {dimensions = array<i32: 1>} : vector<16x16xi32>
    %10 = vector.broadcast %1 : vector<16x1xi32> to vector<16x16xi32>
    %11 = arith.cmpi eq, %9, %10 : vector<16x16xi32>
    %12 = arith.extui %11 : vector<16x16xi1> to vector<16x16xi32>
    %13 = arith.sitofp %12 : vector<16x16xi32> to vector<16x16xf32>
    %c0_5 = arith.constant 0 : index
    %c0_6 = arith.constant 0 : index
    %14 = vector.load %arg6[%c0_5, %c0_6] : memref<16x32xf32, #tpu.memory_space<vmem>>, vector<16x32xf32>
    %cst_7 = arith.constant dense<0.000000e+00> : vector<16x32xf32>
    %15 = tpu.matmul %13, %14, %cst_7 {dimension_numbers = #tpu.dot_dimension_numbers<[1], [0], [0], [1], [0, 0, 1, 1], [], []>} : vector<16x16xf32>, vector<16x32xf32>, vector<16x32xf32> -> vector<16x32xf32>
    %16 = arith.addf %8, %15 : vector<16x32xf32>
    %c0_8 = arith.constant 0 : index
    %c0_9 = arith.constant 0 : index
    %17 = vector.load %arg7[%c0_8, %c0_9] : memref<1x32xf32, #tpu.memory_space<vmem>>, vector<1x32xf32>
    %c0_10 = arith.constant 0 : index
    %c0_11 = arith.constant 0 : index
    %18 = vector.load %arg8[%c0_10, %c0_11] : memref<1x32xf32, #tpu.memory_space<vmem>>, vector<1x32xf32>
    %cst_12 = arith.constant dense<0.000000e+00> : vector<16xf32>
    %19 = vector.multi_reduction <add>, %16, %cst_12 [1] : vector<16x32xf32> to vector<16xf32>
    %20 = vector.shape_cast %19 : vector<16xf32> to vector<16x1xf32>
    %cst_13 = arith.constant 3.200000e+01 : f32
    %21 = vector.broadcast %cst_13 : f32 to vector<16x1xf32>
    %22 = arith.divf %20, %21 : vector<16x1xf32>
    %23 = vector.broadcast %22 : vector<16x1xf32> to vector<16x32xf32>
    %24 = arith.subf %16, %23 : vector<16x32xf32>
    %25 = arith.mulf %24, %24 : vector<16x32xf32>
    %cst_14 = arith.constant dense<0.000000e+00> : vector<16xf32>
    %26 = vector.multi_reduction <add>, %25, %cst_14 [1] : vector<16x32xf32> to vector<16xf32>
    %27 = vector.shape_cast %26 : vector<16xf32> to vector<16x1xf32>
    %cst_15 = arith.constant 3.200000e+01 : f32
    %28 = vector.broadcast %cst_15 : f32 to vector<16x1xf32>
    %29 = arith.divf %27, %28 : vector<16x1xf32>
    %30 = vector.broadcast %22 : vector<16x1xf32> to vector<16x32xf32>
    %31 = arith.subf %16, %30 : vector<16x32xf32>
    %cst_16 = arith.constant 9.99999996E-13 : f32
    %32 = vector.broadcast %cst_16 : f32 to vector<16x1xf32>
    %33 = arith.addf %29, %32 : vector<16x1xf32>
    %34 = math.rsqrt %33 : vector<16x1xf32>
    %35 = vector.broadcast %34 : vector<16x1xf32> to vector<16x32xf32>
    %36 = arith.mulf %31, %35 : vector<16x32xf32>
    %37 = vector.broadcast %17 : vector<1x32xf32> to vector<16x32xf32>
    %38 = arith.mulf %36, %37 : vector<16x32xf32>
    %39 = vector.broadcast %18 : vector<1x32xf32> to vector<16x32xf32>
    %40 = arith.addf %38, %39 : vector<16x32xf32>
    %c0_17 = arith.constant 0 : index
    %c0_18 = arith.constant 0 : index
    %c0_19 = arith.constant 0 : index
    %41 = vector.load %arg3[%c0_17, %c0_18, %c0_19] : memref<2x8x8xf32, #tpu.memory_space<vmem>>, vector<2x8x8xf32>
    %cst_20 = arith.constant 0.000000e+00 : f32
    %42 = vector.broadcast %cst_20 : f32 to vector<2x8x8xf32>
    %43 = arith.cmpf oeq, %41, %42 : vector<2x8x8xf32>
    %cst_21 = arith.constant -1.000000e+30 : f32
    %cst_22 = arith.constant 0.000000e+00 : f32
    %44 = vector.broadcast %cst_21 : f32 to vector<2x8x8xf32>
    %45 = vector.broadcast %cst_22 : f32 to vector<2x8x8xf32>
    %46 = arith.select %43, %44, %45 : vector<2x8x8xi1>, vector<2x8x8xf32>
    %c0_23 = arith.constant 0 : index
    %c0_24 = arith.constant 0 : index
    %c0_25 = arith.constant 0 : index
    %47 = vector.load %arg4[%c0_23, %c0_24, %c0_25] : memref<2x8x16xf32, #tpu.memory_space<vmem>>, vector<2x8x16xf32>
    %cst_26 = arith.constant 0.000000e+00 : f32
    %48 = vector.broadcast %cst_26 : f32 to vector<2x8x16xf32>
    %49 = arith.cmpf oeq, %47, %48 : vector<2x8x16xf32>
    %cst_27 = arith.constant -1.000000e+30 : f32
    %cst_28 = arith.constant 0.000000e+00 : f32
    %50 = vector.broadcast %cst_27 : f32 to vector<2x8x16xf32>
    %51 = vector.broadcast %cst_28 : f32 to vector<2x8x16xf32>
    %52 = arith.select %49, %50, %51 : vector<2x8x16xi1>, vector<2x8x16xf32>
    %c0_29 = arith.constant 0 : index
    %c0_30 = arith.constant 0 : index
    %53 = vector.load %arg2[%c0_29, %c0_30] : memref<32x32xf32, #tpu.memory_space<vmem>>, vector<32x32xf32>
    %c0_31 = arith.constant 0 : index
    %c0_32 = arith.constant 0 : index
    %c0_33 = arith.constant 0 : index
    %54 = vector.load %arg9[%c0_31, %c0_32, %c0_33] : memref<2x1x32xf32, #tpu.memory_space<vmem>>, vector<1x1x32xf32>
    %55 = vector.shape_cast %54 : vector<1x1x32xf32> to vector<1x32xf32>
    %c0_34 = arith.constant 0 : index
    %c0_35 = arith.constant 0 : index
    %c0_36 = arith.constant 0 : index
    %56 = vector.load %arg10[%c0_34, %c0_35, %c0_36] : memref<2x1x32xf32, #tpu.memory_space<vmem>>, vector<1x1x32xf32>
    %57 = vector.shape_cast %56 : vector<1x1x32xf32> to vector<1x32xf32>
    %cst_37 = arith.constant dense<0.000000e+00> : vector<16xf32>
    %58 = vector.multi_reduction <add>, %40, %cst_37 [1] : vector<16x32xf32> to vector<16xf32>
    %59 = vector.shape_cast %58 : vector<16xf32> to vector<16x1xf32>
    %cst_38 = arith.constant 3.200000e+01 : f32
    %60 = vector.broadcast %cst_38 : f32 to vector<16x1xf32>
    %61 = arith.divf %59, %60 : vector<16x1xf32>
    %62 = vector.broadcast %61 : vector<16x1xf32> to vector<16x32xf32>
    %63 = arith.subf %40, %62 : vector<16x32xf32>
    %64 = arith.mulf %63, %63 : vector<16x32xf32>
    %cst_39 = arith.constant dense<0.000000e+00> : vector<16xf32>
    %65 = vector.multi_reduction <add>, %64, %cst_39 [1] : vector<16x32xf32> to vector<16xf32>
    %66 = vector.shape_cast %65 : vector<16xf32> to vector<16x1xf32>
    %cst_40 = arith.constant 3.200000e+01 : f32
    %67 = vector.broadcast %cst_40 : f32 to vector<16x1xf32>
    %68 = arith.divf %66, %67 : vector<16x1xf32>
    %69 = vector.broadcast %61 : vector<16x1xf32> to vector<16x32xf32>
    %70 = arith.subf %40, %69 : vector<16x32xf32>
    %cst_41 = arith.constant 9.99999974E-6 : f32
    %71 = vector.broadcast %cst_41 : f32 to vector<16x1xf32>
    %72 = arith.addf %68, %71 : vector<16x1xf32>
    %73 = math.rsqrt %72 : vector<16x1xf32>
    %74 = vector.broadcast %73 : vector<16x1xf32> to vector<16x32xf32>
    %75 = arith.mulf %70, %74 : vector<16x32xf32>
    %76 = vector.broadcast %55 : vector<1x32xf32> to vector<16x32xf32>
    %77 = arith.mulf %75, %76 : vector<16x32xf32>
    %78 = vector.broadcast %57 : vector<1x32xf32> to vector<16x32xf32>
    %79 = arith.addf %77, %78 : vector<16x32xf32>
    %c0_42 = arith.constant 0 : index
    %c0_43 = arith.constant 0 : index
    %c0_44 = arith.constant 0 : index
    %80 = vector.load %arg15[%c0_42, %c0_43, %c0_44] : memref<2x32x96xf32, #tpu.memory_space<vmem>>, vector<1x32x96xf32>
    %81 = vector.shape_cast %80 : vector<1x32x96xf32> to vector<32x96xf32>
    %cst_45 = arith.constant dense<0.000000e+00> : vector<16x96xf32>
    %82 = tpu.matmul %79, %81, %cst_45 {dimension_numbers = #tpu.dot_dimension_numbers<[1], [0], [0], [1], [0, 0, 1, 1], [], []>} : vector<16x32xf32>, vector<32x96xf32>, vector<16x96xf32> -> vector<16x96xf32>
    %c0_46 = arith.constant 0 : index
    %c0_47 = arith.constant 0 : index
    %c0_48 = arith.constant 0 : index
    %83 = vector.load %arg16[%c0_46, %c0_47, %c0_48] : memref<2x1x96xf32, #tpu.memory_space<vmem>>, vector<1x1x96xf32>
    %84 = vector.shape_cast %83 : vector<1x1x96xf32> to vector<1x96xf32>
    %85 = vector.broadcast %84 : vector<1x96xf32> to vector<16x96xf32>
    %86 = arith.addf %82, %85 : vector<16x96xf32>
    %87 = vector.extract_strided_slice %86 {offsets = [0, 0], sizes = [16, 8], strides = [1, 1]} : vector<16x96xf32> to vector<16x8xf32>
    %88 = vector.shape_cast %87 : vector<16x8xf32> to vector<2x8x8xf32>
    %89 = vector.extract_strided_slice %86 {offsets = [0, 32], sizes = [16, 8], strides = [1, 1]} : vector<16x96xf32> to vector<16x8xf32>
    %90 = vector.shape_cast %89 : vector<16x8xf32> to vector<2x8x8xf32>
    %91 = vector.extract_strided_slice %86 {offsets = [0, 64], sizes = [16, 8], strides = [1, 1]} : vector<16x96xf32> to vector<16x8xf32>
    %92 = vector.shape_cast %91 : vector<16x8xf32> to vector<2x8x8xf32>
    "tpu.trace_start"() <{level = 10 : i32, message = "bqd,bkd->bqk"}> : () -> ()
    %cst_49 = arith.constant dense<0.000000e+00> : vector<2x8x8xf32>
    %93 = tpu.matmul %88, %90, %cst_49 {dimension_numbers = #tpu.dot_dimension_numbers<[2], [2], [1], [1], [0, 0, 0, 1, 1, 1], [0], [0]>} : vector<2x8x8xf32>, vector<2x8x8xf32>, vector<2x8x8xf32> -> vector<2x8x8xf32>
    "tpu.trace_stop"() : () -> ()
    %94 = arith.addf %93, %46 : vector<2x8x8xf32>
    %cst_50 = arith.constant dense<0xFF800000> : vector<2x8xf32>
    %95 = vector.multi_reduction <maximumf>, %94, %cst_50 [2] : vector<2x8x8xf32> to vector<2x8xf32>
    %96 = vector.shape_cast %95 : vector<2x8xf32> to vector<2x8x1xf32>
    %97 = vector.broadcast %96 : vector<2x8x1xf32> to vector<2x8x8xf32>
    %98 = arith.subf %94, %97 : vector<2x8x8xf32>
    %99 = math.exp %98 : vector<2x8x8xf32>
    %cst_51 = arith.constant dense<0.000000e+00> : vector<2x8xf32>
    %100 = vector.multi_reduction <add>, %99, %cst_51 [2] : vector<2x8x8xf32> to vector<2x8xf32>
    %101 = vector.shape_cast %100 : vector<2x8xf32> to vector<2x8x1xf32>
    %102 = tpu.reciprocal %101 : vector<2x8x1xf32> -> vector<2x8x1xf32>
    %103 = vector.broadcast %102 : vector<2x8x1xf32> to vector<2x8x8xf32>
    %104 = arith.mulf %99, %103 : vector<2x8x8xf32>
    "tpu.trace_start"() <{level = 10 : i32, message = "bqk,bkd->bqd"}> : () -> ()
    %cst_52 = arith.constant dense<0.000000e+00> : vector<2x8x8xf32>
    %105 = tpu.matmul %104, %92, %cst_52 {dimension_numbers = #tpu.dot_dimension_numbers<[2], [1], [1], [2], [0, 0, 0, 1, 1, 2], [0], [0]>} : vector<2x8x8xf32>, vector<2x8x8xf32>, vector<2x8x8xf32> -> vector<2x8x8xf32>
    "tpu.trace_stop"() : () -> ()
    %106 = vector.extract_strided_slice %86 {offsets = [0, 8], sizes = [16, 8], strides = [1, 1]} : vector<16x96xf32> to vector<16x8xf32>
    %107 = vector.shape_cast %106 : vector<16x8xf32> to vector<2x8x8xf32>
    %108 = vector.extract_strided_slice %86 {offsets = [0, 40], sizes = [16, 8], strides = [1, 1]} : vector<16x96xf32> to vector<16x8xf32>
    %109 = vector.shape_cast %108 : vector<16x8xf32> to vector<2x8x8xf32>
    %110 = vector.extract_strided_slice %86 {offsets = [0, 72], sizes = [16, 8], strides = [1, 1]} : vector<16x96xf32> to vector<16x8xf32>
    %111 = vector.shape_cast %110 : vector<16x8xf32> to vector<2x8x8xf32>
    "tpu.trace_start"() <{level = 10 : i32, message = "bqd,bkd->bqk"}> : () -> ()
    %cst_53 = arith.constant dense<0.000000e+00> : vector<2x8x8xf32>
    %112 = tpu.matmul %107, %109, %cst_53 {dimension_numbers = #tpu.dot_dimension_numbers<[2], [2], [1], [1], [0, 0, 0, 1, 1, 1], [0], [0]>} : vector<2x8x8xf32>, vector<2x8x8xf32>, vector<2x8x8xf32> -> vector<2x8x8xf32>
    "tpu.trace_stop"() : () -> ()
    %113 = arith.addf %112, %46 : vector<2x8x8xf32>
    %cst_54 = arith.constant dense<0xFF800000> : vector<2x8xf32>
    %114 = vector.multi_reduction <maximumf>, %113, %cst_54 [2] : vector<2x8x8xf32> to vector<2x8xf32>
    %115 = vector.shape_cast %114 : vector<2x8xf32> to vector<2x8x1xf32>
    %116 = vector.broadcast %115 : vector<2x8x1xf32> to vector<2x8x8xf32>
    %117 = arith.subf %113, %116 : vector<2x8x8xf32>
    %118 = math.exp %117 : vector<2x8x8xf32>
    %cst_55 = arith.constant dense<0.000000e+00> : vector<2x8xf32>
    %119 = vector.multi_reduction <add>, %118, %cst_55 [2] : vector<2x8x8xf32> to vector<2x8xf32>
    %120 = vector.shape_cast %119 : vector<2x8xf32> to vector<2x8x1xf32>
    %121 = tpu.reciprocal %120 : vector<2x8x1xf32> -> vector<2x8x1xf32>
    %122 = vector.broadcast %121 : vector<2x8x1xf32> to vector<2x8x8xf32>
    %123 = arith.mulf %118, %122 : vector<2x8x8xf32>
    "tpu.trace_start"() <{level = 10 : i32, message = "bqk,bkd->bqd"}> : () -> ()
    %cst_56 = arith.constant dense<0.000000e+00> : vector<2x8x8xf32>
    %124 = tpu.matmul %123, %111, %cst_56 {dimension_numbers = #tpu.dot_dimension_numbers<[2], [1], [1], [2], [0, 0, 0, 1, 1, 2], [0], [0]>} : vector<2x8x8xf32>, vector<2x8x8xf32>, vector<2x8x8xf32> -> vector<2x8x8xf32>
    "tpu.trace_stop"() : () -> ()
    %125 = vector.extract_strided_slice %86 {offsets = [0, 16], sizes = [16, 8], strides = [1, 1]} : vector<16x96xf32> to vector<16x8xf32>
    %126 = vector.shape_cast %125 : vector<16x8xf32> to vector<2x8x8xf32>
    %127 = vector.extract_strided_slice %86 {offsets = [0, 48], sizes = [16, 8], strides = [1, 1]} : vector<16x96xf32> to vector<16x8xf32>
    %128 = vector.shape_cast %127 : vector<16x8xf32> to vector<2x8x8xf32>
    %129 = vector.extract_strided_slice %86 {offsets = [0, 80], sizes = [16, 8], strides = [1, 1]} : vector<16x96xf32> to vector<16x8xf32>
    %130 = vector.shape_cast %129 : vector<16x8xf32> to vector<2x8x8xf32>
    "tpu.trace_start"() <{level = 10 : i32, message = "bqd,bkd->bqk"}> : () -> ()
    %cst_57 = arith.constant dense<0.000000e+00> : vector<2x8x8xf32>
    %131 = tpu.matmul %126, %128, %cst_57 {dimension_numbers = #tpu.dot_dimension_numbers<[2], [2], [1], [1], [0, 0, 0, 1, 1, 1], [0], [0]>} : vector<2x8x8xf32>, vector<2x8x8xf32>, vector<2x8x8xf32> -> vector<2x8x8xf32>
    "tpu.trace_stop"() : () -> ()
    %132 = arith.addf %131, %46 : vector<2x8x8xf32>
    %cst_58 = arith.constant dense<0xFF800000> : vector<2x8xf32>
    %133 = vector.multi_reduction <maximumf>, %132, %cst_58 [2] : vector<2x8x8xf32> to vector<2x8xf32>
    %134 = vector.shape_cast %133 : vector<2x8xf32> to vector<2x8x1xf32>
    %135 = vector.broadcast %134 : vector<2x8x1xf32> to vector<2x8x8xf32>
    %136 = arith.subf %132, %135 : vector<2x8x8xf32>
    %137 = math.exp %136 : vector<2x8x8xf32>
    %cst_59 = arith.constant dense<0.000000e+00> : vector<2x8xf32>
    %138 = vector.multi_reduction <add>, %137, %cst_59 [2] : vector<2x8x8xf32> to vector<2x8xf32>
    %139 = vector.shape_cast %138 : vector<2x8xf32> to vector<2x8x1xf32>
    %140 = tpu.reciprocal %139 : vector<2x8x1xf32> -> vector<2x8x1xf32>
    %141 = vector.broadcast %140 : vector<2x8x1xf32> to vector<2x8x8xf32>
    %142 = arith.mulf %137, %141 : vector<2x8x8xf32>
    "tpu.trace_start"() <{level = 10 : i32, message = "bqk,bkd->bqd"}> : () -> ()
    %cst_60 = arith.constant dense<0.000000e+00> : vector<2x8x8xf32>
    %143 = tpu.matmul %142, %130, %cst_60 {dimension_numbers = #tpu.dot_dimension_numbers<[2], [1], [1], [2], [0, 0, 0, 1, 1, 2], [0], [0]>} : vector<2x8x8xf32>, vector<2x8x8xf32>, vector<2x8x8xf32> -> vector<2x8x8xf32>
    "tpu.trace_stop"() : () -> ()
    %144 = vector.extract_strided_slice %86 {offsets = [0, 24], sizes = [16, 8], strides = [1, 1]} : vector<16x96xf32> to vector<16x8xf32>
    %145 = vector.shape_cast %144 : vector<16x8xf32> to vector<2x8x8xf32>
    %146 = vector.extract_strided_slice %86 {offsets = [0, 56], sizes = [16, 8], strides = [1, 1]} : vector<16x96xf32> to vector<16x8xf32>
    %147 = vector.shape_cast %146 : vector<16x8xf32> to vector<2x8x8xf32>
    %148 = vector.extract_strided_slice %86 {offsets = [0, 88], sizes = [16, 8], strides = [1, 1]} : vector<16x96xf32> to vector<16x8xf32>
    %149 = vector.shape_cast %148 : vector<16x8xf32> to vector<2x8x8xf32>
    "tpu.trace_start"() <{level = 10 : i32, message = "bqd,bkd->bqk"}> : () -> ()
    %cst_61 = arith.constant dense<0.000000e+00> : vector<2x8x8xf32>
    %150 = tpu.matmul %145, %147, %cst_61 {dimension_numbers = #tpu.dot_dimension_numbers<[2], [2], [1], [1], [0, 0, 0, 1, 1, 1], [0], [0]>} : vector<2x8x8xf32>, vector<2x8x8xf32>, vector<2x8x8xf32> -> vector<2x8x8xf32>
    "tpu.trace_stop"() : () -> ()
    %151 = arith.addf %150, %46 : vector<2x8x8xf32>
    %cst_62 = arith.constant dense<0xFF800000> : vector<2x8xf32>
    %152 = vector.multi_reduction <maximumf>, %151, %cst_62 [2] : vector<2x8x8xf32> to vector<2x8xf32>
    %153 = vector.shape_cast %152 : vector<2x8xf32> to vector<2x8x1xf32>
    %154 = vector.broadcast %153 : vector<2x8x1xf32> to vector<2x8x8xf32>
    %155 = arith.subf %151, %154 : vector<2x8x8xf32>
    %156 = math.exp %155 : vector<2x8x8xf32>
    %cst_63 = arith.constant dense<0.000000e+00> : vector<2x8xf32>
    %157 = vector.multi_reduction <add>, %156, %cst_63 [2] : vector<2x8x8xf32> to vector<2x8xf32>
    %158 = vector.shape_cast %157 : vector<2x8xf32> to vector<2x8x1xf32>
    %159 = tpu.reciprocal %158 : vector<2x8x1xf32> -> vector<2x8x1xf32>
    %160 = vector.broadcast %159 : vector<2x8x1xf32> to vector<2x8x8xf32>
    %161 = arith.mulf %156, %160 : vector<2x8x8xf32>
    "tpu.trace_start"() <{level = 10 : i32, message = "bqk,bkd->bqd"}> : () -> ()
    %cst_64 = arith.constant dense<0.000000e+00> : vector<2x8x8xf32>
    %162 = tpu.matmul %161, %149, %cst_64 {dimension_numbers = #tpu.dot_dimension_numbers<[2], [1], [1], [2], [0, 0, 0, 1, 1, 2], [0], [0]>} : vector<2x8x8xf32>, vector<2x8x8xf32>, vector<2x8x8xf32> -> vector<2x8x8xf32>
    "tpu.trace_stop"() : () -> ()
    %163 = tpu.concatenate %105, %124, %143, %162 in 2 : vector<2x8x8xf32>, vector<2x8x8xf32>, vector<2x8x8xf32>, vector<2x8x8xf32> -> vector<2x8x32xf32>
    %164 = vector.shape_cast %163 : vector<2x8x32xf32> to vector<16x32xf32>
    %c0_65 = arith.constant 0 : index
    %c0_66 = arith.constant 0 : index
    %c0_67 = arith.constant 0 : index
    %165 = vector.load %arg17[%c0_65, %c0_66, %c0_67] : memref<2x32x32xf32, #tpu.memory_space<vmem>>, vector<1x32x32xf32>
    %166 = vector.shape_cast %165 : vector<1x32x32xf32> to vector<32x32xf32>
    %cst_68 = arith.constant dense<0.000000e+00> : vector<16x32xf32>
    %167 = tpu.matmul %164, %166, %cst_68 {dimension_numbers = #tpu.dot_dimension_numbers<[1], [0], [0], [1], [0, 0, 1, 1], [], []>} : vector<16x32xf32>, vector<32x32xf32>, vector<16x32xf32> -> vector<16x32xf32>
    %168 = arith.addf %79, %167 : vector<16x32xf32>
    %c0_69 = arith.constant 0 : index
    %c0_70 = arith.constant 0 : index
    %c0_71 = arith.constant 0 : index
    %169 = vector.load %arg18[%c0_69, %c0_70, %c0_71] : memref<2x1x32xf32, #tpu.memory_space<vmem>>, vector<1x1x32xf32>
    %170 = vector.shape_cast %169 : vector<1x1x32xf32> to vector<1x32xf32>
    %171 = vector.broadcast %170 : vector<1x32xf32> to vector<16x32xf32>
    %172 = arith.addf %168, %171 : vector<16x32xf32>
    %c0_72 = arith.constant 0 : index
    %c0_73 = arith.constant 0 : index
    %c0_74 = arith.constant 0 : index
    %173 = vector.load %arg11[%c0_72, %c0_73, %c0_74] : memref<2x1x32xf32, #tpu.memory_space<vmem>>, vector<1x1x32xf32>
    %174 = vector.shape_cast %173 : vector<1x1x32xf32> to vector<1x32xf32>
    %c0_75 = arith.constant 0 : index
    %c0_76 = arith.constant 0 : index
    %c0_77 = arith.constant 0 : index
    %175 = vector.load %arg12[%c0_75, %c0_76, %c0_77] : memref<2x1x32xf32, #tpu.memory_space<vmem>>, vector<1x1x32xf32>
    %176 = vector.shape_cast %175 : vector<1x1x32xf32> to vector<1x32xf32>
    %cst_78 = arith.constant dense<0.000000e+00> : vector<16xf32>
    %177 = vector.multi_reduction <add>, %172, %cst_78 [1] : vector<16x32xf32> to vector<16xf32>
    %178 = vector.shape_cast %177 : vector<16xf32> to vector<16x1xf32>
    %cst_79 = arith.constant 3.200000e+01 : f32
    %179 = vector.broadcast %cst_79 : f32 to vector<16x1xf32>
    %180 = arith.divf %178, %179 : vector<16x1xf32>
    %181 = vector.broadcast %180 : vector<16x1xf32> to vector<16x32xf32>
    %182 = arith.subf %172, %181 : vector<16x32xf32>
    %183 = arith.mulf %182, %182 : vector<16x32xf32>
    %cst_80 = arith.constant dense<0.000000e+00> : vector<16xf32>
    %184 = vector.multi_reduction <add>, %183, %cst_80 [1] : vector<16x32xf32> to vector<16xf32>
    %185 = vector.shape_cast %184 : vector<16xf32> to vector<16x1xf32>
    %cst_81 = arith.constant 3.200000e+01 : f32
    %186 = vector.broadcast %cst_81 : f32 to vector<16x1xf32>
    %187 = arith.divf %185, %186 : vector<16x1xf32>
    %188 = vector.broadcast %180 : vector<16x1xf32> to vector<16x32xf32>
    %189 = arith.subf %172, %188 : vector<16x32xf32>
    %cst_82 = arith.constant 9.99999974E-6 : f32
    %190 = vector.broadcast %cst_82 : f32 to vector<16x1xf32>
    %191 = arith.addf %187, %190 : vector<16x1xf32>
    %192 = math.rsqrt %191 : vector<16x1xf32>
    %193 = vector.broadcast %192 : vector<16x1xf32> to vector<16x32xf32>
    %194 = arith.mulf %189, %193 : vector<16x32xf32>
    %195 = vector.broadcast %174 : vector<1x32xf32> to vector<16x32xf32>
    %196 = arith.mulf %194, %195 : vector<16x32xf32>
    %197 = vector.broadcast %176 : vector<1x32xf32> to vector<16x32xf32>
    %198 = arith.addf %196, %197 : vector<16x32xf32>
    %c0_83 = arith.constant 0 : index
    %c0_84 = arith.constant 0 : index
    %c0_85 = arith.constant 0 : index
    %199 = vector.load %arg19[%c0_83, %c0_84, %c0_85] : memref<2x32x32xf32, #tpu.memory_space<vmem>>, vector<1x32x32xf32>
    %200 = vector.shape_cast %199 : vector<1x32x32xf32> to vector<32x32xf32>
    %cst_86 = arith.constant dense<0.000000e+00> : vector<16x32xf32>
    %201 = tpu.matmul %198, %200, %cst_86 {dimension_numbers = #tpu.dot_dimension_numbers<[1], [0], [0], [1], [0, 0, 1, 1], [], []>} : vector<16x32xf32>, vector<32x32xf32>, vector<16x32xf32> -> vector<16x32xf32>
    %c0_87 = arith.constant 0 : index
    %c0_88 = arith.constant 0 : index
    %c0_89 = arith.constant 0 : index
    %202 = vector.load %arg20[%c0_87, %c0_88, %c0_89] : memref<2x1x32xf32, #tpu.memory_space<vmem>>, vector<1x1x32xf32>
    %203 = vector.shape_cast %202 : vector<1x1x32xf32> to vector<1x32xf32>
    %204 = vector.broadcast %203 : vector<1x32xf32> to vector<16x32xf32>
    %205 = arith.addf %201, %204 : vector<16x32xf32>
    %206 = vector.shape_cast %205 : vector<16x32xf32> to vector<2x8x32xf32>
    %c0_90 = arith.constant 0 : index
    %c0_91 = arith.constant 0 : index
    %c0_92 = arith.constant 0 : index
    %207 = vector.load %arg21[%c0_90, %c0_91, %c0_92] : memref<2x32x64xf32, #tpu.memory_space<vmem>>, vector<1x32x64xf32>
    %208 = vector.shape_cast %207 : vector<1x32x64xf32> to vector<32x64xf32>
    %cst_93 = arith.constant dense<0.000000e+00> : vector<32x64xf32>
    %209 = tpu.matmul %53, %208, %cst_93 {dimension_numbers = #tpu.dot_dimension_numbers<[1], [0], [0], [1], [0, 0, 1, 1], [], []>} : vector<32x32xf32>, vector<32x64xf32>, vector<32x64xf32> -> vector<32x64xf32>
    %c0_94 = arith.constant 0 : index
    %c0_95 = arith.constant 0 : index
    %c0_96 = arith.constant 0 : index
    %210 = vector.load %arg22[%c0_94, %c0_95, %c0_96] : memref<2x1x64xf32, #tpu.memory_space<vmem>>, vector<1x1x64xf32>
    %211 = vector.shape_cast %210 : vector<1x1x64xf32> to vector<1x64xf32>
    %212 = vector.broadcast %211 : vector<1x64xf32> to vector<32x64xf32>
    %213 = arith.addf %209, %212 : vector<32x64xf32>
    %214 = vector.extract_strided_slice %213 {offsets = [0, 0], sizes = [32, 32], strides = [1, 1]} : vector<32x64xf32> to vector<32x32xf32>
    %215 = vector.shape_cast %214 : vector<32x32xf32> to vector<2x16x32xf32>
    %216 = vector.extract_strided_slice %213 {offsets = [0, 32], sizes = [32, 32], strides = [1, 1]} : vector<32x64xf32> to vector<32x32xf32>
    %217 = vector.shape_cast %216 : vector<32x32xf32> to vector<2x16x32xf32>
    "tpu.trace_start"() <{level = 10 : i32, message = "bqd,bkd->bqk"}> : () -> ()
    %cst_97 = arith.constant dense<0.000000e+00> : vector<2x8x16xf32>
    %218 = tpu.matmul %206, %215, %cst_97 {dimension_numbers = #tpu.dot_dimension_numbers<[2], [2], [1], [1], [0, 0, 0, 1, 1, 1], [0], [0]>} : vector<2x8x32xf32>, vector<2x16x32xf32>, vector<2x8x16xf32> -> vector<2x8x16xf32>
    "tpu.trace_stop"() : () -> ()
    %219 = arith.addf %218, %52 : vector<2x8x16xf32>
    %cst_98 = arith.constant dense<0xFF800000> : vector<2x8xf32>
    %220 = vector.multi_reduction <maximumf>, %219, %cst_98 [2] : vector<2x8x16xf32> to vector<2x8xf32>
    %221 = vector.shape_cast %220 : vector<2x8xf32> to vector<2x8x1xf32>
    %222 = vector.broadcast %221 : vector<2x8x1xf32> to vector<2x8x16xf32>
    %223 = arith.subf %219, %222 : vector<2x8x16xf32>
    %224 = math.exp %223 : vector<2x8x16xf32>
    %cst_99 = arith.constant dense<0.000000e+00> : vector<2x8xf32>
    %225 = vector.multi_reduction <add>, %224, %cst_99 [2] : vector<2x8x16xf32> to vector<2x8xf32>
    %226 = vector.shape_cast %225 : vector<2x8xf32> to vector<2x8x1xf32>
    %227 = tpu.reciprocal %226 : vector<2x8x1xf32> -> vector<2x8x1xf32>
    %228 = vector.broadcast %227 : vector<2x8x1xf32> to vector<2x8x16xf32>
    %229 = arith.mulf %224, %228 : vector<2x8x16xf32>
    "tpu.trace_start"() <{level = 10 : i32, message = "bqk,bkd->bqd"}> : () -> ()
    %cst_100 = arith.constant dense<0.000000e+00> : vector<2x8x32xf32>
    %230 = tpu.matmul %229, %217, %cst_100 {dimension_numbers = #tpu.dot_dimension_numbers<[2], [1], [1], [2], [0, 0, 0, 1, 1, 2], [0], [0]>} : vector<2x8x16xf32>, vector<2x16x32xf32>, vector<2x8x32xf32> -> vector<2x8x32xf32>
    "tpu.trace_stop"() : () -> ()
    %231 = vector.shape_cast %230 : vector<2x8x32xf32> to vector<16x32xf32>
    %232 = arith.addf %198, %231 : vector<16x32xf32>
    %c0_101 = arith.constant 0 : index
    %c0_102 = arith.constant 0 : index
    %c0_103 = arith.constant 0 : index
    %233 = vector.load %arg13[%c0_101, %c0_102, %c0_103] : memref<2x1x32xf32, #tpu.memory_space<vmem>>, vector<1x1x32xf32>
    %234 = vector.shape_cast %233 : vector<1x1x32xf32> to vector<1x32xf32>
    %c0_104 = arith.constant 0 : index
    %c0_105 = arith.constant 0 : index
    %c0_106 = arith.constant 0 : index
    %235 = vector.load %arg14[%c0_104, %c0_105, %c0_106] : memref<2x1x32xf32, #tpu.memory_space<vmem>>, vector<1x1x32xf32>
    %236 = vector.shape_cast %235 : vector<1x1x32xf32> to vector<1x32xf32>
    %cst_107 = arith.constant dense<0.000000e+00> : vector<16xf32>
    %237 = vector.multi_reduction <add>, %232, %cst_107 [1] : vector<16x32xf32> to vector<16xf32>
    %238 = vector.shape_cast %237 : vector<16xf32> to vector<16x1xf32>
    %cst_108 = arith.constant 3.200000e+01 : f32
    %239 = vector.broadcast %cst_108 : f32 to vector<16x1xf32>
    %240 = arith.divf %238, %239 : vector<16x1xf32>
    %241 = vector.broadcast %240 : vector<16x1xf32> to vector<16x32xf32>
    %242 = arith.subf %232, %241 : vector<16x32xf32>
    %243 = arith.mulf %242, %242 : vector<16x32xf32>
    %cst_109 = arith.constant dense<0.000000e+00> : vector<16xf32>
    %244 = vector.multi_reduction <add>, %243, %cst_109 [1] : vector<16x32xf32> to vector<16xf32>
    %245 = vector.shape_cast %244 : vector<16xf32> to vector<16x1xf32>
    %cst_110 = arith.constant 3.200000e+01 : f32
    %246 = vector.broadcast %cst_110 : f32 to vector<16x1xf32>
    %247 = arith.divf %245, %246 : vector<16x1xf32>
    %248 = vector.broadcast %240 : vector<16x1xf32> to vector<16x32xf32>
    %249 = arith.subf %232, %248 : vector<16x32xf32>
    %cst_111 = arith.constant 9.99999974E-6 : f32
    %250 = vector.broadcast %cst_111 : f32 to vector<16x1xf32>
    %251 = arith.addf %247, %250 : vector<16x1xf32>
    %252 = math.rsqrt %251 : vector<16x1xf32>
    %253 = vector.broadcast %252 : vector<16x1xf32> to vector<16x32xf32>
    %254 = arith.mulf %249, %253 : vector<16x32xf32>
    %255 = vector.broadcast %234 : vector<1x32xf32> to vector<16x32xf32>
    %256 = arith.mulf %254, %255 : vector<16x32xf32>
    %257 = vector.broadcast %236 : vector<1x32xf32> to vector<16x32xf32>
    %258 = arith.addf %256, %257 : vector<16x32xf32>
    %c0_112 = arith.constant 0 : index
    %c0_113 = arith.constant 0 : index
    %c0_114 = arith.constant 0 : index
    %259 = vector.load %arg23[%c0_112, %c0_113, %c0_114] : memref<2x32x64xf32, #tpu.memory_space<vmem>>, vector<1x32x64xf32>
    %260 = vector.shape_cast %259 : vector<1x32x64xf32> to vector<32x64xf32>
    %cst_115 = arith.constant dense<0.000000e+00> : vector<16x64xf32>
    %261 = tpu.matmul %258, %260, %cst_115 {dimension_numbers = #tpu.dot_dimension_numbers<[1], [0], [0], [1], [0, 0, 1, 1], [], []>} : vector<16x32xf32>, vector<32x64xf32>, vector<16x64xf32> -> vector<16x64xf32>
    %c0_116 = arith.constant 0 : index
    %c0_117 = arith.constant 0 : index
    %c0_118 = arith.constant 0 : index
    %262 = vector.load %arg24[%c0_116, %c0_117, %c0_118] : memref<2x1x64xf32, #tpu.memory_space<vmem>>, vector<1x1x64xf32>
    %263 = vector.shape_cast %262 : vector<1x1x64xf32> to vector<1x64xf32>
    %264 = vector.broadcast %263 : vector<1x64xf32> to vector<16x64xf32>
    %265 = arith.addf %261, %264 : vector<16x64xf32>
    %cst_119 = arith.constant 5.000000e-01 : f32
    %266 = vector.broadcast %cst_119 : f32 to vector<16x64xf32>
    %267 = arith.mulf %266, %265 : vector<16x64xf32>
    %cst_120 = arith.constant 0.707106769 : f32
    %268 = vector.broadcast %cst_120 : f32 to vector<16x64xf32>
    %269 = arith.mulf %265, %268 : vector<16x64xf32>
    %270 = math.erf %269 : vector<16x64xf32>
    %cst_121 = arith.constant 1.000000e+00 : f32
    %271 = vector.broadcast %cst_121 : f32 to vector<16x64xf32>
    %272 = arith.addf %271, %270 : vector<16x64xf32>
    %273 = arith.mulf %267, %272 : vector<16x64xf32>
    %c0_122 = arith.constant 0 : index
    %c0_123 = arith.constant 0 : index
    %c0_124 = arith.constant 0 : index
    %274 = vector.load %arg25[%c0_122, %c0_123, %c0_124] : memref<2x64x32xf32, #tpu.memory_space<vmem>>, vector<1x64x32xf32>
    %275 = vector.shape_cast %274 : vector<1x64x32xf32> to vector<64x32xf32>
    %cst_125 = arith.constant dense<0.000000e+00> : vector<16x32xf32>
    %276 = tpu.matmul %273, %275, %cst_125 {dimension_numbers = #tpu.dot_dimension_numbers<[1], [0], [0], [1], [0, 0, 1, 1], [], []>} : vector<16x64xf32>, vector<64x32xf32>, vector<16x32xf32> -> vector<16x32xf32>
    %277 = arith.addf %258, %276 : vector<16x32xf32>
    %c0_126 = arith.constant 0 : index
    %c0_127 = arith.constant 0 : index
    %c0_128 = arith.constant 0 : index
    %278 = vector.load %arg26[%c0_126, %c0_127, %c0_128] : memref<2x1x32xf32, #tpu.memory_space<vmem>>, vector<1x1x32xf32>
    %279 = vector.shape_cast %278 : vector<1x1x32xf32> to vector<1x32xf32>
    %280 = vector.broadcast %279 : vector<1x32xf32> to vector<16x32xf32>
    %281 = arith.addf %277, %280 : vector<16x32xf32>
    %c1 = arith.constant 1 : index
    %c0_129 = arith.constant 0 : index
    %c0_130 = arith.constant 0 : index
    %282 = vector.load %arg9[%c1, %c0_129, %c0_130] : memref<2x1x32xf32, #tpu.memory_space<vmem>>, vector<1x1x32xf32>
    %283 = vector.shape_cast %282 : vector<1x1x32xf32> to vector<1x32xf32>
    %c1_131 = arith.constant 1 : index
    %c0_132 = arith.constant 0 : index
    %c0_133 = arith.constant 0 : index
    %284 = vector.load %arg10[%c1_131, %c0_132, %c0_133] : memref<2x1x32xf32, #tpu.memory_space<vmem>>, vector<1x1x32xf32>
    %285 = vector.shape_cast %284 : vector<1x1x32xf32> to vector<1x32xf32>
    %cst_134 = arith.constant dense<0.000000e+00> : vector<16xf32>
    %286 = vector.multi_reduction <add>, %281, %cst_134 [1] : vector<16x32xf32> to vector<16xf32>
    %287 = vector.shape_cast %286 : vector<16xf32> to vector<16x1xf32>
    %cst_135 = arith.constant 3.200000e+01 : f32
    %288 = vector.broadcast %cst_135 : f32 to vector<16x1xf32>
    %289 = arith.divf %287, %288 : vector<16x1xf32>
    %290 = vector.broadcast %289 : vector<16x1xf32> to vector<16x32xf32>
    %291 = arith.subf %281, %290 : vector<16x32xf32>
    %292 = arith.mulf %291, %291 : vector<16x32xf32>
    %cst_136 = arith.constant dense<0.000000e+00> : vector<16xf32>
    %293 = vector.multi_reduction <add>, %292, %cst_136 [1] : vector<16x32xf32> to vector<16xf32>
    %294 = vector.shape_cast %293 : vector<16xf32> to vector<16x1xf32>
    %cst_137 = arith.constant 3.200000e+01 : f32
    %295 = vector.broadcast %cst_137 : f32 to vector<16x1xf32>
    %296 = arith.divf %294, %295 : vector<16x1xf32>
    %297 = vector.broadcast %289 : vector<16x1xf32> to vector<16x32xf32>
    %298 = arith.subf %281, %297 : vector<16x32xf32>
    %cst_138 = arith.constant 9.99999974E-6 : f32
    %299 = vector.broadcast %cst_138 : f32 to vector<16x1xf32>
    %300 = arith.addf %296, %299 : vector<16x1xf32>
    %301 = math.rsqrt %300 : vector<16x1xf32>
    %302 = vector.broadcast %301 : vector<16x1xf32> to vector<16x32xf32>
    %303 = arith.mulf %298, %302 : vector<16x32xf32>
    %304 = vector.broadcast %283 : vector<1x32xf32> to vector<16x32xf32>
    %305 = arith.mulf %303, %304 : vector<16x32xf32>
    %306 = vector.broadcast %285 : vector<1x32xf32> to vector<16x32xf32>
    %307 = arith.addf %305, %306 : vector<16x32xf32>
    %c1_139 = arith.constant 1 : index
    %c0_140 = arith.constant 0 : index
    %c0_141 = arith.constant 0 : index
    %308 = vector.load %arg15[%c1_139, %c0_140, %c0_141] : memref<2x32x96xf32, #tpu.memory_space<vmem>>, vector<1x32x96xf32>
    %309 = vector.shape_cast %308 : vector<1x32x96xf32> to vector<32x96xf32>
    %cst_142 = arith.constant dense<0.000000e+00> : vector<16x96xf32>
    %310 = tpu.matmul %307, %309, %cst_142 {dimension_numbers = #tpu.dot_dimension_numbers<[1], [0], [0], [1], [0, 0, 1, 1], [], []>} : vector<16x32xf32>, vector<32x96xf32>, vector<16x96xf32> -> vector<16x96xf32>
    %c1_143 = arith.constant 1 : index
    %c0_144 = arith.constant 0 : index
    %c0_145 = arith.constant 0 : index
    %311 = vector.load %arg16[%c1_143, %c0_144, %c0_145] : memref<2x1x96xf32, #tpu.memory_space<vmem>>, vector<1x1x96xf32>
    %312 = vector.shape_cast %311 : vector<1x1x96xf32> to vector<1x96xf32>
    %313 = vector.broadcast %312 : vector<1x96xf32> to vector<16x96xf32>
    %314 = arith.addf %310, %313 : vector<16x96xf32>
    %315 = vector.extract_strided_slice %314 {offsets = [0, 0], sizes = [16, 8], strides = [1, 1]} : vector<16x96xf32> to vector<16x8xf32>
    %316 = vector.shape_cast %315 : vector<16x8xf32> to vector<2x8x8xf32>
    %317 = vector.extract_strided_slice %314 {offsets = [0, 32], sizes = [16, 8], strides = [1, 1]} : vector<16x96xf32> to vector<16x8xf32>
    %318 = vector.shape_cast %317 : vector<16x8xf32> to vector<2x8x8xf32>
    %319 = vector.extract_strided_slice %314 {offsets = [0, 64], sizes = [16, 8], strides = [1, 1]} : vector<16x96xf32> to vector<16x8xf32>
    %320 = vector.shape_cast %319 : vector<16x8xf32> to vector<2x8x8xf32>
    "tpu.trace_start"() <{level = 10 : i32, message = "bqd,bkd->bqk"}> : () -> ()
    %cst_146 = arith.constant dense<0.000000e+00> : vector<2x8x8xf32>
    %321 = tpu.matmul %316, %318, %cst_146 {dimension_numbers = #tpu.dot_dimension_numbers<[2], [2], [1], [1], [0, 0, 0, 1, 1, 1], [0], [0]>} : vector<2x8x8xf32>, vector<2x8x8xf32>, vector<2x8x8xf32> -> vector<2x8x8xf32>
    "tpu.trace_stop"() : () -> ()
    %322 = arith.addf %321, %46 : vector<2x8x8xf32>
    %cst_147 = arith.constant dense<0xFF800000> : vector<2x8xf32>
    %323 = vector.multi_reduction <maximumf>, %322, %cst_147 [2] : vector<2x8x8xf32> to vector<2x8xf32>
    %324 = vector.shape_cast %323 : vector<2x8xf32> to vector<2x8x1xf32>
    %325 = vector.broadcast %324 : vector<2x8x1xf32> to vector<2x8x8xf32>
    %326 = arith.subf %322, %325 : vector<2x8x8xf32>
    %327 = math.exp %326 : vector<2x8x8xf32>
    %cst_148 = arith.constant dense<0.000000e+00> : vector<2x8xf32>
    %328 = vector.multi_reduction <add>, %327, %cst_148 [2] : vector<2x8x8xf32> to vector<2x8xf32>
    %329 = vector.shape_cast %328 : vector<2x8xf32> to vector<2x8x1xf32>
    %330 = tpu.reciprocal %329 : vector<2x8x1xf32> -> vector<2x8x1xf32>
    %331 = vector.broadcast %330 : vector<2x8x1xf32> to vector<2x8x8xf32>
    %332 = arith.mulf %327, %331 : vector<2x8x8xf32>
    "tpu.trace_start"() <{level = 10 : i32, message = "bqk,bkd->bqd"}> : () -> ()
    %cst_149 = arith.constant dense<0.000000e+00> : vector<2x8x8xf32>
    %333 = tpu.matmul %332, %320, %cst_149 {dimension_numbers = #tpu.dot_dimension_numbers<[2], [1], [1], [2], [0, 0, 0, 1, 1, 2], [0], [0]>} : vector<2x8x8xf32>, vector<2x8x8xf32>, vector<2x8x8xf32> -> vector<2x8x8xf32>
    "tpu.trace_stop"() : () -> ()
    %334 = vector.extract_strided_slice %314 {offsets = [0, 8], sizes = [16, 8], strides = [1, 1]} : vector<16x96xf32> to vector<16x8xf32>
    %335 = vector.shape_cast %334 : vector<16x8xf32> to vector<2x8x8xf32>
    %336 = vector.extract_strided_slice %314 {offsets = [0, 40], sizes = [16, 8], strides = [1, 1]} : vector<16x96xf32> to vector<16x8xf32>
    %337 = vector.shape_cast %336 : vector<16x8xf32> to vector<2x8x8xf32>
    %338 = vector.extract_strided_slice %314 {offsets = [0, 72], sizes = [16, 8], strides = [1, 1]} : vector<16x96xf32> to vector<16x8xf32>
    %339 = vector.shape_cast %338 : vector<16x8xf32> to vector<2x8x8xf32>
    "tpu.trace_start"() <{level = 10 : i32, message = "bqd,bkd->bqk"}> : () -> ()
    %cst_150 = arith.constant dense<0.000000e+00> : vector<2x8x8xf32>
    %340 = tpu.matmul %335, %337, %cst_150 {dimension_numbers = #tpu.dot_dimension_numbers<[2], [2], [1], [1], [0, 0, 0, 1, 1, 1], [0], [0]>} : vector<2x8x8xf32>, vector<2x8x8xf32>, vector<2x8x8xf32> -> vector<2x8x8xf32>
    "tpu.trace_stop"() : () -> ()
    %341 = arith.addf %340, %46 : vector<2x8x8xf32>
    %cst_151 = arith.constant dense<0xFF800000> : vector<2x8xf32>
    %342 = vector.multi_reduction <maximumf>, %341, %cst_151 [2] : vector<2x8x8xf32> to vector<2x8xf32>
    %343 = vector.shape_cast %342 : vector<2x8xf32> to vector<2x8x1xf32>
    %344 = vector.broadcast %343 : vector<2x8x1xf32> to vector<2x8x8xf32>
    %345 = arith.subf %341, %344 : vector<2x8x8xf32>
    %346 = math.exp %345 : vector<2x8x8xf32>
    %cst_152 = arith.constant dense<0.000000e+00> : vector<2x8xf32>
    %347 = vector.multi_reduction <add>, %346, %cst_152 [2] : vector<2x8x8xf32> to vector<2x8xf32>
    %348 = vector.shape_cast %347 : vector<2x8xf32> to vector<2x8x1xf32>
    %349 = tpu.reciprocal %348 : vector<2x8x1xf32> -> vector<2x8x1xf32>
    %350 = vector.broadcast %349 : vector<2x8x1xf32> to vector<2x8x8xf32>
    %351 = arith.mulf %346, %350 : vector<2x8x8xf32>
    "tpu.trace_start"() <{level = 10 : i32, message = "bqk,bkd->bqd"}> : () -> ()
    %cst_153 = arith.constant dense<0.000000e+00> : vector<2x8x8xf32>
    %352 = tpu.matmul %351, %339, %cst_153 {dimension_numbers = #tpu.dot_dimension_numbers<[2], [1], [1], [2], [0, 0, 0, 1, 1, 2], [0], [0]>} : vector<2x8x8xf32>, vector<2x8x8xf32>, vector<2x8x8xf32> -> vector<2x8x8xf32>
    "tpu.trace_stop"() : () -> ()
    %353 = vector.extract_strided_slice %314 {offsets = [0, 16], sizes = [16, 8], strides = [1, 1]} : vector<16x96xf32> to vector<16x8xf32>
    %354 = vector.shape_cast %353 : vector<16x8xf32> to vector<2x8x8xf32>
    %355 = vector.extract_strided_slice %314 {offsets = [0, 48], sizes = [16, 8], strides = [1, 1]} : vector<16x96xf32> to vector<16x8xf32>
    %356 = vector.shape_cast %355 : vector<16x8xf32> to vector<2x8x8xf32>
    %357 = vector.extract_strided_slice %314 {offsets = [0, 80], sizes = [16, 8], strides = [1, 1]} : vector<16x96xf32> to vector<16x8xf32>
    %358 = vector.shape_cast %357 : vector<16x8xf32> to vector<2x8x8xf32>
    "tpu.trace_start"() <{level = 10 : i32, message = "bqd,bkd->bqk"}> : () -> ()
    %cst_154 = arith.constant dense<0.000000e+00> : vector<2x8x8xf32>
    %359 = tpu.matmul %354, %356, %cst_154 {dimension_numbers = #tpu.dot_dimension_numbers<[2], [2], [1], [1], [0, 0, 0, 1, 1, 1], [0], [0]>} : vector<2x8x8xf32>, vector<2x8x8xf32>, vector<2x8x8xf32> -> vector<2x8x8xf32>
    "tpu.trace_stop"() : () -> ()
    %360 = arith.addf %359, %46 : vector<2x8x8xf32>
    %cst_155 = arith.constant dense<0xFF800000> : vector<2x8xf32>
    %361 = vector.multi_reduction <maximumf>, %360, %cst_155 [2] : vector<2x8x8xf32> to vector<2x8xf32>
    %362 = vector.shape_cast %361 : vector<2x8xf32> to vector<2x8x1xf32>
    %363 = vector.broadcast %362 : vector<2x8x1xf32> to vector<2x8x8xf32>
    %364 = arith.subf %360, %363 : vector<2x8x8xf32>
    %365 = math.exp %364 : vector<2x8x8xf32>
    %cst_156 = arith.constant dense<0.000000e+00> : vector<2x8xf32>
    %366 = vector.multi_reduction <add>, %365, %cst_156 [2] : vector<2x8x8xf32> to vector<2x8xf32>
    %367 = vector.shape_cast %366 : vector<2x8xf32> to vector<2x8x1xf32>
    %368 = tpu.reciprocal %367 : vector<2x8x1xf32> -> vector<2x8x1xf32>
    %369 = vector.broadcast %368 : vector<2x8x1xf32> to vector<2x8x8xf32>
    %370 = arith.mulf %365, %369 : vector<2x8x8xf32>
    "tpu.trace_start"() <{level = 10 : i32, message = "bqk,bkd->bqd"}> : () -> ()
    %cst_157 = arith.constant dense<0.000000e+00> : vector<2x8x8xf32>
    %371 = tpu.matmul %370, %358, %cst_157 {dimension_numbers = #tpu.dot_dimension_numbers<[2], [1], [1], [2], [0, 0, 0, 1, 1, 2], [0], [0]>} : vector<2x8x8xf32>, vector<2x8x8xf32>, vector<2x8x8xf32> -> vector<2x8x8xf32>
    "tpu.trace_stop"() : () -> ()
    %372 = vector.extract_strided_slice %314 {offsets = [0, 24], sizes = [16, 8], strides = [1, 1]} : vector<16x96xf32> to vector<16x8xf32>
    %373 = vector.shape_cast %372 : vector<16x8xf32> to vector<2x8x8xf32>
    %374 = vector.extract_strided_slice %314 {offsets = [0, 56], sizes = [16, 8], strides = [1, 1]} : vector<16x96xf32> to vector<16x8xf32>
    %375 = vector.shape_cast %374 : vector<16x8xf32> to vector<2x8x8xf32>
    %376 = vector.extract_strided_slice %314 {offsets = [0, 88], sizes = [16, 8], strides = [1, 1]} : vector<16x96xf32> to vector<16x8xf32>
    %377 = vector.shape_cast %376 : vector<16x8xf32> to vector<2x8x8xf32>
    "tpu.trace_start"() <{level = 10 : i32, message = "bqd,bkd->bqk"}> : () -> ()
    %cst_158 = arith.constant dense<0.000000e+00> : vector<2x8x8xf32>
    %378 = tpu.matmul %373, %375, %cst_158 {dimension_numbers = #tpu.dot_dimension_numbers<[2], [2], [1], [1], [0, 0, 0, 1, 1, 1], [0], [0]>} : vector<2x8x8xf32>, vector<2x8x8xf32>, vector<2x8x8xf32> -> vector<2x8x8xf32>
    "tpu.trace_stop"() : () -> ()
    %379 = arith.addf %378, %46 : vector<2x8x8xf32>
    %cst_159 = arith.constant dense<0xFF800000> : vector<2x8xf32>
    %380 = vector.multi_reduction <maximumf>, %379, %cst_159 [2] : vector<2x8x8xf32> to vector<2x8xf32>
    %381 = vector.shape_cast %380 : vector<2x8xf32> to vector<2x8x1xf32>
    %382 = vector.broadcast %381 : vector<2x8x1xf32> to vector<2x8x8xf32>
    %383 = arith.subf %379, %382 : vector<2x8x8xf32>
    %384 = math.exp %383 : vector<2x8x8xf32>
    %cst_160 = arith.constant dense<0.000000e+00> : vector<2x8xf32>
    %385 = vector.multi_reduction <add>, %384, %cst_160 [2] : vector<2x8x8xf32> to vector<2x8xf32>
    %386 = vector.shape_cast %385 : vector<2x8xf32> to vector<2x8x1xf32>
    %387 = tpu.reciprocal %386 : vector<2x8x1xf32> -> vector<2x8x1xf32>
    %388 = vector.broadcast %387 : vector<2x8x1xf32> to vector<2x8x8xf32>
    %389 = arith.mulf %384, %388 : vector<2x8x8xf32>
    "tpu.trace_start"() <{level = 10 : i32, message = "bqk,bkd->bqd"}> : () -> ()
    %cst_161 = arith.constant dense<0.000000e+00> : vector<2x8x8xf32>
    %390 = tpu.matmul %389, %377, %cst_161 {dimension_numbers = #tpu.dot_dimension_numbers<[2], [1], [1], [2], [0, 0, 0, 1, 1, 2], [0], [0]>} : vector<2x8x8xf32>, vector<2x8x8xf32>, vector<2x8x8xf32> -> vector<2x8x8xf32>
    "tpu.trace_stop"() : () -> ()
    %391 = tpu.concatenate %333, %352, %371, %390 in 2 : vector<2x8x8xf32>, vector<2x8x8xf32>, vector<2x8x8xf32>, vector<2x8x8xf32> -> vector<2x8x32xf32>
    %392 = vector.shape_cast %391 : vector<2x8x32xf32> to vector<16x32xf32>
    %c1_162 = arith.constant 1 : index
    %c0_163 = arith.constant 0 : index
    %c0_164 = arith.constant 0 : index
    %393 = vector.load %arg17[%c1_162, %c0_163, %c0_164] : memref<2x32x32xf32, #tpu.memory_space<vmem>>, vector<1x32x32xf32>
    %394 = vector.shape_cast %393 : vector<1x32x32xf32> to vector<32x32xf32>
    %cst_165 = arith.constant dense<0.000000e+00> : vector<16x32xf32>
    %395 = tpu.matmul %392, %394, %cst_165 {dimension_numbers = #tpu.dot_dimension_numbers<[1], [0], [0], [1], [0, 0, 1, 1], [], []>} : vector<16x32xf32>, vector<32x32xf32>, vector<16x32xf32> -> vector<16x32xf32>
    %396 = arith.addf %307, %395 : vector<16x32xf32>
    %c1_166 = arith.constant 1 : index
    %c0_167 = arith.constant 0 : index
    %c0_168 = arith.constant 0 : index
    %397 = vector.load %arg18[%c1_166, %c0_167, %c0_168] : memref<2x1x32xf32, #tpu.memory_space<vmem>>, vector<1x1x32xf32>
    %398 = vector.shape_cast %397 : vector<1x1x32xf32> to vector<1x32xf32>
    %399 = vector.broadcast %398 : vector<1x32xf32> to vector<16x32xf32>
    %400 = arith.addf %396, %399 : vector<16x32xf32>
    %c1_169 = arith.constant 1 : index
    %c0_170 = arith.constant 0 : index
    %c0_171 = arith.constant 0 : index
    %401 = vector.load %arg11[%c1_169, %c0_170, %c0_171] : memref<2x1x32xf32, #tpu.memory_space<vmem>>, vector<1x1x32xf32>
    %402 = vector.shape_cast %401 : vector<1x1x32xf32> to vector<1x32xf32>
    %c1_172 = arith.constant 1 : index
    %c0_173 = arith.constant 0 : index
    %c0_174 = arith.constant 0 : index
    %403 = vector.load %arg12[%c1_172, %c0_173, %c0_174] : memref<2x1x32xf32, #tpu.memory_space<vmem>>, vector<1x1x32xf32>
    %404 = vector.shape_cast %403 : vector<1x1x32xf32> to vector<1x32xf32>
    %cst_175 = arith.constant dense<0.000000e+00> : vector<16xf32>
    %405 = vector.multi_reduction <add>, %400, %cst_175 [1] : vector<16x32xf32> to vector<16xf32>
    %406 = vector.shape_cast %405 : vector<16xf32> to vector<16x1xf32>
    %cst_176 = arith.constant 3.200000e+01 : f32
    %407 = vector.broadcast %cst_176 : f32 to vector<16x1xf32>
    %408 = arith.divf %406, %407 : vector<16x1xf32>
    %409 = vector.broadcast %408 : vector<16x1xf32> to vector<16x32xf32>
    %410 = arith.subf %400, %409 : vector<16x32xf32>
    %411 = arith.mulf %410, %410 : vector<16x32xf32>
    %cst_177 = arith.constant dense<0.000000e+00> : vector<16xf32>
    %412 = vector.multi_reduction <add>, %411, %cst_177 [1] : vector<16x32xf32> to vector<16xf32>
    %413 = vector.shape_cast %412 : vector<16xf32> to vector<16x1xf32>
    %cst_178 = arith.constant 3.200000e+01 : f32
    %414 = vector.broadcast %cst_178 : f32 to vector<16x1xf32>
    %415 = arith.divf %413, %414 : vector<16x1xf32>
    %416 = vector.broadcast %408 : vector<16x1xf32> to vector<16x32xf32>
    %417 = arith.subf %400, %416 : vector<16x32xf32>
    %cst_179 = arith.constant 9.99999974E-6 : f32
    %418 = vector.broadcast %cst_179 : f32 to vector<16x1xf32>
    %419 = arith.addf %415, %418 : vector<16x1xf32>
    %420 = math.rsqrt %419 : vector<16x1xf32>
    %421 = vector.broadcast %420 : vector<16x1xf32> to vector<16x32xf32>
    %422 = arith.mulf %417, %421 : vector<16x32xf32>
    %423 = vector.broadcast %402 : vector<1x32xf32> to vector<16x32xf32>
    %424 = arith.mulf %422, %423 : vector<16x32xf32>
    %425 = vector.broadcast %404 : vector<1x32xf32> to vector<16x32xf32>
    %426 = arith.addf %424, %425 : vector<16x32xf32>
    %c1_180 = arith.constant 1 : index
    %c0_181 = arith.constant 0 : index
    %c0_182 = arith.constant 0 : index
    %427 = vector.load %arg19[%c1_180, %c0_181, %c0_182] : memref<2x32x32xf32, #tpu.memory_space<vmem>>, vector<1x32x32xf32>
    %428 = vector.shape_cast %427 : vector<1x32x32xf32> to vector<32x32xf32>
    %cst_183 = arith.constant dense<0.000000e+00> : vector<16x32xf32>
    %429 = tpu.matmul %426, %428, %cst_183 {dimension_numbers = #tpu.dot_dimension_numbers<[1], [0], [0], [1], [0, 0, 1, 1], [], []>} : vector<16x32xf32>, vector<32x32xf32>, vector<16x32xf32> -> vector<16x32xf32>
    %c1_184 = arith.constant 1 : index
    %c0_185 = arith.constant 0 : index
    %c0_186 = arith.constant 0 : index
    %430 = vector.load %arg20[%c1_184, %c0_185, %c0_186] : memref<2x1x32xf32, #tpu.memory_space<vmem>>, vector<1x1x32xf32>
    %431 = vector.shape_cast %430 : vector<1x1x32xf32> to vector<1x32xf32>
    %432 = vector.broadcast %431 : vector<1x32xf32> to vector<16x32xf32>
    %433 = arith.addf %429, %432 : vector<16x32xf32>
    %434 = vector.shape_cast %433 : vector<16x32xf32> to vector<2x8x32xf32>
    %c1_187 = arith.constant 1 : index
    %c0_188 = arith.constant 0 : index
    %c0_189 = arith.constant 0 : index
    %435 = vector.load %arg21[%c1_187, %c0_188, %c0_189] : memref<2x32x64xf32, #tpu.memory_space<vmem>>, vector<1x32x64xf32>
    %436 = vector.shape_cast %435 : vector<1x32x64xf32> to vector<32x64xf32>
    %cst_190 = arith.constant dense<0.000000e+00> : vector<32x64xf32>
    %437 = tpu.matmul %53, %436, %cst_190 {dimension_numbers = #tpu.dot_dimension_numbers<[1], [0], [0], [1], [0, 0, 1, 1], [], []>} : vector<32x32xf32>, vector<32x64xf32>, vector<32x64xf32> -> vector<32x64xf32>
    %c1_191 = arith.constant 1 : index
    %c0_192 = arith.constant 0 : index
    %c0_193 = arith.constant 0 : index
    %438 = vector.load %arg22[%c1_191, %c0_192, %c0_193] : memref<2x1x64xf32, #tpu.memory_space<vmem>>, vector<1x1x64xf32>
    %439 = vector.shape_cast %438 : vector<1x1x64xf32> to vector<1x64xf32>
    %440 = vector.broadcast %439 : vector<1x64xf32> to vector<32x64xf32>
    %441 = arith.addf %437, %440 : vector<32x64xf32>
    %442 = vector.extract_strided_slice %441 {offsets = [0, 0], sizes = [32, 32], strides = [1, 1]} : vector<32x64xf32> to vector<32x32xf32>
    %443 = vector.shape_cast %442 : vector<32x32xf32> to vector<2x16x32xf32>
    %444 = vector.extract_strided_slice %441 {offsets = [0, 32], sizes = [32, 32], strides = [1, 1]} : vector<32x64xf32> to vector<32x32xf32>
    %445 = vector.shape_cast %444 : vector<32x32xf32> to vector<2x16x32xf32>
    "tpu.trace_start"() <{level = 10 : i32, message = "bqd,bkd->bqk"}> : () -> ()
    %cst_194 = arith.constant dense<0.000000e+00> : vector<2x8x16xf32>
    %446 = tpu.matmul %434, %443, %cst_194 {dimension_numbers = #tpu.dot_dimension_numbers<[2], [2], [1], [1], [0, 0, 0, 1, 1, 1], [0], [0]>} : vector<2x8x32xf32>, vector<2x16x32xf32>, vector<2x8x16xf32> -> vector<2x8x16xf32>
    "tpu.trace_stop"() : () -> ()
    %447 = arith.addf %446, %52 : vector<2x8x16xf32>
    %cst_195 = arith.constant dense<0xFF800000> : vector<2x8xf32>
    %448 = vector.multi_reduction <maximumf>, %447, %cst_195 [2] : vector<2x8x16xf32> to vector<2x8xf32>
    %449 = vector.shape_cast %448 : vector<2x8xf32> to vector<2x8x1xf32>
    %450 = vector.broadcast %449 : vector<2x8x1xf32> to vector<2x8x16xf32>
    %451 = arith.subf %447, %450 : vector<2x8x16xf32>
    %452 = math.exp %451 : vector<2x8x16xf32>
    %cst_196 = arith.constant dense<0.000000e+00> : vector<2x8xf32>
    %453 = vector.multi_reduction <add>, %452, %cst_196 [2] : vector<2x8x16xf32> to vector<2x8xf32>
    %454 = vector.shape_cast %453 : vector<2x8xf32> to vector<2x8x1xf32>
    %455 = tpu.reciprocal %454 : vector<2x8x1xf32> -> vector<2x8x1xf32>
    %456 = vector.broadcast %455 : vector<2x8x1xf32> to vector<2x8x16xf32>
    %457 = arith.mulf %452, %456 : vector<2x8x16xf32>
    "tpu.trace_start"() <{level = 10 : i32, message = "bqk,bkd->bqd"}> : () -> ()
    %cst_197 = arith.constant dense<0.000000e+00> : vector<2x8x32xf32>
    %458 = tpu.matmul %457, %445, %cst_197 {dimension_numbers = #tpu.dot_dimension_numbers<[2], [1], [1], [2], [0, 0, 0, 1, 1, 2], [0], [0]>} : vector<2x8x16xf32>, vector<2x16x32xf32>, vector<2x8x32xf32> -> vector<2x8x32xf32>
    "tpu.trace_stop"() : () -> ()
    %459 = vector.shape_cast %458 : vector<2x8x32xf32> to vector<16x32xf32>
    %460 = arith.addf %426, %459 : vector<16x32xf32>
    %c1_198 = arith.constant 1 : index
    %c0_199 = arith.constant 0 : index
    %c0_200 = arith.constant 0 : index
    %461 = vector.load %arg13[%c1_198, %c0_199, %c0_200] : memref<2x1x32xf32, #tpu.memory_space<vmem>>, vector<1x1x32xf32>
    %462 = vector.shape_cast %461 : vector<1x1x32xf32> to vector<1x32xf32>
    %c1_201 = arith.constant 1 : index
    %c0_202 = arith.constant 0 : index
    %c0_203 = arith.constant 0 : index
    %463 = vector.load %arg14[%c1_201, %c0_202, %c0_203] : memref<2x1x32xf32, #tpu.memory_space<vmem>>, vector<1x1x32xf32>
    %464 = vector.shape_cast %463 : vector<1x1x32xf32> to vector<1x32xf32>
    %cst_204 = arith.constant dense<0.000000e+00> : vector<16xf32>
    %465 = vector.multi_reduction <add>, %460, %cst_204 [1] : vector<16x32xf32> to vector<16xf32>
    %466 = vector.shape_cast %465 : vector<16xf32> to vector<16x1xf32>
    %cst_205 = arith.constant 3.200000e+01 : f32
    %467 = vector.broadcast %cst_205 : f32 to vector<16x1xf32>
    %468 = arith.divf %466, %467 : vector<16x1xf32>
    %469 = vector.broadcast %468 : vector<16x1xf32> to vector<16x32xf32>
    %470 = arith.subf %460, %469 : vector<16x32xf32>
    %471 = arith.mulf %470, %470 : vector<16x32xf32>
    %cst_206 = arith.constant dense<0.000000e+00> : vector<16xf32>
    %472 = vector.multi_reduction <add>, %471, %cst_206 [1] : vector<16x32xf32> to vector<16xf32>
    %473 = vector.shape_cast %472 : vector<16xf32> to vector<16x1xf32>
    %cst_207 = arith.constant 3.200000e+01 : f32
    %474 = vector.broadcast %cst_207 : f32 to vector<16x1xf32>
    %475 = arith.divf %473, %474 : vector<16x1xf32>
    %476 = vector.broadcast %468 : vector<16x1xf32> to vector<16x32xf32>
    %477 = arith.subf %460, %476 : vector<16x32xf32>
    %cst_208 = arith.constant 9.99999974E-6 : f32
    %478 = vector.broadcast %cst_208 : f32 to vector<16x1xf32>
    %479 = arith.addf %475, %478 : vector<16x1xf32>
    %480 = math.rsqrt %479 : vector<16x1xf32>
    %481 = vector.broadcast %480 : vector<16x1xf32> to vector<16x32xf32>
    %482 = arith.mulf %477, %481 : vector<16x32xf32>
    %483 = vector.broadcast %462 : vector<1x32xf32> to vector<16x32xf32>
    %484 = arith.mulf %482, %483 : vector<16x32xf32>
    %485 = vector.broadcast %464 : vector<1x32xf32> to vector<16x32xf32>
    %486 = arith.addf %484, %485 : vector<16x32xf32>
    %c1_209 = arith.constant 1 : index
    %c0_210 = arith.constant 0 : index
    %c0_211 = arith.constant 0 : index
    %487 = vector.load %arg23[%c1_209, %c0_210, %c0_211] : memref<2x32x64xf32, #tpu.memory_space<vmem>>, vector<1x32x64xf32>
    %488 = vector.shape_cast %487 : vector<1x32x64xf32> to vector<32x64xf32>
    %cst_212 = arith.constant dense<0.000000e+00> : vector<16x64xf32>
    %489 = tpu.matmul %486, %488, %cst_212 {dimension_numbers = #tpu.dot_dimension_numbers<[1], [0], [0], [1], [0, 0, 1, 1], [], []>} : vector<16x32xf32>, vector<32x64xf32>, vector<16x64xf32> -> vector<16x64xf32>
    %c1_213 = arith.constant 1 : index
    %c0_214 = arith.constant 0 : index
    %c0_215 = arith.constant 0 : index
    %490 = vector.load %arg24[%c1_213, %c0_214, %c0_215] : memref<2x1x64xf32, #tpu.memory_space<vmem>>, vector<1x1x64xf32>
    %491 = vector.shape_cast %490 : vector<1x1x64xf32> to vector<1x64xf32>
    %492 = vector.broadcast %491 : vector<1x64xf32> to vector<16x64xf32>
    %493 = arith.addf %489, %492 : vector<16x64xf32>
    %cst_216 = arith.constant 5.000000e-01 : f32
    %494 = vector.broadcast %cst_216 : f32 to vector<16x64xf32>
    %495 = arith.mulf %494, %493 : vector<16x64xf32>
    %cst_217 = arith.constant 0.707106769 : f32
    %496 = vector.broadcast %cst_217 : f32 to vector<16x64xf32>
    %497 = arith.mulf %493, %496 : vector<16x64xf32>
    %498 = math.erf %497 : vector<16x64xf32>
    %cst_218 = arith.constant 1.000000e+00 : f32
    %499 = vector.broadcast %cst_218 : f32 to vector<16x64xf32>
    %500 = arith.addf %499, %498 : vector<16x64xf32>
    %501 = arith.mulf %495, %500 : vector<16x64xf32>
    %c1_219 = arith.constant 1 : index
    %c0_220 = arith.constant 0 : index
    %c0_221 = arith.constant 0 : index
    %502 = vector.load %arg25[%c1_219, %c0_220, %c0_221] : memref<2x64x32xf32, #tpu.memory_space<vmem>>, vector<1x64x32xf32>
    %503 = vector.shape_cast %502 : vector<1x64x32xf32> to vector<64x32xf32>
    %cst_222 = arith.constant dense<0.000000e+00> : vector<16x32xf32>
    %504 = tpu.matmul %501, %503, %cst_222 {dimension_numbers = #tpu.dot_dimension_numbers<[1], [0], [0], [1], [0, 0, 1, 1], [], []>} : vector<16x64xf32>, vector<64x32xf32>, vector<16x32xf32> -> vector<16x32xf32>
    %505 = arith.addf %486, %504 : vector<16x32xf32>
    %c1_223 = arith.constant 1 : index
    %c0_224 = arith.constant 0 : index
    %c0_225 = arith.constant 0 : index
    %506 = vector.load %arg26[%c1_223, %c0_224, %c0_225] : memref<2x1x32xf32, #tpu.memory_space<vmem>>, vector<1x1x32xf32>
    %507 = vector.shape_cast %506 : vector<1x1x32xf32> to vector<1x32xf32>
    %508 = vector.broadcast %507 : vector<1x32xf32> to vector<16x32xf32>
    %509 = arith.addf %505, %508 : vector<16x32xf32>
    %c0_226 = arith.constant 0 : index
    %c0_227 = arith.constant 0 : index
    %510 = vector.load %arg27[%c0_226, %c0_227] : memref<16x32xf32, #tpu.memory_space<vmem>>, vector<16x32xf32>
    tpu.vector_store %arg27[%c0_226, %c0_227], %509 {strides = array<i32>} : memref<16x32xf32, #tpu.memory_space<vmem>>, vector<16x32xf32>,
    return
  }
}

</mosaic_0001>

<bundles_post_ra>
// kernel: tile.0
= control target key start
LH: loop header
LB: loop body
LE: loop exit
PB: predicated region body
PF: predicated region fallthrough
CT: control target
= control target key end

     0   :  { %s66_s8 = smov 125   ;;  %vm7_vm0 = vcmask 7168   ;;  %s67_s11 = smov 126   ;;  %s117_s0 = inlined_call_operand.vmem [shape: s32[2,8], index: 0, kind: input, shape index: {}]   ;;  %s118_s1 = inlined_call_operand.vmem [shape: s32[16,1], index: 1, kind: output, shape index: {}]  }
   0x1   :  { %v4_v0 = vld [vmem:[%s117_s0] sm:$0x3]  ;;  %s65_s0 = smov 127   ;;  %s68_s12 = smov 124  }
   0x2   :  { %5 = vst [vmem:[#allocation0] sm:$0x3] %v4_v0  ;;  %s69_s13 = smov 123   ;;  %s70_s14 = smov 122  }
   0x3   :  { %s71_s15 = smov 121  }
   0x9   :  { %v9_v1 = vld [vmem:[#allocation0] sm:$0x3]  }
   0xa   :  { %v21_v2 = vld [vmem:[#allocation0] sm:$0x3]   ;;  %10 = vrot.lane.b32.xlu0 %v9_v1, %s65_s0 }
   0xb   :  { %22 = vrot.lane.b32.xlu1 %v21_v2, %s66_s8  ;;  %v15_v3 = vld [vmem:[#allocation0] sm:$0x3]  }
   0xc   :  { %v27_v4 = vld [vmem:[#allocation0] sm:$0x3]  }
   0xd   :  { %v6_v5 = vld [vmem:[#allocation0] sm:$0x3]  }
   0xe   :  { %8 = vst.msk [vmem:[%s118_s1] ss:$8 sm:$0x3] %vm7_vm0, %v6_v5   ;;  %16 = vrot.lane.b32.xlu0 %v15_v3, %s67_s11  ;;  %v33_v6 = vld [vmem:[#allocation0] sm:$0x3]  }
   0xf   :  { %28 = vrot.lane.b32.xlu1 %v27_v4, %s68_s12  ;;  %v39_v7 = vld [vmem:[#allocation0] sm:$0x3]  }
  0x10   :  { %v45_v8 = vld [vmem:[#allocation0] sm:$0x3]  }
  0x12   :  { %34 = vrot.lane.b32.xlu0 %v33_v6, %s69_s13 }
  0x13   :  { %40 = vrot.lane.b32.xlu1 %v39_v7, %s70_s14 }
  0x16   :  { %46 = vrot.lane.b32.xlu0 %v45_v8, %s71_s15 }
  0x7c   :  { %v11_v9 = vpop.permute.xlu0 %10  }
  0x7d   :  { %v23_v10 = vpop.permute.xlu1 %22   ;;  %51 = vst.msk [vmem:[%s118_s1 + $0x1] ss:$8 sm:$0x3] %vm7_vm0, %v11_v9  }
  0x7e   :  { %53 = vst.msk [vmem:[%s118_s1 + $0x3] ss:$8 sm:$0x3] %vm7_vm0, %v23_v10  }
  0x80   :  { %v17_v11 = vpop.permute.xlu0 %16  }
  0x81   :  { %v29_v12 = vpop.permute.xlu1 %28   ;;  %52 = vst.msk [vmem:[%s118_s1 + $0x2] ss:$8 sm:$0x3] %vm7_vm0, %v17_v11  }
  0x82   :  { %54 = vst.msk [vmem:[%s118_s1 + $0x4] ss:$8 sm:$0x3] %vm7_vm0, %v29_v12  }
  0x84   :  { %v35_v13 = vpop.permute.xlu0 %34  }
  0x85   :  { %v41_v14 = vpop.permute.xlu1 %40   ;;  %55 = vst.msk [vmem:[%s118_s1 + $0x5] ss:$8 sm:$0x3] %vm7_vm0, %v35_v13  }
  0x86   :  { %56 = vst.msk [vmem:[%s118_s1 + $0x6] ss:$8 sm:$0x3] %vm7_vm0, %v41_v14  }
  0x88   :  { %v47_v15 = vpop.permute.xlu0 %46  }
  0x89   :  { %57 = vst.msk [vmem:[%s118_s1 + $0x7] ss:$8 sm:$0x3] %vm7_vm0, %v47_v15  }

// kernel: decoder_forward.1
= control target key start
LH: loop header
LB: loop body
LE: loop exit
PB: predicated region body
PF: predicated region fallthrough
CT: control target
= control target key end

     0   :  { %s7557_s0 = inlined_call_operand.vmem [shape: s32[16,1], index: 0, kind: input, shape index: {}]   ;;  %s7558_s1 = inlined_call_operand.vmem [shape: s32[16,1], index: 1, kind: input, shape index: {}]   ;;  %s7559_s2 = inlined_call_operand.vmem [shape: f32[32,32], index: 2, kind: input, shape index: {}]   ;;  %s7560_s3 = inlined_call_operand.vmem [shape: f32[2,8,8], index: 3, kind: input, shape index: {}]   ;;  %s7561_s4 = inlined_call_operand.vmem [shape: f32[2,8,16], index: 4, kind: input, shape index: {}]   ;;  %s7562_s5 = inlined_call_operand.vmem [shape: f32[64,32], index: 5, kind: input, shape index: {}]   ;;  %s7563_s6 = inlined_call_operand.vmem [shape: f32[16,32], index: 6, kind: input, shape index: {}]   ;;  %s7564_s7 = inlined_call_operand.vmem [shape: f32[1,32], index: 7, kind: input, shape index: {}]   ;;  %s7565_s8 = inlined_call_operand.vmem [shape: f32[1,32], index: 8, kind: input, shape index: {}]   ;;  %s7566_s9 = inlined_call_operand.vmem [shape: f32[2,1,32], index: 9, kind: input, shape index: {}]   ;;  %s7567_s10 = inlined_call_operand.vmem [shape: f32[2,1,32], index: 10, kind: input, shape index: {}]   ;;  %s7568_s11 = inlined_call_operand.vmem [shape: f32[2,1,32], index: 11, kind: input, shape index: {}]   ;;  %s7569_s12 = inlined_call_operand.vmem [shape: f32[2,1,32], index: 12, kind: input, shape index: {}]   ;;  %s7570_s13 = inlined_call_operand.vmem [shape: f32[2,1,32], index: 13, kind: input, shape index: {}]   ;;  %s7571_s14 = inlined_call_operand.vmem [shape: f32[2,1,32], index: 14, kind: input, shape index: {}]   ;;  %s7572_s15 = inlined_call_operand.vmem [shape: f32[2,32,96], index: 15, kind: input, shape index: {}]   ;;  %s7573_s16 = inlined_call_operand.hbm [shape: f32[2,1,96], index: 16, kind: input, shape index: {}]   ;;  %s7574_s17 = inlined_call_operand.vmem [shape: f32[2,32,32], index: 17, kind: input, shape index: {}]   ;;  %s7575_s18 = inlined_call_operand.hbm [shape: f32[2,1,32], index: 18, kind: input, shape index: {}]   ;;  %s7576_s19 = inlined_call_operand.vmem [shape: f32[2,32,32], index: 19, kind: input, shape index: {}]   ;;  %s7577_s20 = inlined_call_operand.vmem [shape: f32[2,1,32], index: 20, kind: input, shape index: {}]   ;;  %s7578_s21 = inlined_call_operand.vmem [shape: f32[2,32,64], index: 21, kind: input, shape index: {}]   ;;  %s7579_s22 = inlined_call_operand.hbm [shape: f32[2,1,64], index: 22, kind: input, shape index: {}]   ;;  %s7580_s23 = inlined_call_operand.vmem [shape: f32[2,32,64], index: 23, kind: input, shape index: {}]   ;;  %s7581_s24 = inlined_call_operand.hbm [shape: f32[2,1,64], index: 24, kind: input, shape index: {}]   ;;  %s7582_s25 = inlined_call_operand.vmem [shape: f32[2,64,32], index: 25, kind: input, shape index: {}]   ;;  %s7583_s26 = inlined_call_operand.hbm [shape: f32[2,1,32], index: 26, kind: input, shape index: {}]   ;;  %s7584_s27 = inlined_call_operand.hbm [shape: f32[16,32], index: 27, kind: output, shape index: {}]  }
   0x1   :  { %7609 = sst [smem:[#allocation16_spill]] %s7557_s0 }
   0x2   :  { %7610 = sst [smem:[#allocation17_spill]] %s7558_s1 }
   0x3   :  { %7611 = sst [smem:[#allocation18_spill]] %s7559_s2 }
   0x4   :  { %7612 = sst [smem:[#allocation19_spill]] %s7560_s3 }
   0x5   :  { %7613 = sst [smem:[#allocation20_spill]] %s7561_s4 }
   0x6   :  { %7614 = sst [smem:[#allocation21_spill]] %s7562_s5 }
   0x7   :  { %7615 = sst [smem:[#allocation22_spill]] %s7563_s6 }
   0x8   :  { %7616 = sst [smem:[#allocation23_spill]] %s7564_s7 }
   0x9   :  { %7617 = sst [smem:[#allocation24_spill]] %s7565_s8 }
   0xa   :  { %7618 = sst [smem:[#allocation25_spill]] %s7566_s9 }
   0xb   :  { %7619 = sst [smem:[#allocation26_spill]] %s7567_s10 }
   0xc   :  { %7620 = sst [smem:[#allocation27_spill]] %s7568_s11 }
   0xd   :  { %32 = vsyncpa [#allocation3], 0 }
   0xe   :  { %33 = vsyncpa [#allocation6], 0 }
   0xf   :  { %34 = vsyncpa [#allocation9], 0 }
  0x10   :  { %35 = vsyncpa [#allocation4], 0  ;;  %s6483_s7 = smov [#allocation5]   ;;  %s6484_s8 = smov [#allocation8]  }
  0x11   :  { %s87_s4 = sshll.u32 %s6483_s7, 4  ;;  %s119_s30 = sshll.u32 %s6484_s8, 4  ;;  %s88_s4 = int_to_ptr.vmem [resolvable:$true] %s87_s4  ;;  %s6649_s30 = int_to_ptr.vmem [resolvable:$true] %s119_s30 }
  0x12   :  { %s6343_s28 = scalar_lea.hbm %s7575_s18, 32 }
  0x13   :  { %p6344_p0 = scmp.ne.s32.totalorder %s7575_s18, %s6343_s28  ;;  %p6347_p1 = scmp.lt.u32.totalorder %s6343_s28, %s7575_s18 }
  0x15   :  { %p6349_p2 = pnand %p6347_p1, %p6344_p0 }
  0x17   :  { %6352 = shalt.err (!%p6349_p2)
}
  0x18   :  { %s6353_s6 = scalar_lea.vmem %s88_s4, 32  ;;  %p6358_p4 = scmp.lt.s32.totalorder %s88_s4, %s88_s4 }
  0x19   :  { %p6354_p3 = scmp.ne.s32.totalorder %s88_s4, %s6353_s6  ;;  %p6359_p5 = scmp.lt.s32.totalorder %s6353_s6, %s6353_s6 }
  0x1b   :  { %p6360_p6 = por %p6359_p5, %p6358_p4 }
  0x1d   :  { %p6361_p7 = pnand %p6360_p6, %p6354_p3 }
  0x1f   :  { %6364 = shalt.err (!%p6361_p7)
}
  0x20   :  { %s7595_s11 = smov 16   ;;  %s6486_s2 = smov 1  }
  0x21   :  { %93 = dma.hbm_to_vmem [thread:$0]  %s7575_s18, 32, %s88_s4, [#allocation6], %s7595_s11, %s7595_s11, %s6486_s2  }
  0x22   :  { %s6365_s5 = scalar_lea.hbm %s7581_s24, 32 }
  0x23   :  { %p6366_p8 = scmp.ne.s32.totalorder %s7581_s24, %s6365_s5  ;;  %p6369_p9 = scmp.lt.u32.totalorder %s6365_s5, %s7581_s24 }
  0x25   :  { %p6371_p10 = pnand %p6369_p9, %p6366_p8 }
  0x27   :  { %6374 = shalt.err (!%p6371_p10)
}
  0x28   :  { %s6375_s1 = scalar_lea.vmem %s6649_s30, 32  ;;  %p6380_p12 = scmp.lt.s32.totalorder %s6649_s30, %s6649_s30 }
  0x29   :  { %p6376_p11 = scmp.ne.s32.totalorder %s6649_s30, %s6375_s1  ;;  %p6381_p13 = scmp.lt.s32.totalorder %s6375_s1, %s6375_s1 }
  0x2b   :  { %p6382_p0 = por %p6381_p13, %p6380_p12 }
  0x2d   :  { %p6383_p1 = pnand %p6382_p0, %p6376_p11 }
  0x2f   :  { %6386 = shalt.err (!%p6383_p1)
}
  0x30   :  { %125 = dma.hbm_to_vmem [thread:$0]  %s7581_s24, 32, %s6649_s30, [#allocation9], %s7595_s11, %s7595_s11, %s6486_s2  }
  0x31   :  { %s6487_s6 = smov [#allocation2]   ;;  %s6488_s7 = smov [#allocation7]  }
  0x32   :  { %s73_s3 = sshll.u32 %s6487_s6, 4  ;;  %s105_s8 = sshll.u32 %s6488_s7, 4  ;;  %s74_s3 = int_to_ptr.vmem [resolvable:$true] %s73_s3  ;;  %s6686_s8 = int_to_ptr.vmem [resolvable:$true] %s105_s8 }
  0x33   :  { %s6387_s28 = scalar_lea.hbm %s7573_s16, 32 }
  0x34   :  { %p6388_p2 = scmp.ne.s32.totalorder %s7573_s16, %s6387_s28  ;;  %p6391_p3 = scmp.lt.u32.totalorder %s6387_s28, %s7573_s16 }
  0x36   :  { %p6393_p4 = pnand %p6391_p3, %p6388_p2 }
  0x38   :  { %6396 = shalt.err (!%p6393_p4)
}
  0x39   :  { %s6397_s24 = scalar_lea.vmem %s74_s3, 32  ;;  %p6402_p6 = scmp.lt.s32.totalorder %s74_s3, %s74_s3 }
  0x3a   :  { %p6398_p5 = scmp.ne.s32.totalorder %s74_s3, %s6397_s24  ;;  %p6403_p7 = scmp.lt.s32.totalorder %s6397_s24, %s6397_s24 }
  0x3c   :  { %p6404_p8 = por %p6403_p7, %p6402_p6 }
  0x3e   :  { %p6405_p9 = pnand %p6404_p8, %p6398_p5 }
  0x40   :  { %6408 = shalt.err (!%p6405_p9)
}
  0x41   :  { %79 = dma.hbm_to_vmem [thread:$0]  %s7573_s16, 32, %s74_s3, [#allocation3], %s7595_s11, %s7595_s11, %s6486_s2  }
  0x42   :  { %s6409_s7 = scalar_lea.hbm %s7579_s22, 32 }
  0x43   :  { %p6410_p10 = scmp.ne.s32.totalorder %s7579_s22, %s6409_s7  ;;  %p6413_p11 = scmp.lt.u32.totalorder %s6409_s7, %s7579_s22 }
  0x45   :  { %p6415_p12 = pnand %p6413_p11, %p6410_p10 }
  0x47   :  { %6418 = shalt.err (!%p6415_p12)
}
  0x48   :  { %s6419_s10 = scalar_lea.vmem %s6686_s8, 32  ;;  %p6424_p0 = scmp.lt.s32.totalorder %s6686_s8, %s6686_s8 }
  0x49   :  { %p6420_p13 = scmp.ne.s32.totalorder %s6686_s8, %s6419_s10  ;;  %p6425_p1 = scmp.lt.s32.totalorder %s6419_s10, %s6419_s10 }
  0x4b   :  { %p6426_p2 = por %p6425_p1, %p6424_p0 }
  0x4d   :  { %p6427_p3 = pnand %p6426_p2, %p6420_p13 }
  0x4f   :  { %6430 = shalt.err (!%p6427_p3)
}
  0x50   :  { %111 = dma.hbm_to_vmem [thread:$0]  %s7579_s22, 32, %s6686_s8, [#allocation6], %s7595_s11, %s7595_s11, %s6486_s2  }
  0x51   :  { %s6489_s29 = smov [#allocation10]   ;;  %s6431_s18 = scalar_lea.hbm %s7583_s26, 32 }
  0x52   :  { %s133_s1 = sshll.u32 %s6489_s29, 4  ;;  %p6432_p4 = scmp.ne.s32.totalorder %s7583_s26, %s6431_s18  ;;  %s134_s1 = int_to_ptr.vmem [resolvable:$true] %s133_s1 }
  0x53   :  { %p6435_p5 = scmp.lt.u32.totalorder %s6431_s18, %s7583_s26 }
  0x55   :  { %p6437_p6 = pnand %p6435_p5, %p6432_p4 }
  0x57   :  { %6440 = shalt.err (!%p6437_p6)
}
  0x58   :  { %s6441_s5 = scalar_lea.vmem %s134_s1, 32  ;;  %p6446_p8 = scmp.lt.s32.totalorder %s134_s1, %s134_s1 }
  0x59   :  { %p6442_p7 = scmp.ne.s32.totalorder %s134_s1, %s6441_s5  ;;  %p6447_p9 = scmp.lt.s32.totalorder %s6441_s5, %s6441_s5 }
  0x5b   :  { %p6448_p10 = por %p6447_p9, %p6446_p8 }
  0x5d   :  { %p6449_p11 = pnand %p6448_p10, %p6442_p7 }
  0x5f   :  { %6452 = shalt.err (!%p6449_p11)
}
  0x60   :  { %139 = dma.hbm_to_vmem [thread:$0]  %s7583_s26, 32, %s134_s1, [#allocation9], %s7595_s11, %s7595_s11, %s6486_s2  }
  0x61   :  { %6475 = dma.done.wait [#allocation3], 32  }
  0x62   :  { %6476 = vsyncadd [#allocation3], 4294967264 }
  0x63   :  { %6477 = dma.done.wait [#allocation6], 64  }
  0x64   :  { %6478 = vsyncadd [#allocation6], 4294967232 }
  0x65   :  { %6479 = dma.done.wait [#allocation9], 64  }
  0x66   :  { %6480 = vsyncadd [#allocation9], 4294967232  ;;  %v6490_v0 = vmov 0   ;;  %s7621_s10 = sld [smem:[#allocation16_spill]]  ;;  %s7622_s29 = sld [smem:[#allocation17_spill]]  ;;  %v6491_v20 = vmov 0.0   ;;  %v159_v21 = vlaneseq }
  0x67   :  { %6202 = vset.pattern.permute.xlu1 %v6490_v0  ;;  %6201 = vset.pattern.permute.xlu0 %v6490_v0  ;;  %s7623_s30 = sld [smem:[#allocation21_spill]]  ;;  %s7624_s2 = sld [smem:[#allocation22_spill]]  ;;  %vm277_vm0 = vcmask 523264   ;;  %vm195_vm3 = vcmask 130048   ;;  %vm361_vm6 = vcmask 261120   ;;  %vm6492_vm7 = vmmov 0  }
  0x68   :  { %v160_v22 = vand.u32 127, %v159_v21  ;;  %s7625_s9 = sld [smem:[#allocation23_spill]]  ;;  %s7626_s8 = sld [smem:[#allocation24_spill]]  ;;  %vm560_vm8 = vcmask 64512   ;;  %vm1904_vm11 = vcmask 195584   ;;  %vm7092_vm12 = vmpackc.low %vm361_vm6, %vm361_vm6 }
  0x69   :  { %s7627_s18 = sld [smem:[#allocation25_spill]]  ;;  %s6493_s7 = smov 96  }
  0x6a   :  { %s7629_s22 = sld [smem:[#allocation19_spill]]  ;;  %s6494_s0 = smov 64  }
  0x6b   :  { %s6496_s16 = smov 120   ;;  %s6497_s3 = smov 56  }
  0x6c   :  { %v156_v1 = vld [vmem:[%s7621_s10 + $0x8] sm:$0xff]  ;;  %v155_v2 = vld [vmem:[%s7621_s10] sm:$0xff]  ;;  %s6495_s10 = smov 88   ;;  %s6498_s26 = smov 80  }
  0x6d   :  { %165 = vperm.xlu1 %6202, %v156_v1   ;;  %162 = vperm.xlu0 %6201, %v155_v2   ;;  %v158_v3 = vld [vmem:[%s7622_s29 + $0x8] sm:$0xff]  ;;  %v173_v4 = vld [vmem:[%s7623_s30] sm:$0xff]  ;;  %v175_v8 = vld [vmem:[%s7623_s30 + $0x10] sm:$0xff]  ;;  %s7605_s1 = smov 72   ;;  %s7603_s24 = smov 104  }
  0x6e   :  { %v174_v5 = vld [vmem:[%s7623_s30 + $0x8] sm:$0xff]  ;;  %v157_v6 = vld [vmem:[%s7622_s29] sm:$0xff]  ;;  %v176_v9 = vld [vmem:[%s7623_s30 + $0x18] sm:$0xff]  ;;  %s7607_s29 = smov 48   ;;  %s7599_s4 = smov 40  }
  0x6f   :  { %v6017_v7 = vpack.c.bf16 %v174_v5, %v173_v4  ;;  %v6021_v10 = vpack.c.bf16 %v176_v9, %v175_v8  ;;  %v177_v11 = vld [vmem:[%s7623_s30 + $0x20] sm:$0xff]  ;;  %v178_v12 = vld [vmem:[%s7623_s30 + $0x28] sm:$0xff]  ;;  %v179_v17 = vld [vmem:[%s7623_s30 + $0x30] sm:$0xff]  ;;  %s7597_s6 = smov 8   ;;  %s7641_s28 = smov 24  }
  0x70   :  { %v193_v13 = vld [vmem:[%s7624_s2] sm:$0xff]  ;;  %v194_v14 = vld [vmem:[%s7624_s2 + $0x8] sm:$0xff]  ;;  %v6025_v16 = vpack.c.bf16 %v178_v12, %v177_v11  ;;  %v180_v18 = vld [vmem:[%s7623_s30 + $0x38] sm:$0xff]  ;;  %s7628_s30 = sld [smem:[#allocation26_spill]]  ;;  %s6499_s2 = smov 112  }
  0x71   :  { %6018 = vmatprep.subr.bf16.mxu0 %v6017_v7  ;;  %185 = vperm.xlu1 %6202, %v158_v3   ;;  %v6013_v15 = vpack.c.bf16 %v194_v14, %v193_v13  ;;  %v6029_v19 = vpack.c.bf16 %v180_v18, %v179_v17  ;;  %v5278_v56 = vld [vmem:[%s7625_s9] ss:$0 sm:$0xff]  ;;  %v466_v14 = vld [vmem:[%s7572_s15 + $0x8] sm:$0xff]  ;;  %v468_v17 = vld [vmem:[%s7572_s15 + $0x18] sm:$0xff]  ;;  %s7601_s9 = smov 24  }
  0x72   :  { %182 = vperm.xlu0 %6201, %v157_v6   ;;  %6020 = vmatpush3.bf16.msra.mxu0 %v6017_v7  ;;  %v5279_v58 = vld [vmem:[%s7626_s8] ss:$0 sm:$0xff]  ;;  %s7634_s8 = sld [smem:[#allocation20_spill]] }
  0x73   :  { %6022 = vmatprep.subr.bf16.mxu0 %v6021_v10  ;;  %6014 = vmatprep.subr.bf16.mxu1 %v6013_v15  ;;  %v465_v13 = vld [vmem:[%s7572_s15] sm:$0xff] }
  0x74   :  { %6016 = vmatpush3.bf16.msra.mxu1 %v6013_v15  ;;  %v467_v15 = vld [vmem:[%s7572_s15 + $0x10] sm:$0xff] }
  0x75   :  { %v6037_v18 = vpack.c.bf16 %v468_v17, %v467_v15 }
  0x76   :  { %6024 = vmatpush3.bf16.msra.mxu0 %v6021_v10 }
  0x77   :  { %6026 = vmatprep.subr.bf16.mxu0 %v6025_v16 }
  0x7a   :  { %6028 = vmatpush3.bf16.msra.mxu0 %v6025_v16  ;;  %v6033_v16 = vpack.c.bf16 %v466_v14, %v465_v13 }
  0x7b   :  { %6030 = vmatprep.subr.bf16.mxu0 %v6029_v19 }
  0x7c   :  { %6034 = vmatprep.subr.bf16.mxu1 %v6033_v16 }
  0x7e   :  { %6032 = vmatpush3.bf16.msra.mxu0 %v6029_v19 }
  0x7f   :  { %5669 = vmatprep.subr.mxu0 %v6491_v20 }
  0xec   :  { %v166_v23 = vpop.permute.xlu1 %165  ;;  %v163_v24 = vpop.permute.xlu0 %162 }
  0xed   :  { %vm168_vm1 = vcmp.eq.s32.totalorder %v160_v22, %v166_v23  ;;  %vm167_vm2 = vcmp.eq.s32.totalorder %v160_v22, %v163_v24 }
  0xee   :  { %v5271_v25 = vsel %vm168_vm1, 1.0, %v6491_v20  ;;  %v5270_v26 = vsel %vm167_vm2, 1.0, %v6491_v20 }
  0xef   :  { %5640 = vmatprep.mubr.msk.f32.mxu0 %vm277_vm0, %v5270_v26 }
  0xf0   :  { %v186_v27 = vpop.permute.xlu1 %185  ;;  %5641 = vmatmul.mubr.msk.f32.vlgmr.msra.gmra.mrb[0].mxu0 %vm277_vm0, %v5271_v25 }
  0xf1   :  { %v183_v28 = vpop.permute.xlu0 %182  ;;  %vm188_vm4 = vcmp.eq.s32.totalorder %v160_v22, %v186_v27  ;;  %v5280_v27 = vld [vmem:[%s7627_s18] ss:$0 sm:$0xff]  ;;  %5671 = vmatprep.mubr.msk.f32.mxu0 %vm6492_vm7, %v6491_v20 }
  0xf2   :  { %vm187_vm5 = vcmp.eq.s32.totalorder %v160_v22, %v183_v28  ;;  %v5273_v29 = vsel %vm188_vm4, 1.0, %v6491_v20 }
  0xf3   :  { %v5272_v30 = vsel %vm187_vm5, 1.0, %v6491_v20 }
  0xf4   :  { %5621 = vmatprep.mubr.msk.f32.mxu1 %vm195_vm3, %v5272_v30 }
  0xf5   :  { %5622 = vmatmul.mubr.msk.f32.vlgmr.msra.gmra.mrb[0].mxu1 %vm195_vm3, %v5273_v29  ;;  %v5281_v29 = vld [vmem:[%s7628_s30] ss:$0 sm:$0xff] }
  0xf6   :  { %6036 = vmatpush3.bf16.msra.mxu1 %v6033_v16 }
  0xf7   :  { %6038 = vmatprep.subr.bf16.mxu1 %v6037_v18 }
  0xfa   :  { %6040 = vmatpush3.bf16.msra.mxu1 %v6037_v18 }
  0xfb   :  { %5654 = vmatprep.subr.mxu1 %v6491_v20 }
 0x1c3   :  { %v5642_v31 = vpop.f32.mrb[0].mxu0 }
 0x1c4   :  { %v350_v32 = vpop.f32.mrb[1].mxu0 }
 0x1c8   :  { %v5623_v33 = vpop.f32.mrb[0].mxu1 }
 0x1c9   :  { %v356_v34 = vadd.f32 %v5642_v31, %v5623_v33  ;;  %v268_v35 = vpop.f32.mrb[1].mxu1 }
 0x1ca   :  { %v351_v36 = vadd.f32 %v350_v32, %v268_v35 }
 0x1cb   :  { %v365_v37 = vsel %vm361_vm6, %v356_v34, 0.0 }
 0x1cc   :  { %366 = vadd.xlane.f32.xlu1 %v365_v37  ;;  %v362_v38 = vsel %vm361_vm6, %v351_v36, 0.0 }
 0x1cd   :  { %363 = vadd.xlane.f32.xlu0 %v362_v38 }
 0x259   :  { %v367_v39 = vpop.xlane.xlu1 %366 }
 0x25a   :  { %v370_v40 = vmul.f32 0.03125, %v367_v39  ;;  %v364_v41 = vpop.xlane.xlu0 %363 }
 0x25b   :  { %v369_v42 = vmul.f32 0.03125, %v364_v41 }
 0x25c   :  { %v372_v43 = vsub.f32 %v356_v34, %v370_v40 }
 0x25d   :  { %v371_v44 = vsub.f32 %v351_v36, %v369_v42  ;;  %v5282_v36 = vld [vmem:[#allocation2] ss:$0 sm:$0xff] }
 0x25e   :  { %v374_v47 = vmul.f32 %v372_v43, %v372_v43 }
 0x25f   :  { %v373_v45 = vmul.f32 %v371_v44, %v371_v44 }
 0x260   :  { %v378_v48 = vsel %vm361_vm6, %v374_v47, 0.0 }
 0x261   :  { %v375_v46 = vsel %vm361_vm6, %v373_v45, 0.0 }
 0x262   :  { %376 = vadd.xlane.f32.xlu0 %v375_v46 }
 0x266   :  { %379 = vadd.xlane.f32.xlu0 %v378_v48 }
 0x2ef   :  { %v377_v49 = vpop.xlane.xlu0 %376 }
 0x2f0   :  { %v381_v50 = vmul.f32 0.03125, %v377_v49 }
 0x2f2   :  { %v383_v51 = vadd.f32 1e-12, %v381_v50 }
 0x2f3   :  { %v380_v52 = vpop.xlane.xlu0 %379 }
 0x2f4   :  { %6223 = vrsqrt.f32 %v383_v51  ;;  %v382_v53 = vmul.f32 0.03125, %v380_v52 }
 0x2f6   :  { %v384_v54 = vadd.f32 1e-12, %v382_v53 }
 0x2f8   :  { %6225 = vrsqrt.f32 %v384_v54 }
 0x2fe   :  { %v6224_v55 = vpop.eup %6223 }
 0x2ff   :  { %v387_v57 = vmul.f32 %v6224_v55, %v371_v44  ;;  %v406_v44 = vld [vmem:[%s7629_s22 + $0x8] sm:$0xff] }
 0x300   :  { %vm408_vm10 = vcmp.eq.f32.partialorder %v406_v44, 0.0 }
 0x301   :  { %v395_v59 = vmul.f32 %v5278_v56, %v387_v57  ;;  %v6865_v49 = vsel %vm408_vm10, -1e+30, %v6491_v20 }
 0x302   :  { %v6226_v60 = vpop.eup %6225 }
 0x303   :  { %v403_v61 = vadd.f32 %v5279_v58, %v395_v59  ;;  %v388_v62 = vmul.f32 %v6226_v60, %v372_v43  ;;  %v405_v43 = vld [vmem:[%s7629_s22] sm:$0xff] }
 0x304   :  { %vm407_vm9 = vcmp.eq.f32.partialorder %v405_v43, 0.0 }
 0x305   :  { %v423_v63 = vsel %vm361_vm6, %v403_v61, 0.0  ;;  %v396_v0 = vmul.f32 %v5278_v56, %v388_v62  ;;  %v6861_v45 = vsel %vm407_vm9, -1e+30, %v6491_v20 }
 0x306   :  { %424 = vadd.xlane.f32.xlu1 %v423_v63 }
 0x307   :  { %v404_v1 = vadd.f32 %v5279_v58, %v396_v0 }
 0x309   :  { %v426_v2 = vsel %vm361_vm6, %v404_v1, 0.0 }
 0x30a   :  { %427 = vadd.xlane.f32.xlu0 %v426_v2 }
 0x393   :  { %v425_v3 = vpop.xlane.xlu1 %424 }
 0x394   :  { %v429_v4 = vmul.f32 0.03125, %v425_v3 }
 0x396   :  { %v431_v5 = vsub.f32 %v403_v61, %v429_v4 }
 0x397   :  { %v428_v6 = vpop.xlane.xlu0 %427 }
 0x398   :  { %v430_v7 = vmul.f32 0.03125, %v428_v6  ;;  %v433_v8 = vmul.f32 %v431_v5, %v431_v5 }
 0x39a   :  { %v432_v9 = vsub.f32 %v404_v1, %v430_v7  ;;  %v435_v10 = vsel %vm361_vm6, %v433_v8, 0.0 }
 0x39b   :  { %436 = vadd.xlane.f32.xlu1 %v435_v10 }
 0x39c   :  { %v434_v11 = vmul.f32 %v432_v9, %v432_v9 }
 0x39e   :  { %v438_v12 = vsel %vm361_vm6, %v434_v11, 0.0 }
 0x39f   :  { %439 = vadd.xlane.f32.xlu0 %v438_v12 }
 0x428   :  { %v437_v19 = vpop.xlane.xlu1 %436 }
 0x429   :  { %v441_v21 = vmul.f32 0.03125, %v437_v19 }
 0x42b   :  { %v443_v22 = vadd.f32 1e-05, %v441_v21 }
 0x42c   :  { %v440_v23 = vpop.xlane.xlu0 %439 }
 0x42d   :  { %6227 = vrsqrt.f32 %v443_v22  ;;  %v442_v24 = vmul.f32 0.03125, %v440_v23 }
 0x42f   :  { %v444_v25 = vadd.f32 1e-05, %v442_v24 }
 0x431   :  { %6229 = vrsqrt.f32 %v444_v25 }
 0x437   :  { %v6228_v26 = vpop.eup %6227 }
 0x438   :  { %v447_v28 = vmul.f32 %v6228_v26, %v431_v5 }
 0x43a   :  { %v455_v30 = vmul.f32 %v5280_v27, %v447_v28 }
 0x43b   :  { %v6230_v31 = vpop.eup %6229 }
 0x43c   :  { %v448_v32 = vmul.f32 %v6230_v31, %v432_v9  ;;  %v6822_v33 = vadd.f32 %v5281_v29, %v455_v30 }
 0x43e   :  { %v456_v34 = vmul.f32 %v5280_v27, %v448_v32  ;;  %5651 = vmatprep.mubr.msk.f32.mxu1 %vm361_vm6, %v6822_v33 }
 0x440   :  { %v6826_v35 = vadd.f32 %v5281_v29, %v456_v34 }
 0x442   :  { %5652 = vmatmul.mubr.msk.f32.vlgmr.msra.gmra.mrb[2].mxu1 %vm361_vm6, %v6826_v35 }
 0x443   :  { %5656 = vmatprep.mubr.msk.f32.mxu1 %vm6492_vm7, %v6491_v20 }
 0x515   :  { %v5653_v37 = vpop.f32.mrb[2].mxu1 }
 0x516   :  { %v6834_v38 = vadd.f32 %v5653_v37, %v5282_v36  ;;  %v548_v39 = vpop.f32.mrb[3].mxu1 }
 0x517   :  { %v6836_v40 = vadd.f32 %v5282_v36, %v548_v39 }
 0x518   :  { %636 = vrot.lane.b32.xlu0 %v6834_v38, %s6493_s7 }
 0x519   :  { %558 = vrot.lane.b32.xlu1 %v6836_v40, %s6493_s7 }
 0x58a   :  { %v637_v42 = vpop.permute.xlu0 %636 }
 0x58b   :  { %v559_v41 = vpop.permute.xlu1 %558 }
 0x58c   :  { %5655 = vmatpush3.xpose.msk.msra.mxu1 %vm560_vm8, %v559_v41 }
 0x58d   :  { %5659 = vmatprep.subr.mxu1 %v6491_v20 }
 0x58f   :  { %5657 = vmatmul.mubr.msk.f32.vlgmr.msra.gmra.mrb[4].mxu1 %vm560_vm8, %v6836_v40 }
 0x590   :  { %5660 = vmatpush3.xpose.msk.msra.mxu1 %vm560_vm8, %v637_v42  ;;  %5661 = vmatprep.mubr.msk.f32.mxu1 %vm6492_vm7, %v6491_v20 }
 0x591   :  { %5664 = vmatprep.subr.mxu1 %v6491_v20 }
 0x593   :  { %5662 = vmatmul.mubr.msk.f32.vlgmr.msra.gmra.mrb[6].mxu1 %vm560_vm8, %v6834_v38 }
 0x594   :  { %5666 = vmatprep.mubr.msk.f32.mxu1 %vm6492_vm7, %v6491_v20 }
 0x662   :  { %v631_v46 = vpop.f32.mrb[4].mxu1 }
 0x663   :  { %v632_v47 = vadd.f32 %v631_v46, %v6861_v45  ;;  %v5658_v48 = vpop.f32.mrb[5].mxu1 }
 0x665   :  { %v712_v50 = vsel %vm560_vm8, %v632_v47, -inf }
 0x666   :  { %713 = vmax.xlane.f32.xlu1 %v712_v50  ;;  %v708_v51 = vpop.f32.mrb[6].mxu1 }
 0x667   :  { %v709_v52 = vadd.f32 %v708_v51, %v6865_v49  ;;  %v5663_v53 = vpop.f32.mrb[7].mxu1 }
 0x669   :  { %v715_v54 = vsel %vm560_vm8, %v709_v52, -inf }
 0x66a   :  { %716 = vmax.xlane.f32.xlu0 %v715_v54 }
 0x677   :  { %734 = vrot.lane.b32.xlu1 %v6836_v40, %s6494_s0 }
 0x67b   :  { %888 = vrot.lane.b32.xlu1 %v6836_v40, %s6495_s10 }
 0x67f   :  { %966 = vrot.lane.b32.xlu1 %v6834_v38, %s6495_s10 }
 0x680   :  { %810 = vrot.lane.b32.xlu0 %v6834_v38, %s6494_s0 }
 0x6f3   :  { %v714_v55 = vpop.xlane.xlu1 %713 }
 0x6f4   :  { %v718_v56 = vsub.f32 %v632_v47, %v714_v55 }
 0x6f6   :  { %v720_v57 = vmul.f32 1.442695, %v718_v56 }
 0x6f7   :  { %v735_v58 = vpop.permute.xlu1 %734  ;;  %v717_v59 = vpop.xlane.xlu0 %716 }
 0x6f8   :  { %6231 = vpow2.f32 %v720_v57  ;;  %v719_v60 = vsub.f32 %v709_v52, %v717_v59  ;;  %5665 = vmatpush3.msra.mxu1 %v735_v58 }
 0x6f9   :  { %5674 = vmatprep.subr.mxu1 %v6491_v20 }
 0x6fa   :  { %v722_v61 = vmul.f32 1.442695, %v719_v60 }
 0x6fb   :  { %v811_v62 = vpop.permute.xlu0 %810  ;;  %v889_v3 = vpop.permute.xlu1 %888 }
 0x6fc   :  { %6233 = vpow2.f32 %v722_v61  ;;  %5670 = vmatpush3.msra.mxu0 %v811_v62 }
 0x6fd   :  { %5679 = vmatprep.subr.mxu0 %v6491_v20 }
 0x6ff   :  { %v967_v4 = vpop.permute.xlu1 %966 }
 0x702   :  { %v6232_v63 = vpop.eup %6231 }
 0x703   :  { %v724_v0 = vsel %vm560_vm8, %v6232_v63, 0.0 }
 0x704   :  { %725 = vadd.xlane.f32.xlu1 %v724_v0 }
 0x706   :  { %v6234_v1 = vpop.eup %6233 }
 0x707   :  { %v727_v2 = vsel %vm560_vm8, %v6234_v1, 0.0 }
 0x708   :  { %728 = vadd.xlane.f32.xlu0 %v727_v2 }
 0x715   :  { %964 = vrot.lane.b32.xlu1 %v6834_v38, %s6496_s16 }
 0x71e   :  { %886 = vrot.lane.b32.xlu0 %v6836_v40, %s6496_s16 }
 0x791   :  { %v726_v5 = vpop.xlane.xlu1 %725 }
 0x792   :  { %6235 = vrcp.f32 %v726_v5 }
 0x795   :  { %v729_v6 = vpop.xlane.xlu0 %728  ;;  %v965_v12 = vpop.permute.xlu1 %964 }
 0x796   :  { %6237 = vrcp.f32 %v729_v6 }
 0x799   :  { %v887_v11 = vpop.permute.xlu0 %886 }
 0x79c   :  { %v6236_v7 = vpop.eup %6235 }
 0x79d   :  { %v732_v8 = vmul.f32 %v6236_v7, %v6232_v63 }
 0x79f   :  { %5667 = vmatmul.mubr.msk.f32.vlgmr.msra.gmra.mrb[8].mxu1 %vm560_vm8, %v732_v8 }
 0x7a0   :  { %v6238_v9 = vpop.eup %6237  ;;  %5675 = vmatpush3.xpose.msk.msra.mxu1 %vm560_vm8, %v889_v3  ;;  %5676 = vmatprep.mubr.msk.f32.mxu1 %vm6492_vm7, %v6491_v20 }
 0x7a1   :  { %v733_v10 = vmul.f32 %v6238_v9, %v6234_v1  ;;  %5684 = vmatprep.subr.mxu1 %v6491_v20 }
 0x7a3   :  { %5672 = vmatmul.mubr.msk.f32.vlgmr.msra.gmra.mrb[2].mxu0 %vm560_vm8, %v733_v10  ;;  %5677 = vmatmul.mubr.msk.f32.vlgmr.msra.gmra.mrb[10].mxu1 %vm560_vm8, %v887_v11 }
 0x7a4   :  { %5680 = vmatpush3.xpose.msk.msra.mxu0 %vm560_vm8, %v967_v4  ;;  %5681 = vmatprep.mubr.msk.f32.mxu0 %vm6492_vm7, %v6491_v20 }
 0x7a5   :  { %5689 = vmatprep.subr.mxu0 %v6491_v20  ;;  %5686 = vmatprep.mubr.msk.f32.mxu1 %vm6492_vm7, %v6491_v20 }
 0x7a7   :  { %5682 = vmatmul.mubr.msk.f32.vlgmr.msra.gmra.mrb[4].mxu0 %vm560_vm8, %v965_v12 }
 0x7a8   :  { %5691 = vmatprep.mubr.msk.f32.mxu0 %vm6492_vm7, %v6491_v20 }
 0x872   :  { %v6902_v13 = vpop.f32.mrb[8].mxu1 }
 0x873   :  { %v5668_v14 = vpop.f32.mrb[9].mxu1 }
 0x876   :  { %v6904_v15 = vpop.f32.mrb[2].mxu0  ;;  %v960_v16 = vpop.f32.mrb[10].mxu1 }
 0x877   :  { %v961_v17 = vadd.f32 %v960_v16, %v6861_v45  ;;  %v5673_v18 = vpop.f32.mrb[3].mxu0  ;;  %v5678_v19 = vpop.f32.mrb[11].mxu1 }
 0x879   :  { %v1042_v21 = vsel %vm560_vm8, %v961_v17, -inf }
 0x87a   :  { %v1038_v22 = vpop.f32.mrb[4].mxu0  ;;  %1043 = vmax.xlane.f32.xlu0 %v1042_v21 }
 0x87b   :  { %v1039_v23 = vadd.f32 %v1038_v22, %v6865_v49  ;;  %v5683_v24 = vpop.f32.mrb[5].mxu0 }
 0x87d   :  { %v1045_v25 = vsel %vm560_vm8, %v1039_v23, -inf }
 0x87e   :  { %1046 = vmax.xlane.f32.xlu1 %v1045_v25 }
 0x88f   :  { %1064 = vrot.lane.b32.xlu1 %v6836_v40, %s6497_s3 }
 0x890   :  { %1140 = vrot.lane.b32.xlu0 %v6834_v38, %s6497_s3 }
 0x893   :  { %1218 = vrot.lane.b32.xlu1 %v6836_v40, %s6498_s26 }
 0x897   :  { %1296 = vrot.lane.b32.xlu1 %v6834_v38, %s6498_s26 }
 0x89b   :  { %1294 = vrot.lane.b32.xlu1 %v6834_v38, %s6499_s2 }
 0x907   :  { %v1044_v26 = vpop.xlane.xlu0 %1043 }
 0x908   :  { %v1048_v27 = vsub.f32 %v961_v17, %v1044_v26 }
 0x90a   :  { %v1050_v28 = vmul.f32 1.442695, %v1048_v27 }
 0x90b   :  { %v1047_v29 = vpop.xlane.xlu1 %1046  ;;  %v1141_v30 = vpop.permute.xlu0 %1140 }
 0x90c   :  { %6239 = vpow2.f32 %v1050_v28  ;;  %v1049_v31 = vsub.f32 %v1039_v23, %v1047_v29  ;;  %5690 = vmatpush3.msra.mxu0 %v1141_v30 }
 0x90d   :  { %5699 = vmatprep.subr.mxu0 %v6491_v20 }
 0x90e   :  { %v1052_v32 = vmul.f32 1.442695, %v1049_v31 }
 0x90f   :  { %v1065_v34 = vpop.permute.xlu1 %1064 }
 0x910   :  { %6241 = vpow2.f32 %v1052_v32  ;;  %5685 = vmatpush3.msra.mxu1 %v1065_v34 }
 0x911   :  { %5694 = vmatprep.subr.mxu1 %v6491_v20 }
 0x913   :  { %v1219_v44 = vpop.permute.xlu1 %1218 }
 0x916   :  { %v6240_v36 = vpop.eup %6239 }
 0x917   :  { %v1054_v37 = vsel %vm560_vm8, %v6240_v36, 0.0  ;;  %v1297_v50 = vpop.permute.xlu1 %1296 }
 0x918   :  { %1055 = vadd.xlane.f32.xlu0 %v1054_v37 }
 0x91a   :  { %v6242_v39 = vpop.eup %6241 }
 0x91b   :  { %v1057_v41 = vsel %vm560_vm8, %v6242_v39, 0.0  ;;  %v1295_v53 = vpop.permute.xlu1 %1294 }
 0x91c   :  { %1058 = vadd.xlane.f32.xlu0 %v1057_v41 }
 0x932   :  { %1216 = vrot.lane.b32.xlu0 %v6836_v40, %s6499_s2 }
 0x9a5   :  { %v1056_v42 = vpop.xlane.xlu0 %1055 }
 0x9a6   :  { %6243 = vrcp.f32 %v1056_v42 }
 0x9a9   :  { %v1059_v43 = vpop.xlane.xlu0 %1058 }
 0x9aa   :  { %6245 = vrcp.f32 %v1059_v43 }
 0x9ad   :  { %v1217_v52 = vpop.permute.xlu0 %1216 }
 0x9b0   :  { %v6244_v46 = vpop.eup %6243 }
 0x9b1   :  { %v1062_v47 = vmul.f32 %v6244_v46, %v6240_v36 }
 0x9b3   :  { %5687 = vmatmul.mubr.msk.f32.vlgmr.msra.gmra.mrb[12].mxu1 %vm560_vm8, %v1062_v47 }
 0x9b4   :  { %v6246_v48 = vpop.eup %6245  ;;  %5695 = vmatpush3.xpose.msk.msra.mxu1 %vm560_vm8, %v1219_v44  ;;  %5696 = vmatprep.mubr.msk.f32.mxu1 %vm6492_vm7, %v6491_v20 }
 0x9b5   :  { %v1063_v51 = vmul.f32 %v6246_v48, %v6242_v39  ;;  %5704 = vmatprep.subr.mxu1 %v6491_v20 }
 0x9b7   :  { %5692 = vmatmul.mubr.msk.f32.vlgmr.msra.gmra.mrb[6].mxu0 %vm560_vm8, %v1063_v51  ;;  %5697 = vmatmul.mubr.msk.f32.vlgmr.msra.gmra.mrb[14].mxu1 %vm560_vm8, %v1217_v52 }
 0x9b8   :  { %5700 = vmatpush3.xpose.msk.msra.mxu0 %vm560_vm8, %v1297_v50  ;;  %5701 = vmatprep.mubr.msk.f32.mxu0 %vm6492_vm7, %v6491_v20 }
 0x9b9   :  { %5709 = vmatprep.subr.mxu0 %v6491_v20  ;;  %5706 = vmatprep.mubr.msk.f32.mxu1 %vm6492_vm7, %v6491_v20 }
 0x9bb   :  { %5702 = vmatmul.mubr.msk.f32.vlgmr.msra.gmra.mrb[8].mxu0 %vm560_vm8, %v1295_v53 }
 0x9bc   :  { %5711 = vmatprep.mubr.msk.f32.mxu0 %vm6492_vm7, %v6491_v20 }
 0xa86   :  { %v6942_v54 = vpop.f32.mrb[12].mxu1 }
 0xa87   :  { %v5688_v55 = vpop.f32.mrb[13].mxu1 }
 0xa8a   :  { %v6944_v56 = vpop.f32.mrb[6].mxu0  ;;  %v1290_v57 = vpop.f32.mrb[14].mxu1 }
 0xa8b   :  { %v1291_v58 = vadd.f32 %v1290_v57, %v6861_v45  ;;  %v5693_v59 = vpop.f32.mrb[7].mxu0  ;;  %v5698_v60 = vpop.f32.mrb[15].mxu1 }
 0xa8d   :  { %v1372_v61 = vsel %vm560_vm8, %v1291_v58, -inf }
 0xa8e   :  { %v1368_v62 = vpop.f32.mrb[8].mxu0  ;;  %1373 = vmax.xlane.f32.xlu0 %v1372_v61 }
 0xa8f   :  { %v1369_v63 = vadd.f32 %v1368_v62, %v6865_v49  ;;  %v5703_v0 = vpop.f32.mrb[9].mxu0  ;;  %v1908_v62 = vld [vmem:[%s7574_s17 + $0x8] sm:$0xff] }
 0xa90   :  { %v1909_v0 = vld [vmem:[%s7574_s17 + $0x10] sm:$0xff] }
 0xa91   :  { %v1375_v1 = vsel %vm560_vm8, %v1369_v63, -inf }
 0xa92   :  { %1376 = vmax.xlane.f32.xlu1 %v1375_v1  ;;  %v1910_v1 = vld [vmem:[%s7574_s17 + $0x18] sm:$0xff] }
 0xaa3   :  { %1394 = vrot.lane.b32.xlu1 %v6836_v40, %s7607_s29 }
 0xaa4   :  { %1470 = vrot.lane.b32.xlu0 %v6834_v38, %s7607_s29 }
 0xaa7   :  { %1548 = vrot.lane.b32.xlu1 %v6836_v40, %s7605_s1 }
 0xaab   :  { %1626 = vrot.lane.b32.xlu1 %v6834_v38, %s7605_s1 }
 0xaaf   :  { %1624 = vrot.lane.b32.xlu1 %v6834_v38, %s7603_s24 }
 0xb1b   :  { %v1374_v2 = vpop.xlane.xlu0 %1373 }
 0xb1c   :  { %v1378_v3 = vsub.f32 %v1291_v58, %v1374_v2  ;;  %v6045_v2 = vpack.c.bf16 %v1910_v1, %v1909_v0 }
 0xb1e   :  { %v1380_v4 = vmul.f32 1.442695, %v1378_v3 }
 0xb1f   :  { %v1377_v5 = vpop.xlane.xlu1 %1376  ;;  %v1471_v6 = vpop.permute.xlu0 %1470 }
 0xb20   :  { %6247 = vpow2.f32 %v1380_v4  ;;  %v1379_v7 = vsub.f32 %v1369_v63, %v1377_v5  ;;  %5710 = vmatpush3.msra.mxu0 %v1471_v6 }
 0xb21   :  { %5719 = vmatprep.subr.mxu0 %v6491_v20 }
 0xb22   :  { %v1382_v8 = vmul.f32 1.442695, %v1379_v7 }
 0xb23   :  { %v1395_v9 = vpop.permute.xlu1 %1394 }
 0xb24   :  { %6249 = vpow2.f32 %v1382_v8  ;;  %5705 = vmatpush3.msra.mxu1 %v1395_v9 }
 0xb25   :  { %5714 = vmatprep.subr.mxu1 %v6491_v20 }
 0xb27   :  { %v1549_v18 = vpop.permute.xlu1 %1548 }
 0xb2a   :  { %v6248_v10 = vpop.eup %6247 }
 0xb2b   :  { %v1384_v11 = vsel %vm560_vm8, %v6248_v10, 0.0  ;;  %v1627_v23 = vpop.permute.xlu1 %1626 }
 0xb2c   :  { %1385 = vadd.xlane.f32.xlu0 %v1384_v11 }
 0xb2e   :  { %v6250_v12 = vpop.eup %6249 }
 0xb2f   :  { %v1387_v14 = vsel %vm560_vm8, %v6250_v12, 0.0  ;;  %v1625_v26 = vpop.permute.xlu1 %1624 }
 0xb30   :  { %1388 = vadd.xlane.f32.xlu0 %v1387_v14 }
 0xb46   :  { %1546 = vrot.lane.b32.xlu0 %v6836_v40, %s7603_s24  ;;  %s7630_s24 = sld [smem:[#allocation18_spill]] }
 0xbb9   :  { %v1386_v16 = vpop.xlane.xlu0 %1385 }
 0xbba   :  { %6251 = vrcp.f32 %v1386_v16 }
 0xbbd   :  { %v1389_v17 = vpop.xlane.xlu0 %1388 }
 0xbbe   :  { %6253 = vrcp.f32 %v1389_v17 }
 0xbc1   :  { %v1547_v25 = vpop.permute.xlu0 %1546 }
 0xbc4   :  { %v6252_v19 = vpop.eup %6251 }
 0xbc5   :  { %v1392_v21 = vmul.f32 %v6252_v19, %v6248_v10 }
 0xbc7   :  { %5707 = vmatmul.mubr.msk.f32.vlgmr.msra.gmra.mrb[16].mxu1 %vm560_vm8, %v1392_v21 }
 0xbc8   :  { %v6254_v22 = vpop.eup %6253  ;;  %5715 = vmatpush3.xpose.msk.msra.mxu1 %vm560_vm8, %v1549_v18  ;;  %5716 = vmatprep.mubr.msk.f32.mxu1 %vm6492_vm7, %v6491_v20 }
 0xbc9   :  { %v1393_v24 = vmul.f32 %v6254_v22, %v6250_v12  ;;  %5724 = vmatprep.subr.mxu1 %v6491_v20 }
 0xbcb   :  { %5712 = vmatmul.mubr.msk.f32.vlgmr.msra.gmra.mrb[10].mxu0 %vm560_vm8, %v1393_v24  ;;  %5717 = vmatmul.mubr.msk.f32.vlgmr.msra.gmra.mrb[18].mxu1 %vm560_vm8, %v1547_v25 }
 0xbcc   :  { %5720 = vmatpush3.xpose.msk.msra.mxu0 %vm560_vm8, %v1627_v23  ;;  %5721 = vmatprep.mubr.msk.f32.mxu0 %vm6492_vm7, %v6491_v20 }
 0xbcd   :  { %5729 = vmatprep.subr.mxu0 %v6491_v20  ;;  %5726 = vmatprep.mubr.msk.f32.mxu1 %vm6492_vm7, %v6491_v20 }
 0xbcf   :  { %5722 = vmatmul.mubr.msk.f32.vlgmr.msra.gmra.mrb[12].mxu0 %vm560_vm8, %v1625_v26 }
 0xbd0   :  { %5731 = vmatprep.mubr.msk.f32.mxu0 %vm6492_vm7, %v6491_v20 }
 0xc9a   :  { %v1466_v27 = vpop.f32.mrb[16].mxu1 }
 0xc9b   :  { %v5708_v28 = vpop.f32.mrb[17].mxu1 }
 0xc9e   :  { %v1542_v29 = vpop.f32.mrb[10].mxu0  ;;  %v1620_v30 = vpop.f32.mrb[18].mxu1 }
 0xc9f   :  { %v1621_v31 = vadd.f32 %v1620_v30, %v6861_v45  ;;  %v5713_v32 = vpop.f32.mrb[11].mxu0  ;;  %v5718_v34 = vpop.f32.mrb[19].mxu1 }
 0xca1   :  { %v1702_v36 = vsel %vm560_vm8, %v1621_v31, -inf }
 0xca2   :  { %v1698_v37 = vpop.f32.mrb[12].mxu0  ;;  %1703 = vmax.xlane.f32.xlu0 %v1702_v36 }
 0xca3   :  { %v1699_v39 = vadd.f32 %v1698_v37, %v6865_v49  ;;  %v5723_v41 = vpop.f32.mrb[13].mxu0 }
 0xca4   :  { %v2139_v41 = vld [vmem:[%s7578_s21] sm:$0xff] }
 0xca5   :  { %v1705_v42 = vsel %vm560_vm8, %v1699_v39, -inf }
 0xca6   :  { %1706 = vmax.xlane.f32.xlu1 %v1705_v42  ;;  %v2140_v42 = vld [vmem:[%s7578_s21 + $0x8] sm:$0xff] }
 0xcb7   :  { %1724 = vrot.lane.b32.xlu1 %v6836_v40, %s7599_s4 }
 0xcbb   :  { %1878 = vrot.lane.b32.xlu1 %v6942_v54, %s7597_s6 }
 0xcbf   :  { %1880 = vrot.lane.b32.xlu1 %v6944_v56, %s7597_s6 }
 0xcc3   :  { %1888 = vrot.lane.b32.xlu1 %v1542_v29, %s7595_s11 }
 0xd2f   :  { %v1704_v43 = vpop.xlane.xlu0 %1703 }
 0xd30   :  { %v1708_v44 = vsub.f32 %v1621_v31, %v1704_v43  ;;  %v6057_v43 = vpack.c.bf16 %v2140_v42, %v2139_v41 }
 0xd32   :  { %v1710_v46 = vmul.f32 1.442695, %v1708_v44  ;;  %v2141_v44 = vld [vmem:[%s7578_s21 + $0x10] sm:$0xff] }
 0xd33   :  { %v1707_v47 = vpop.xlane.xlu1 %1706 }
 0xd34   :  { %6255 = vpow2.f32 %v1710_v46  ;;  %v1709_v48 = vsub.f32 %v1699_v39, %v1707_v47  ;;  %v2142_v46 = vld [vmem:[%s7578_s21 + $0x18] sm:$0xff] }
 0xd35   :  { %v6061_v47 = vpack.c.bf16 %v2142_v46, %v2141_v44 }
 0xd36   :  { %v1712_v50 = vmul.f32 1.442695, %v1709_v48  ;;  %v417_v48 = vld [vmem:[%s7630_s24] sm:$0xff] }
 0xd37   :  { %v1725_v51 = vpop.permute.xlu1 %1724 }
 0xd38   :  { %6257 = vpow2.f32 %v1712_v50  ;;  %5725 = vmatpush3.msra.mxu1 %v1725_v51  ;;  %v418_v50 = vld [vmem:[%s7630_s24 + $0x8] sm:$0xff]  ;;  %v419_v51 = vld [vmem:[%s7630_s24 + $0x10] sm:$0xff] }
 0xd3b   :  { %v1879_v7 = vpop.permute.xlu1 %1878 }
 0xd3c   :  { %v1900_v10 = vsel %vm560_vm8, %v6902_v13, %v1879_v7  ;;  %v5311_v13 = vld [vmem:[#allocation5] ss:$0 sm:$0xff] }
 0xd3e   :  { %v6256_v40 = vpop.eup %6255 }
 0xd3f   :  { %v1714_v52 = vsel %vm560_vm8, %v6256_v40, 0.0  ;;  %v1881_v8 = vpop.permute.xlu1 %1880 }
 0xd40   :  { %1715 = vadd.xlane.f32.xlu0 %v1714_v52  ;;  %v1901_v17 = vsel %vm560_vm8, %v6904_v15, %v1881_v8  ;;  %v2047_v52 = vld [vmem:[%s7576_s19] sm:$0xff] }
 0xd42   :  { %v6258_v53 = vpop.eup %6257 }
 0xd43   :  { %v1717_v54 = vsel %vm560_vm8, %v6258_v53, 0.0  ;;  %v1889_v11 = vpop.permute.xlu1 %1888 }
 0xd44   :  { %1718 = vadd.xlane.f32.xlu0 %v1717_v54  ;;  %v1903_v18 = vsel %vm195_vm3, %v1901_v17, %v1889_v11 }
 0xd5a   :  { %1800 = vrot.lane.b32.xlu0 %v6834_v38, %s7599_s4  ;;  %v1907_v38 = vld [vmem:[%s7574_s17] sm:$0xff] }
 0xd5b   :  { %v6041_v63 = vpack.c.bf16 %v1908_v62, %v1907_v38 }
 0xd5d   :  { %6042 = vmatprep.subr.bf16.mxu1 %v6041_v63 }
 0xd5e   :  { %1886 = vrot.lane.b32.xlu0 %v1466_v27, %s7595_s11 }
 0xdcd   :  { %v1716_v55 = vpop.xlane.xlu0 %1715 }
 0xdce   :  { %6259 = vrcp.f32 %v1716_v55  ;;  %v2049_v55 = vld [vmem:[%s7576_s19 + $0x10] sm:$0xff] }
 0xdd1   :  { %v1719_v56 = vpop.xlane.xlu0 %1718 }
 0xdd2   :  { %6261 = vrcp.f32 %v1719_v56  ;;  %v2050_v56 = vld [vmem:[%s7576_s19 + $0x18] sm:$0xff] }
 0xdd5   :  { %v1801_v57 = vpop.permute.xlu0 %1800 }
 0xdd6   :  { %5730 = vmatpush3.msra.mxu0 %v1801_v57  ;;  %v6053_v57 = vpack.c.bf16 %v2050_v56, %v2049_v55 }
 0xdd8   :  { %v6260_v58 = vpop.eup %6259 }
 0xdd9   :  { %v1722_v59 = vmul.f32 %v6260_v58, %v6256_v40  ;;  %v1887_v9 = vpop.permute.xlu0 %1886  ;;  %v420_v40 = vld [vmem:[%s7630_s24 + $0x18] sm:$0xff]  ;;  %v6506_v58 = vmov 0.0|0.0  }
 0xdda   :  { %v1902_v12 = vsel %vm195_vm3, %v1900_v10, %v1887_v9  ;;  %v5317_v10 = vld [vmem:[#allocation7] ss:$0 sm:$0xff] }
 0xddb   :  { %5727 = vmatmul.mubr.msk.f32.vlgmr.msra.gmra.mrb[20].mxu1 %vm560_vm8, %v1722_v59 }
 0xddc   :  { %v6262_v60 = vpop.eup %6261  ;;  %6044 = vmatpush3.bf16.msra.mxu1 %v6041_v63 }
 0xddd   :  { %v1723_v61 = vmul.f32 %v6262_v60, %v6258_v53  ;;  %6046 = vmatprep.subr.bf16.mxu1 %v6045_v2  ;;  %v2048_v53 = vld [vmem:[%s7576_s19 + $0x8] sm:$0xff] }
 0xdde   :  { %v6049_v54 = vpack.c.bf16 %v2048_v53, %v2047_v52 }
 0xddf   :  { %5732 = vmatmul.mubr.msk.f32.vlgmr.msra.gmra.mrb[14].mxu0 %vm560_vm8, %v1723_v61 }
 0xde0   :  { %6048 = vmatpush3.bf16.msra.mxu1 %v6045_v2  ;;  %6050 = vmatprep.subr.bf16.mxu0 %v6049_v54 }
 0xde1   :  { %6058 = vmatprep.subr.bf16.mxu1 %v6057_v43  ;;  %6052 = vmatpush3.bf16.msra.mxu0 %v6049_v54 }
 0xde2   :  { %6054 = vmatprep.subr.bf16.mxu0 %v6053_v57 }
 0xde5   :  { %6056 = vmatpush3.bf16.msra.mxu0 %v6053_v57 }
 0xde6   :  { %6065 = vmatprep.subr.bf16.mxu0 %v6506_v58 }
 0xeae   :  { %v1796_v3 = vpop.f32.mrb[20].mxu1 }
 0xeaf   :  { %1894 = vrot.lane.b32.xlu0 %v1796_v3, %s7601_s9  ;;  %v5728_v4 = vpop.f32.mrb[21].mxu1  ;;  %v5313_v3 = vld [vmem:[%s7569_s12] ss:$0 sm:$0xff] }
 0xeb2   :  { %v1872_v5 = vpop.f32.mrb[14].mxu0 }
 0xeb3   :  { %1896 = vrot.lane.b32.xlu1 %v1872_v5, %s7601_s9  ;;  %v5733_v6 = vpop.f32.mrb[15].mxu0  ;;  %s7631_s9 = sld [smem:[#allocation27_spill]] }
 0xeb9   :  { %v5312_v1 = vld [vmem:[%s7631_s9] ss:$0 sm:$0xff] }
 0xf21   :  { %v1895_v14 = vpop.permute.xlu0 %1894 }
 0xf22   :  { %v1905_v16 = vsel %vm1904_vm11, %v1902_v12, %v1895_v14 }
 0xf23   :  { %5742 = vmatprep.mubr.msk.f32.mxu1 %vm361_vm6, %v1905_v16 }
 0xf25   :  { %v1897_v19 = vpop.permute.xlu1 %1896 }
 0xf26   :  { %v1906_v21 = vsel %vm1904_vm11, %v1903_v18, %v1897_v19 }
 0xf27   :  { %5743 = vmatmul.mubr.msk.f32.vlgmr.msra.gmra.mrb[22].mxu1 %vm361_vm6, %v1906_v21 }
 0xf28   :  { %6060 = vmatpush3.bf16.msra.mxu1 %v6057_v43  ;;  %5764 = vmatprep.mubr.msk.f32.mxu1 %vm361_vm6, %v417_v48 }
 0xf29   :  { %6062 = vmatprep.subr.bf16.mxu1 %v6061_v47 }
 0xf2c   :  { %6064 = vmatpush3.bf16.msra.mxu1 %v6061_v47 }
 0xf2d   :  { %6069 = vmatprep.subr.bf16.mxu1 %v6506_v58 }
 0xf2f   :  { %5765 = vmatmul.mubr.msk.f32.vlgmr.msra.gmra.mrb[24].mxu1 %vm361_vm6, %v418_v50 }
 0xf30   :  { %5767 = vmatprep.mubr.msk.f32.mxu1 %vm361_vm6, %v419_v51 }
 0xf33   :  { %5768 = vmatmul.mubr.msk.f32.gmra.mrb[26].mxu1 %vm361_vm6, %v420_v40 }
 0xf34   :  { %5781 = vmatprep.mubr.msk.f32.mxu1 %vm6492_vm7, %v6491_v20 }
 0xffa   :  { %v5744_v22 = vpop.f32.mrb[22].mxu1 }
 0xffb   :  { %v1993_v23 = vadd.f32 %v5744_v22, %v6826_v35  ;;  %v1983_v24 = vpop.f32.mrb[23].mxu1 }
 0xffc   :  { %v1992_v25 = vadd.f32 %v1983_v24, %v6822_v33 }
 0xffd   :  { %v2002_v26 = vadd.f32 %v5311_v13, %v1993_v23 }
 0xffe   :  { %v2001_v27 = vadd.f32 %v5311_v13, %v1992_v25 }
 0xfff   :  { %v2008_v28 = vsel %vm361_vm6, %v2002_v26, 0.0 }
0x1000   :  { %2009 = vadd.xlane.f32.xlu1 %v2008_v28  ;;  %v2005_v15 = vsel %vm361_vm6, %v2001_v27, 0.0 }
0x1001   :  { %2006 = vadd.xlane.f32.xlu0 %v2005_v15 }
0x1002   :  { %v5766_v11 = vpop.f32.mrb[24].mxu1 }
0x1003   :  { %v2234_v12 = vadd.f32 %v5766_v11, %v5317_v10  ;;  %v2228_v14 = vpop.f32.mrb[25].mxu1 }
0x1004   :  { %v2229_v16 = vadd.f32 %v5317_v10, %v2228_v14 }
0x1006   :  { %v6203_v18 = vpack.i.bf16 %v2234_v12, %v2229_v16  ;;  %v6066_v19 = vpack.c.bf16 %v2234_v12, %v2229_v16  ;;  %v5769_v21 = vpop.f32.mrb[26].mxu1 }
0x1007   :  { %v2244_v22 = vadd.f32 %v5769_v21, %v5317_v10  ;;  %v2238_v13 = vpop.f32.mrb[27].mxu1 }
0x1008   :  { %v2239_v23 = vadd.f32 %v5317_v10, %v2238_v13 }
0x100a   :  { %v6208_v24 = vpack.i.bf16 %v2244_v22, %v2239_v23  ;;  %v6070_v25 = vpack.c.bf16 %v2244_v22, %v2239_v23 }
0x100c   :  { %6072 = vmatpush3.bf16.xpose.msk.msra.mxu1 %vm7092_vm12, %v6070_v25 }
0x108d   :  { %v2010_v29 = vpop.xlane.xlu1 %2009 }
0x108e   :  { %v2012_v30 = vmul.f32 0.03125, %v2010_v29  ;;  %v2007_v31 = vpop.xlane.xlu0 %2006 }
0x108f   :  { %v2011_v32 = vmul.f32 0.03125, %v2007_v31  ;;  %v411_v31 = vld [vmem:[%s7634_s8] sm:$0xff] }
0x1090   :  { %v2014_v34 = vsub.f32 %v2002_v26, %v2012_v30  ;;  %v5314_v26 = vld [vmem:[%s7577_s20] ss:$0 sm:$0xff]  ;;  %v412_v30 = vld [vmem:[%s7634_s8 + $0x8] sm:$0xff]  ;;  %vm413_vm14 = vcmp.eq.f32.partialorder %v411_v31, 0.0 }
0x1091   :  { %v2013_v36 = vsub.f32 %v2001_v27, %v2011_v32  ;;  %vm414_vm13 = vcmp.eq.f32.partialorder %v412_v30, 0.0 }
0x1092   :  { %v2016_v39 = vmul.f32 %v2014_v34, %v2014_v34  ;;  %v7115_v32 = vsel %vm414_vm13, -1e+30, %v6491_v20 }
0x1093   :  { %v2015_v37 = vmul.f32 %v2013_v36, %v2013_v36 }
0x1094   :  { %v2020_v33 = vsel %vm361_vm6, %v2016_v39, 0.0 }
0x1095   :  { %v2017_v35 = vsel %vm361_vm6, %v2015_v37, 0.0 }
0x1096   :  { %2018 = vadd.xlane.f32.xlu0 %v2017_v35 }
0x109a   :  { %2021 = vadd.xlane.f32.xlu0 %v2020_v33 }
0x1123   :  { %v2019_v59 = vpop.xlane.xlu0 %2018 }
0x1124   :  { %v2023_v60 = vmul.f32 0.03125, %v2019_v59 }
0x1126   :  { %v2025_v61 = vadd.f32 1e-05, %v2023_v60 }
0x1127   :  { %v2022_v38 = vpop.xlane.xlu0 %2021 }
0x1128   :  { %6263 = vrsqrt.f32 %v2025_v61  ;;  %v2024_v62 = vmul.f32 0.03125, %v2022_v38 }
0x112a   :  { %v2026_v63 = vadd.f32 1e-05, %v2024_v62 }
0x112c   :  { %6265 = vrsqrt.f32 %v2026_v63 }
0x1132   :  { %v6264_v0 = vpop.eup %6263 }
0x1133   :  { %v2029_v2 = vmul.f32 %v6264_v0, %v2013_v36 }
0x1135   :  { %v2037_v4 = vmul.f32 %v5312_v1, %v2029_v2 }
0x1136   :  { %v6266_v5 = vpop.eup %6265 }
0x1137   :  { %v2030_v6 = vmul.f32 %v6266_v5, %v2014_v34  ;;  %v7080_v7 = vadd.f32 %v5313_v3, %v2037_v4  ;;  %v7118_v34 = vsel %vm413_vm14, -1e+30, %v6491_v20 }
0x1139   :  { %v2038_v8 = vmul.f32 %v5312_v1, %v2030_v6  ;;  %5753 = vmatprep.mubr.msk.f32.mxu0 %vm361_vm6, %v7080_v7 }
0x113b   :  { %v7084_v9 = vadd.f32 %v5313_v3, %v2038_v8 }
0x113d   :  { %5754 = vmatmul.mubr.msk.f32.vlgmr.msra.gmra.mrb[16].mxu0 %vm361_vm6, %v7084_v9 }
0x113e   :  { %5774 = vmatprep.mubr.msk.f32.mxu0 %vm6492_vm7, %v6491_v20  ;;  %6068 = vmatpush3.bf16.xpose.msk.msra.mxu0 %vm7092_vm12, %v6066_v19 }
0x113f   :  { %6073 = vmatprep.subr.bf16.mxu0 %v6506_v58 }
0x1210   :  { %v5755_v27 = vpop.f32.mrb[16].mxu0 }
0x1211   :  { %v2136_v28 = vadd.f32 %v5755_v27, %v5314_v26  ;;  %v2130_v15 = vpop.f32.mrb[17].mxu0  ;;  %v2632_v27 = vld [vmem:[%s7580_s23 + $0x8] sm:$0xff] }
0x1212   :  { %v2131_v29 = vadd.f32 %v5314_v26, %v2130_v15  ;;  %v2633_v15 = vld [vmem:[%s7580_s23 + $0x10] sm:$0xff] }
0x1213   :  { %5782 = vmatmul.mubr.msk.f32.vlgmr.msra.gmra.mrb[28].mxu1 %vm361_vm6, %v2136_v28 }
0x1214   :  { %5775 = vmatmul.mubr.msk.f32.vlgmr.msra.gmra.mrb[18].mxu0 %vm361_vm6, %v2131_v29  ;;  %v2634_v29 = vld [vmem:[%s7580_s23 + $0x18] sm:$0xff] }
0x1215   :  { %5788 = vmatprep.mubr.msk.f32.mxu0 %vm6492_vm7, %v6491_v20  ;;  %v6083_v30 = vpack.c.bf16 %v2634_v29, %v2633_v15 }
0x12e6   :  { %v2401_v36 = vpop.f32.mrb[28].mxu1 }
0x12e7   :  { %v2402_v37 = vadd.f32 %v2401_v36, %v7115_v32  ;;  %v2322_v35 = vpop.f32.mrb[18].mxu0  ;;  %v5783_v39 = vpop.f32.mrb[29].mxu1 }
0x12e8   :  { %v2323_v33 = vadd.f32 %v2322_v35, %v7118_v34  ;;  %v5776_v41 = vpop.f32.mrb[19].mxu0 }
0x12e9   :  { %v2408_v42 = vsel %vm195_vm3, %v2402_v37, -inf }
0x12ea   :  { %2409 = vmax.xlane.f32.xlu0 %v2408_v42  ;;  %v2405_v43 = vsel %vm195_vm3, %v2323_v33, -inf  ;;  %v5330_v42 = vld [vmem:[%s7570_s13] ss:$0 sm:$0xff] }
0x12eb   :  { %2406 = vmax.xlane.f32.xlu1 %v2405_v43 }
0x1377   :  { %v2410_v44 = vpop.xlane.xlu0 %2409 }
0x1378   :  { %v2412_v46 = vsub.f32 %v2402_v37, %v2410_v44  ;;  %v2407_v47 = vpop.xlane.xlu1 %2406  ;;  %v5331_v44 = vld [vmem:[%s7571_s14] ss:$0 sm:$0xff] }
0x1379   :  { %v2411_v48 = vsub.f32 %v2323_v33, %v2407_v47 }
0x137a   :  { %v2415_v50 = vmul.f32 1.442695, %v2412_v46 }
0x137b   :  { %v2413_v51 = vmul.f32 1.442695, %v2411_v48 }
0x137c   :  { %6267 = vpow2.f32 %v2415_v50 }
0x137d   :  { %6269 = vpow2.f32 %v2413_v51 }
0x1386   :  { %v6268_v40 = vpop.eup %6267 }
0x1387   :  { %v6270_v52 = vpop.eup %6269  ;;  %v2420_v53 = vsel %vm195_vm3, %v6268_v40, 0.0 }
0x1388   :  { %2421 = vadd.xlane.f32.xlu0 %v2420_v53  ;;  %v2417_v54 = vsel %vm195_vm3, %v6270_v52, 0.0  ;;  %v2734_v53 = vld [vmem:[%s7582_s25 + $0x8] sm:$0xff] }
0x1389   :  { %2418 = vadd.xlane.f32.xlu1 %v2417_v54 }
0x139a   :  { %6204 = vrot.lane.b32.xlu1 %v6203_v18, %s6493_s7 }
0x139e   :  { %6209 = vrot.lane.b32.xlu0 %v6208_v24, %s6493_s7 }
0x1415   :  { %v2422_v55 = vpop.xlane.xlu0 %2421 }
0x1416   :  { %v2419_v56 = vpop.xlane.xlu1 %2418 }
0x1417   :  { %6271 = vrcp.f32 %v2419_v56  ;;  %v2736_v56 = vld [vmem:[%s7582_s25 + $0x18] sm:$0xff] }
0x1418   :  { %6273 = vrcp.f32 %v2422_v55  ;;  %v2735_v55 = vld [vmem:[%s7582_s25 + $0x10] sm:$0xff] }
0x1419   :  { %v6210_v61 = vpop.permute.xlu0 %6209 }
0x141a   :  { %v6205_v57 = vpop.permute.xlu1 %6204  ;;  %v6212_v62 = vunpack.i.h.bf16 %v6210_v61  ;;  %v6211_v63 = vunpack.i.l.bf16 %v6210_v61 }
0x141b   :  { %v6207_v59 = vunpack.i.h.bf16 %v6205_v57  ;;  %v6206_v60 = vunpack.i.l.bf16 %v6205_v57  ;;  %v6091_v57 = vpack.c.bf16 %v2736_v56, %v2735_v55 }
0x141c   :  { %v6077_v3 = vpack.c.bf16 %v6212_v62, %v6211_v63  ;;  %v2740_v62 = vld [vmem:[%s7582_s25 + $0x38] sm:$0xff] }
0x141d   :  { %v6074_v38 = vpack.c.bf16 %v6207_v59, %v6206_v60  ;;  %v2737_v59 = vld [vmem:[%s7582_s25 + $0x20] sm:$0xff]  ;;  %v2738_v60 = vld [vmem:[%s7582_s25 + $0x28] sm:$0xff] }
0x141e   :  { %v6095_v61 = vpack.c.bf16 %v2738_v60, %v2737_v59  ;;  %v5341_v59 = vld [vmem:[%s7628_s30 + $0x1] ss:$0 sm:$0xff]  ;;  %s7636_s30 = smov 72  }
0x141f   :  { %6075 = vmatpush3.bf16.msra.mxu0 %v6074_v38  ;;  %v2739_v38 = vld [vmem:[%s7582_s25 + $0x30] sm:$0xff] }
0x1420   :  { %6076 = vmatprep.subr.bf16.mxu0 %v6506_v58  ;;  %v6099_v63 = vpack.c.bf16 %v2740_v62, %v2739_v38 }
0x1421   :  { %v6272_v0 = vpop.eup %6271 }
0x1422   :  { %v2425_v1 = vmul.f32 %v6272_v0, %v6270_v52  ;;  %v6274_v2 = vpop.eup %6273  ;;  %v2733_v52 = vld [vmem:[%s7582_s25] sm:$0xff] }
0x1423   :  { %v2426_v4 = vmul.f32 %v6274_v2, %v6268_v40  ;;  %v6087_v54 = vpack.c.bf16 %v2734_v53, %v2733_v52  ;;  %v5332_v0 = vld [vmem:[#allocation8] ss:$0 sm:$0xff] }
0x1424   :  { %5789 = vmatmul.mubr.msk.f32.vlgmr.msra.gmra.mrb[20].mxu0 %vm195_vm3, %v2425_v1 }
0x1425   :  { %6078 = vmatpush3.bf16.msra.mxu0 %v6077_v3  ;;  %5795 = vmatprep.mubr.msk.f32.mxu0 %vm6492_vm7, %v6491_v20 }
0x1426   :  { %6088 = vmatprep.subr.bf16.mxu0 %v6087_v54 }
0x1428   :  { %5796 = vmatmul.mubr.msk.f32.vlgmr.msra.gmra.mrb[22].mxu0 %vm195_vm3, %v2426_v4 }
0x1429   :  { %6090 = vmatpush3.bf16.msra.mxu0 %v6087_v54  ;;  %v5340_v54 = vld [vmem:[%s7627_s18 + $0x1] ss:$0 sm:$0xff]  ;;  %s7635_s18 = smov 48  }
0x142a   :  { %6092 = vmatprep.subr.bf16.mxu0 %v6091_v57 }
0x142d   :  { %6094 = vmatpush3.bf16.msra.mxu0 %v6091_v57 }
0x142e   :  { %6096 = vmatprep.subr.bf16.mxu0 %v6095_v61 }
0x1431   :  { %6098 = vmatpush3.bf16.msra.mxu0 %v6095_v61 }
0x1432   :  { %6100 = vmatprep.subr.bf16.mxu0 %v6099_v63 }
0x1435   :  { %6102 = vmatpush3.bf16.msra.mxu0 %v6099_v63  ;;  %v5346_v63 = vld [vmem:[#allocation2 + $0x1] ss:$0 sm:$0xff] }
0x1436   :  { %5844 = vmatprep.subr.mxu0 %v6491_v20 }
0x14f7   :  { %v2502_v5 = vpop.f32.mrb[20].mxu0 }
0x14f8   :  { %v2585_v6 = vadd.f32 %v2502_v5, %v7080_v7  ;;  %v5790_v8 = vpop.f32.mrb[21].mxu0 }
0x14fa   :  { %v2589_v10 = vsel %vm361_vm6, %v2585_v6, 0.0 }
0x14fb   :  { %2590 = vadd.xlane.f32.xlu1 %v2589_v10  ;;  %v2581_v11 = vpop.f32.mrb[22].mxu0 }
0x14fc   :  { %v2586_v12 = vadd.f32 %v2581_v11, %v7084_v9  ;;  %v5797_v14 = vpop.f32.mrb[23].mxu0  ;;  %v2631_v9 = vld [vmem:[%s7580_s23] sm:$0xff] }
0x14fd   :  { %v6079_v28 = vpack.c.bf16 %v2632_v27, %v2631_v9 }
0x14fe   :  { %v2592_v16 = vsel %vm361_vm6, %v2586_v12, 0.0 }
0x14ff   :  { %2593 = vadd.xlane.f32.xlu0 %v2592_v16  ;;  %6080 = vmatprep.subr.bf16.mxu1 %v6079_v28 }
0x1500   :  { %6082 = vmatpush3.bf16.msra.mxu1 %v6079_v28 }
0x1501   :  { %6084 = vmatprep.subr.bf16.mxu1 %v6083_v30 }
0x1504   :  { %6086 = vmatpush3.bf16.msra.mxu1 %v6083_v30 }
0x1588   :  { %v2591_v18 = vpop.xlane.xlu1 %2590 }
0x1589   :  { %v2595_v19 = vmul.f32 0.03125, %v2591_v18 }
0x158b   :  { %v2597_v21 = vsub.f32 %v2585_v6, %v2595_v19 }
0x158c   :  { %v2594_v22 = vpop.xlane.xlu0 %2593 }
0x158d   :  { %v2596_v13 = vmul.f32 0.03125, %v2594_v22  ;;  %v2599_v23 = vmul.f32 %v2597_v21, %v2597_v21  ;;  %v5337_v22 = vld [vmem:[#allocation10] ss:$0 sm:$0xff] }
0x158f   :  { %v2598_v24 = vsub.f32 %v2586_v12, %v2596_v13  ;;  %v2601_v7 = vsel %vm361_vm6, %v2599_v23, 0.0 }
0x1590   :  { %2602 = vadd.xlane.f32.xlu1 %v2601_v7 }
0x1591   :  { %v2600_v25 = vmul.f32 %v2598_v24, %v2598_v24 }
0x1593   :  { %v2604_v26 = vsel %vm361_vm6, %v2600_v25, 0.0 }
0x1594   :  { %2605 = vadd.xlane.f32.xlu0 %v2604_v26 }
0x161d   :  { %v2603_v31 = vpop.xlane.xlu1 %2602 }
0x161e   :  { %v2607_v36 = vmul.f32 0.03125, %v2603_v31 }
0x1620   :  { %v2609_v37 = vadd.f32 1e-05, %v2607_v36 }
0x1621   :  { %v2606_v35 = vpop.xlane.xlu0 %2605 }
0x1622   :  { %6275 = vrsqrt.f32 %v2609_v37  ;;  %v2608_v39 = vmul.f32 0.03125, %v2606_v35 }
0x1624   :  { %v2610_v33 = vadd.f32 1e-05, %v2608_v39 }
0x1626   :  { %6277 = vrsqrt.f32 %v2610_v33  ;;  %v5342_v33 = vld [vmem:[%s7572_s15 + $0x20] sm:$0xff] }
0x162c   :  { %v6276_v41 = vpop.eup %6275 }
0x162d   :  { %v2613_v43 = vmul.f32 %v6276_v41, %v2597_v21  ;;  %v5343_v41 = vld [vmem:[%s7572_s15 + $0x28] sm:$0xff] }
0x162f   :  { %v2621_v46 = vmul.f32 %v5330_v42, %v2613_v43  ;;  %v5344_v43 = vld [vmem:[%s7572_s15 + $0x30] sm:$0xff] }
0x1630   :  { %v6278_v47 = vpop.eup %6277 }
0x1631   :  { %v2614_v48 = vmul.f32 %v6278_v47, %v2598_v24  ;;  %v2629_v50 = vadd.f32 %v5331_v44, %v2621_v46 }
0x1633   :  { %v2622_v51 = vmul.f32 %v5330_v42, %v2614_v48  ;;  %5806 = vmatprep.mubr.msk.f32.mxu1 %vm361_vm6, %v2629_v50  ;;  %v6103_v42 = vpack.c.bf16 %v5343_v41, %v5342_v33 }
0x1635   :  { %v2630_v40 = vadd.f32 %v5331_v44, %v2622_v51  ;;  %v5345_v44 = vld [vmem:[%s7572_s15 + $0x38] sm:$0xff]  ;;  %6104 = vmatprep.subr.bf16.mxu1 %v6103_v42 }
0x1636   :  { %v6107_v46 = vpack.c.bf16 %v5345_v44, %v5344_v43 }
0x1637   :  { %5807 = vmatmul.mubr.msk.f32.vlgmr.msra.gmra.mrb[30].mxu1 %vm361_vm6, %v2630_v40 }
0x1638   :  { %6106 = vmatpush3.bf16.msra.mxu1 %v6103_v42 }
0x1639   :  { %6108 = vmatprep.subr.bf16.mxu1 %v6107_v46 }
0x163c   :  { %6110 = vmatpush3.bf16.msra.mxu1 %v6107_v46 }
0x163d   :  { %5839 = vmatprep.subr.mxu1 %v6491_v20 }
0x170a   :  { %v5808_v1 = vpop.f32.mrb[30].mxu1 }
0x170b   :  { %v2720_v2 = vadd.f32 %v5808_v1, %v5332_v0  ;;  %v2714_v3 = vpop.f32.mrb[31].mxu1 }
0x170c   :  { %v2715_v4 = vadd.f32 %v5332_v0, %v2714_v3 }
0x170d   :  { %v2726_v5 = vmul.f32 0.70710677, %v2720_v2  ;;  %v2724_v16 = vmul.f32 0.5, %v2720_v2 }
0x170e   :  { %v2725_v6 = vmul.f32 0.70710677, %v2715_v4  ;;  %v2723_v12 = vmul.f32 0.5, %v2715_v4 }
0x170f   :  { %6279 = verf.f32 %v2726_v5 }
0x1710   :  { %6281 = verf.f32 %v2725_v6 }
0x1719   :  { %v6280_v8 = vpop.eup %6279 }
0x171a   :  { %v6282_v10 = vpop.eup %6281  ;;  %v2730_v11 = vadd.f32 1.0, %v6280_v8 }
0x171b   :  { %v2729_v14 = vadd.f32 1.0, %v6282_v10 }
0x171c   :  { %v2732_v19 = vmul.f32 %v2730_v11, %v2724_v16 }
0x171d   :  { %v2731_v18 = vmul.f32 %v2729_v14, %v2723_v12 }
0x171f   :  { %5825 = vmatprep.mubr.msk.f32.mxu0 %vm277_vm0, %v2731_v18 }
0x1720   :  { %5826 = vmatmul.mubr.msk.f32.vlgmr.msra.gmra.mrb[24].mxu0 %vm277_vm0, %v2732_v19 }
0x1721   :  { %5846 = vmatprep.mubr.msk.f32.mxu0 %vm6492_vm7, %v6491_v20 }
0x17f3   :  { %v5827_v21 = vpop.f32.mrb[24].mxu0 }
0x17f4   :  { %v2823_v13 = vadd.f32 %v5827_v21, %v2630_v40  ;;  %v2813_v23 = vpop.f32.mrb[25].mxu0 }
0x17f5   :  { %v2822_v24 = vadd.f32 %v2813_v23, %v2629_v50 }
0x17f6   :  { %v2832_v7 = vadd.f32 %v5337_v22, %v2823_v13 }
0x17f7   :  { %v2831_v25 = vadd.f32 %v5337_v22, %v2822_v24 }
0x17f8   :  { %v2840_v26 = vsel %vm361_vm6, %v2832_v7, 0.0 }
0x17f9   :  { %2841 = vadd.xlane.f32.xlu0 %v2840_v26  ;;  %v2837_v9 = vsel %vm361_vm6, %v2831_v25, 0.0 }
0x17fa   :  { %2838 = vadd.xlane.f32.xlu1 %v2837_v9 }
0x1886   :  { %v2842_v27 = vpop.xlane.xlu0 %2841 }
0x1887   :  { %v2844_v28 = vmul.f32 0.03125, %v2842_v27  ;;  %v2839_v15 = vpop.xlane.xlu1 %2838 }
0x1888   :  { %v2843_v29 = vmul.f32 0.03125, %v2839_v15 }
0x1889   :  { %v2846_v30 = vsub.f32 %v2832_v7, %v2844_v28 }
0x188a   :  { %v2845_v31 = vsub.f32 %v2831_v25, %v2843_v29 }
0x188b   :  { %v2848_v36 = vmul.f32 %v2846_v30, %v2846_v30 }
0x188c   :  { %v2847_v37 = vmul.f32 %v2845_v31, %v2845_v31 }
0x188d   :  { %v2852_v35 = vsel %vm361_vm6, %v2848_v36, 0.0 }
0x188e   :  { %2853 = vadd.xlane.f32.xlu0 %v2852_v35  ;;  %v2849_v39 = vsel %vm361_vm6, %v2847_v37, 0.0 }
0x188f   :  { %2850 = vadd.xlane.f32.xlu1 %v2849_v39 }
0x191b   :  { %v2854_v47 = vpop.xlane.xlu0 %2853 }
0x191c   :  { %v2856_v48 = vmul.f32 0.03125, %v2854_v47  ;;  %v2851_v50 = vpop.xlane.xlu1 %2850 }
0x191d   :  { %v2855_v51 = vmul.f32 0.03125, %v2851_v50 }
0x191e   :  { %v2858_v40 = vadd.f32 1e-05, %v2856_v48 }
0x191f   :  { %v2857_v52 = vadd.f32 1e-05, %v2855_v51 }
0x1920   :  { %6283 = vrsqrt.f32 %v2858_v40 }
0x1921   :  { %6285 = vrsqrt.f32 %v2857_v52 }
0x192a   :  { %v6284_v53 = vpop.eup %6283 }
0x192b   :  { %v6286_v55 = vpop.eup %6285  ;;  %v2862_v56 = vmul.f32 %v6284_v53, %v2846_v30 }
0x192c   :  { %v2861_v57 = vmul.f32 %v6286_v55, %v2845_v31 }
0x192d   :  { %v2870_v60 = vmul.f32 %v5340_v54, %v2862_v56 }
0x192e   :  { %v2869_v61 = vmul.f32 %v5340_v54, %v2861_v57 }
0x192f   :  { %v7213_v62 = vadd.f32 %v5341_v59, %v2870_v60 }
0x1930   :  { %v7211_v38 = vadd.f32 %v5341_v59, %v2869_v61 }
0x1932   :  { %5836 = vmatprep.mubr.msk.f32.mxu1 %vm361_vm6, %v7211_v38 }
0x1933   :  { %5837 = vmatmul.mubr.msk.f32.vlgmr.msra.gmra.mrb[32].mxu1 %vm361_vm6, %v7213_v62 }
0x1934   :  { %5841 = vmatprep.mubr.msk.f32.mxu1 %vm6492_vm7, %v6491_v20 }
0x1a06   :  { %v5838_v0 = vpop.f32.mrb[32].mxu1 }
0x1a07   :  { %v7221_v1 = vadd.f32 %v5838_v0, %v5346_v63  ;;  %v2964_v2 = vpop.f32.mrb[33].mxu1 }
0x1a08   :  { %v7223_v3 = vadd.f32 %v5346_v63, %v2964_v2 }
0x1a09   :  { %3051 = vrot.lane.b32.xlu0 %v7221_v1, %s6493_s7 }
0x1a0a   :  { %2974 = vrot.lane.b32.xlu1 %v7223_v3, %s6493_s7 }
0x1a7b   :  { %v3052_v4 = vpop.permute.xlu0 %3051 }
0x1a7c   :  { %5845 = vmatpush3.xpose.msk.msra.mxu0 %vm560_vm8, %v3052_v4  ;;  %v2975_v5 = vpop.permute.xlu1 %2974 }
0x1a7d   :  { %5840 = vmatpush3.xpose.msk.msra.mxu1 %vm560_vm8, %v2975_v5  ;;  %5854 = vmatprep.subr.mxu0 %v6491_v20 }
0x1a7e   :  { %5849 = vmatprep.subr.mxu1 %v6491_v20 }
0x1a7f   :  { %5847 = vmatmul.mubr.msk.f32.vlgmr.msra.gmra.mrb[26].mxu0 %vm560_vm8, %v7221_v1 }
0x1a80   :  { %5842 = vmatmul.mubr.msk.f32.vlgmr.msra.gmra.mrb[34].mxu1 %vm560_vm8, %v7223_v3  ;;  %5856 = vmatprep.mubr.msk.f32.mxu0 %vm6492_vm7, %v6491_v20 }
0x1a81   :  { %5851 = vmatprep.mubr.msk.f32.mxu1 %vm6492_vm7, %v6491_v20 }
0x1b52   :  { %v3123_v6 = vpop.f32.mrb[26].mxu0 }
0x1b53   :  { %v3124_v8 = vadd.f32 %v3123_v6, %v6865_v49  ;;  %v3046_v10 = vpop.f32.mrb[34].mxu1  ;;  %v5848_v11 = vpop.f32.mrb[27].mxu0 }
0x1b54   :  { %v3047_v12 = vadd.f32 %v3046_v10, %v6861_v45  ;;  %v5843_v14 = vpop.f32.mrb[35].mxu1 }
0x1b55   :  { %v3130_v16 = vsel %vm560_vm8, %v3124_v8, -inf }
0x1b56   :  { %3131 = vmax.xlane.f32.xlu0 %v3130_v16  ;;  %v3127_v18 = vsel %vm560_vm8, %v3047_v12, -inf }
0x1b57   :  { %3128 = vmax.xlane.f32.xlu1 %v3127_v18 }
0x1b68   :  { %3149 = vrot.lane.b32.xlu1 %v7223_v3, %s6494_s0 }
0x1b6c   :  { %3225 = vrot.lane.b32.xlu0 %v7221_v1, %s6494_s0  ;;  %3303 = vrot.lane.b32.xlu1 %v7223_v3, %s6495_s10  ;;  %s7637_s0 = smov 104  }
0x1b70   :  { %3381 = vrot.lane.b32.xlu1 %v7221_v1, %s6495_s10  ;;  %s7638_s10 = smov 40  }
0x1be3   :  { %v3132_v19 = vpop.xlane.xlu0 %3131 }
0x1be4   :  { %v3134_v21 = vsub.f32 %v3124_v8, %v3132_v19  ;;  %v3129_v22 = vpop.xlane.xlu1 %3128 }
0x1be5   :  { %v3133_v13 = vsub.f32 %v3047_v12, %v3129_v22 }
0x1be6   :  { %v3137_v23 = vmul.f32 1.442695, %v3134_v21 }
0x1be7   :  { %v3135_v24 = vmul.f32 1.442695, %v3133_v13  ;;  %v3226_v7 = vpop.permute.xlu0 %3225 }
0x1be8   :  { %6287 = vpow2.f32 %v3137_v23  ;;  %5855 = vmatpush3.msra.mxu0 %v3226_v7  ;;  %v3150_v25 = vpop.permute.xlu1 %3149 }
0x1be9   :  { %6289 = vpow2.f32 %v3135_v24  ;;  %5850 = vmatpush3.msra.mxu1 %v3150_v25  ;;  %5864 = vmatprep.subr.mxu0 %v6491_v20 }
0x1bea   :  { %5859 = vmatprep.subr.mxu1 %v6491_v20 }
0x1bec   :  { %v3304_v15 = vpop.permute.xlu1 %3303 }
0x1bf0   :  { %v3382_v29 = vpop.permute.xlu1 %3381 }
0x1bf2   :  { %v6288_v26 = vpop.eup %6287 }
0x1bf3   :  { %v6290_v9 = vpop.eup %6289  ;;  %v3142_v27 = vsel %vm560_vm8, %v6288_v26, 0.0 }
0x1bf4   :  { %3143 = vadd.xlane.f32.xlu0 %v3142_v27  ;;  %v3139_v28 = vsel %vm560_vm8, %v6290_v9, 0.0 }
0x1bf5   :  { %3140 = vadd.xlane.f32.xlu1 %v3139_v28 }
0x1c06   :  { %3379 = vrot.lane.b32.xlu1 %v7221_v1, %s6496_s16 }
0x1c0a   :  { %3301 = vrot.lane.b32.xlu0 %v7223_v3, %s6496_s16  ;;  %s7639_s16 = smov 8  }
0x1c81   :  { %v3144_v30 = vpop.xlane.xlu0 %3143 }
0x1c82   :  { %6291 = vrcp.f32 %v3144_v30  ;;  %v3141_v31 = vpop.xlane.xlu1 %3140 }
0x1c83   :  { %6293 = vrcp.f32 %v3141_v31 }
0x1c85   :  { %v3302_v41 = vpop.permute.xlu0 %3301 }
0x1c86   :  { %v3380_v33 = vpop.permute.xlu1 %3379 }
0x1c8c   :  { %v6292_v36 = vpop.eup %6291 }
0x1c8d   :  { %v6294_v37 = vpop.eup %6293  ;;  %v3148_v35 = vmul.f32 %v6292_v36, %v6288_v26 }
0x1c8e   :  { %v3147_v39 = vmul.f32 %v6294_v37, %v6290_v9 }
0x1c8f   :  { %5857 = vmatmul.mubr.msk.f32.vlgmr.msra.gmra.mrb[28].mxu0 %vm560_vm8, %v3148_v35 }
0x1c90   :  { %5865 = vmatpush3.xpose.msk.msra.mxu0 %vm560_vm8, %v3382_v29  ;;  %5852 = vmatmul.mubr.msk.f32.vlgmr.msra.gmra.mrb[36].mxu1 %vm560_vm8, %v3147_v39 }
0x1c91   :  { %5860 = vmatpush3.xpose.msk.msra.mxu1 %vm560_vm8, %v3304_v15  ;;  %5866 = vmatprep.mubr.msk.f32.mxu0 %vm6492_vm7, %v6491_v20 }
0x1c92   :  { %5861 = vmatprep.mubr.msk.f32.mxu1 %vm6492_vm7, %v6491_v20  ;;  %5869 = vmatprep.subr.mxu1 %v6491_v20 }
0x1c93   :  { %5867 = vmatmul.mubr.msk.f32.vlgmr.msra.gmra.mrb[30].mxu0 %vm560_vm8, %v3380_v33  ;;  %5874 = vmatprep.subr.mxu0 %v6491_v20 }
0x1c94   :  { %5862 = vmatmul.mubr.msk.f32.vlgmr.msra.gmra.mrb[38].mxu1 %vm560_vm8, %v3302_v41  ;;  %5876 = vmatprep.mubr.msk.f32.mxu0 %vm6492_vm7, %v6491_v20 }
0x1c95   :  { %5871 = vmatprep.mubr.msk.f32.mxu1 %vm6492_vm7, %v6491_v20 }
0x1d62   :  { %v7277_v42 = vpop.f32.mrb[28].mxu0 }
0x1d63   :  { %v7279_v43 = vpop.f32.mrb[36].mxu1  ;;  %v5858_v44 = vpop.f32.mrb[29].mxu0 }
0x1d64   :  { %v5853_v46 = vpop.f32.mrb[37].mxu1 }
0x1d66   :  { %v3453_v47 = vpop.f32.mrb[30].mxu0 }
0x1d67   :  { %v3454_v48 = vadd.f32 %v3453_v47, %v6865_v49  ;;  %v3375_v50 = vpop.f32.mrb[38].mxu1  ;;  %v5868_v51 = vpop.f32.mrb[31].mxu0 }
0x1d68   :  { %v3376_v40 = vadd.f32 %v3375_v50, %v6861_v45  ;;  %v5863_v52 = vpop.f32.mrb[39].mxu1 }
0x1d69   :  { %v3460_v53 = vsel %vm560_vm8, %v3454_v48, -inf }
0x1d6a   :  { %3461 = vmax.xlane.f32.xlu1 %v3460_v53  ;;  %v3457_v54 = vsel %vm560_vm8, %v3376_v40, -inf }
0x1d6b   :  { %3458 = vmax.xlane.f32.xlu0 %v3457_v54 }
0x1d7b   :  { %3479 = vrot.lane.b32.xlu1 %v7223_v3, %s6497_s3 }
0x1d7f   :  { %3633 = vrot.lane.b32.xlu1 %v7223_v3, %s6498_s26 }
0x1d81   :  { %3555 = vrot.lane.b32.xlu0 %v7221_v1, %s6497_s3  ;;  %s7640_s3 = smov 16  }
0x1d83   :  { %3711 = vrot.lane.b32.xlu1 %v7221_v1, %s6498_s26 }
0x1d87   :  { %3709 = vrot.lane.b32.xlu1 %v7221_v1, %s6499_s2 }
0x1df7   :  { %v3462_v55 = vpop.xlane.xlu1 %3461 }
0x1df8   :  { %v3464_v56 = vsub.f32 %v3454_v48, %v3462_v55  ;;  %v3459_v57 = vpop.xlane.xlu0 %3458 }
0x1df9   :  { %v3463_v59 = vsub.f32 %v3376_v40, %v3459_v57 }
0x1dfa   :  { %v3467_v60 = vmul.f32 1.442695, %v3464_v56 }
0x1dfb   :  { %v3465_v61 = vmul.f32 1.442695, %v3463_v59  ;;  %v3480_v63 = vpop.permute.xlu1 %3479 }
0x1dfc   :  { %6295 = vpow2.f32 %v3467_v60  ;;  %5870 = vmatpush3.msra.mxu1 %v3480_v63  ;;  %v3556_v0 = vpop.permute.xlu0 %3555 }
0x1dfd   :  { %5875 = vmatpush3.msra.mxu0 %v3556_v0  ;;  %5879 = vmatprep.subr.mxu1 %v6491_v20  ;;  %6297 = vpow2.f32 %v3465_v61 }
0x1dfe   :  { %5884 = vmatprep.subr.mxu0 %v6491_v20 }
0x1dff   :  { %v3634_v11 = vpop.permute.xlu1 %3633 }
0x1e03   :  { %v3712_v14 = vpop.permute.xlu1 %3711 }
0x1e06   :  { %v6296_v2 = vpop.eup %6295 }
0x1e07   :  { %v3472_v4 = vsel %vm560_vm8, %v6296_v2, 0.0  ;;  %v6298_v5 = vpop.eup %6297  ;;  %v3710_v21 = vpop.permute.xlu1 %3709 }
0x1e08   :  { %3473 = vadd.xlane.f32.xlu0 %v3472_v4  ;;  %v3469_v6 = vsel %vm560_vm8, %v6298_v5, 0.0 }
0x1e0c   :  { %3470 = vadd.xlane.f32.xlu0 %v3469_v6 }
0x1e22   :  { %3631 = vrot.lane.b32.xlu0 %v7223_v3, %s6499_s2 }
0x1e95   :  { %v3474_v8 = vpop.xlane.xlu0 %3473 }
0x1e96   :  { %6299 = vrcp.f32 %v3474_v8 }
0x1e99   :  { %v3471_v10 = vpop.xlane.xlu0 %3470 }
0x1e9a   :  { %6301 = vrcp.f32 %v3471_v10 }
0x1e9d   :  { %v3632_v22 = vpop.permute.xlu0 %3631 }
0x1ea0   :  { %v6300_v12 = vpop.eup %6299 }
0x1ea1   :  { %v3478_v16 = vmul.f32 %v6300_v12, %v6296_v2 }
0x1ea3   :  { %5877 = vmatmul.mubr.msk.f32.vlgmr.msra.gmra.mrb[32].mxu0 %vm560_vm8, %v3478_v16 }
0x1ea4   :  { %v6302_v18 = vpop.eup %6301  ;;  %5885 = vmatpush3.xpose.msk.msra.mxu0 %vm560_vm8, %v3712_v14  ;;  %5886 = vmatprep.mubr.msk.f32.mxu0 %vm6492_vm7, %v6491_v20 }
0x1ea5   :  { %v3477_v19 = vmul.f32 %v6302_v18, %v6298_v5  ;;  %5894 = vmatprep.subr.mxu0 %v6491_v20 }
0x1ea7   :  { %5872 = vmatmul.mubr.msk.f32.vlgmr.msra.gmra.mrb[40].mxu1 %vm560_vm8, %v3477_v19  ;;  %5887 = vmatmul.mubr.msk.f32.vlgmr.msra.gmra.mrb[34].mxu0 %vm560_vm8, %v3710_v21 }
0x1ea8   :  { %5880 = vmatpush3.xpose.msk.msra.mxu1 %vm560_vm8, %v3634_v11  ;;  %5881 = vmatprep.mubr.msk.f32.mxu1 %vm6492_vm7, %v6491_v20 }
0x1ea9   :  { %5889 = vmatprep.subr.mxu1 %v6491_v20  ;;  %5896 = vmatprep.mubr.msk.f32.mxu0 %vm6492_vm7, %v6491_v20 }
0x1eab   :  { %5882 = vmatmul.mubr.msk.f32.vlgmr.msra.gmra.mrb[42].mxu1 %vm560_vm8, %v3632_v22 }
0x1eac   :  { %5891 = vmatprep.mubr.msk.f32.mxu1 %vm6492_vm7, %v6491_v20 }
0x1f76   :  { %v7317_v13 = vpop.f32.mrb[32].mxu0 }
0x1f77   :  { %v5878_v23 = vpop.f32.mrb[33].mxu0 }
0x1f7a   :  { %v7319_v24 = vpop.f32.mrb[40].mxu1  ;;  %v3783_v7 = vpop.f32.mrb[34].mxu0 }
0x1f7b   :  { %v3784_v25 = vadd.f32 %v3783_v7, %v6865_v49  ;;  %v5873_v26 = vpop.f32.mrb[41].mxu1  ;;  %v5888_v9 = vpop.f32.mrb[35].mxu0 }
0x1f7d   :  { %v3790_v27 = vsel %vm560_vm8, %v3784_v25, -inf }
0x1f7e   :  { %3791 = vmax.xlane.f32.xlu1 %v3790_v27  ;;  %v3705_v28 = vpop.f32.mrb[42].mxu1 }
0x1f7f   :  { %v3706_v15 = vadd.f32 %v3705_v28, %v6861_v45  ;;  %v5883_v29 = vpop.f32.mrb[43].mxu1 }
0x1f80   :  { %v5374_v29 = vld [vmem:[%s7574_s17 + $0x28] sm:$0xff] }
0x1f81   :  { %v3787_v30 = vsel %vm560_vm8, %v3706_v15, -inf }
0x1f82   :  { %3788 = vmax.xlane.f32.xlu0 %v3787_v30 }
0x1f8f   :  { %3809 = vrot.lane.b32.xlu1 %v7223_v3, %s7635_s18 }
0x1f93   :  { %3963 = vrot.lane.b32.xlu1 %v7223_v3, %s7636_s30 }
0x1f97   :  { %4041 = vrot.lane.b32.xlu1 %v7221_v1, %s7636_s30 }
0x1f98   :  { %3885 = vrot.lane.b32.xlu0 %v7221_v1, %s7635_s18 }
0x1f9b   :  { %4039 = vrot.lane.b32.xlu1 %v7221_v1, %s7637_s0 }
0x200b   :  { %v3792_v31 = vpop.xlane.xlu1 %3791 }
0x200c   :  { %v3794_v36 = vsub.f32 %v3784_v25, %v3792_v31  ;;  %v5375_v31 = vld [vmem:[%s7574_s17 + $0x30] sm:$0xff] }
0x200e   :  { %v3797_v37 = vmul.f32 1.442695, %v3794_v36  ;;  %v5376_v36 = vld [vmem:[%s7574_s17 + $0x38] sm:$0xff] }
0x200f   :  { %v3810_v35 = vpop.permute.xlu1 %3809  ;;  %v3789_v39 = vpop.xlane.xlu0 %3788 }
0x2010   :  { %6303 = vpow2.f32 %v3797_v37  ;;  %v3793_v33 = vsub.f32 %v3706_v15, %v3789_v39  ;;  %5890 = vmatpush3.msra.mxu1 %v3810_v35  ;;  %v6115_v37 = vpack.c.bf16 %v5376_v36, %v5375_v31 }
0x2011   :  { %5899 = vmatprep.subr.mxu1 %v6491_v20 }
0x2012   :  { %v3795_v41 = vmul.f32 1.442695, %v3793_v33 }
0x2013   :  { %v3886_v44 = vpop.permute.xlu0 %3885  ;;  %v3964_v52 = vpop.permute.xlu1 %3963 }
0x2014   :  { %6305 = vpow2.f32 %v3795_v41  ;;  %5895 = vmatpush3.msra.mxu0 %v3886_v44 }
0x2015   :  { %5904 = vmatprep.subr.mxu0 %v6491_v20 }
0x2017   :  { %v4042_v54 = vpop.permute.xlu1 %4041 }
0x201a   :  { %v6304_v46 = vpop.eup %6303 }
0x201b   :  { %v3802_v47 = vsel %vm560_vm8, %v6304_v46, 0.0  ;;  %v4040_v59 = vpop.permute.xlu1 %4039 }
0x201c   :  { %3803 = vadd.xlane.f32.xlu0 %v3802_v47 }
0x201e   :  { %v6306_v48 = vpop.eup %6305 }
0x201f   :  { %v3799_v50 = vsel %vm560_vm8, %v6306_v48, 0.0 }
0x2020   :  { %3800 = vadd.xlane.f32.xlu0 %v3799_v50 }
0x2036   :  { %3961 = vrot.lane.b32.xlu0 %v7223_v3, %s7637_s0 }
0x20a9   :  { %v3804_v51 = vpop.xlane.xlu0 %3803 }
0x20aa   :  { %6307 = vrcp.f32 %v3804_v51 }
0x20ad   :  { %v3801_v40 = vpop.xlane.xlu0 %3800 }
0x20ae   :  { %6309 = vrcp.f32 %v3801_v40 }
0x20b1   :  { %v3962_v60 = vpop.permute.xlu0 %3961 }
0x20b4   :  { %v6308_v53 = vpop.eup %6307 }
0x20b5   :  { %v3808_v55 = vmul.f32 %v6308_v53, %v6304_v46 }
0x20b7   :  { %5897 = vmatmul.mubr.msk.f32.vlgmr.msra.gmra.mrb[36].mxu0 %vm560_vm8, %v3808_v55 }
0x20b8   :  { %v6310_v56 = vpop.eup %6309  ;;  %5905 = vmatpush3.xpose.msk.msra.mxu0 %vm560_vm8, %v4042_v54  ;;  %5906 = vmatprep.mubr.msk.f32.mxu0 %vm6492_vm7, %v6491_v20 }
0x20b9   :  { %v3807_v57 = vmul.f32 %v6310_v56, %v6306_v48  ;;  %5914 = vmatprep.subr.mxu0 %v6491_v20 }
0x20bb   :  { %5892 = vmatmul.mubr.msk.f32.vlgmr.msra.gmra.mrb[44].mxu1 %vm560_vm8, %v3807_v57  ;;  %5907 = vmatmul.mubr.msk.f32.vlgmr.msra.gmra.mrb[38].mxu0 %vm560_vm8, %v4040_v59  ;;  %v5379_v57 = vld [vmem:[#allocation5 + $0x1] ss:$0 sm:$0xff] }
0x20bc   :  { %5900 = vmatpush3.xpose.msk.msra.mxu1 %vm560_vm8, %v3964_v52  ;;  %5901 = vmatprep.mubr.msk.f32.mxu1 %vm6492_vm7, %v6491_v20 }
0x20bd   :  { %5909 = vmatprep.subr.mxu1 %v6491_v20  ;;  %5916 = vmatprep.mubr.msk.f32.mxu0 %vm6492_vm7, %v6491_v20 }
0x20bf   :  { %5902 = vmatmul.mubr.msk.f32.vlgmr.msra.gmra.mrb[46].mxu1 %vm560_vm8, %v3962_v60 }
0x20c0   :  { %5911 = vmatprep.mubr.msk.f32.mxu1 %vm6492_vm7, %v6491_v20 }
0x218a   :  { %v3957_v61 = vpop.f32.mrb[36].mxu0 }
0x218b   :  { %v5898_v63 = vpop.f32.mrb[37].mxu0 }
0x218e   :  { %v3881_v0 = vpop.f32.mrb[44].mxu1  ;;  %v4113_v2 = vpop.f32.mrb[38].mxu0 }
0x218f   :  { %v4114_v4 = vadd.f32 %v4113_v2, %v6865_v49  ;;  %v5893_v5 = vpop.f32.mrb[45].mxu1  ;;  %v5908_v6 = vpop.f32.mrb[39].mxu0 }
0x2191   :  { %v4120_v8 = vsel %vm560_vm8, %v4114_v4, -inf }
0x2192   :  { %4121 = vmax.xlane.f32.xlu1 %v4120_v8  ;;  %v4035_v10 = vpop.f32.mrb[46].mxu1 }
0x2193   :  { %v4036_v11 = vadd.f32 %v4035_v10, %v6861_v45  ;;  %v5903_v12 = vpop.f32.mrb[47].mxu1 }
0x2195   :  { %v4117_v14 = vsel %vm560_vm8, %v4036_v11, -inf }
0x2196   :  { %4118 = vmax.xlane.f32.xlu0 %v4117_v14 }
0x21a3   :  { %4139 = vrot.lane.b32.xlu1 %v7223_v3, %s7638_s10 }
0x21a7   :  { %4293 = vrot.lane.b32.xlu1 %v7319_v24, %s7639_s16 }
0x21ab   :  { %4295 = vrot.lane.b32.xlu1 %v7317_v13, %s7639_s16 }
0x21af   :  { %4303 = vrot.lane.b32.xlu1 %v3957_v61, %s7640_s3 }
0x221f   :  { %v4122_v49 = vpop.xlane.xlu1 %4121 }
0x2220   :  { %v4124_v16 = vsub.f32 %v4114_v4, %v4122_v49 }
0x2222   :  { %v4127_v18 = vmul.f32 1.442695, %v4124_v16  ;;  %v5392_v16 = vld [vmem:[%s7578_s21 + $0x20] sm:$0xff] }
0x2223   :  { %v4140_v19 = vpop.permute.xlu1 %4139  ;;  %v4119_v45 = vpop.xlane.xlu0 %4118 }
0x2224   :  { %6311 = vpow2.f32 %v4127_v18  ;;  %v4123_v21 = vsub.f32 %v4036_v11, %v4119_v45  ;;  %5910 = vmatpush3.msra.mxu1 %v4140_v19  ;;  %v5393_v18 = vld [vmem:[%s7578_s21 + $0x28] sm:$0xff]  ;;  %v5394_v45 = vld [vmem:[%s7578_s21 + $0x30] sm:$0xff] }
0x2225   :  { %v6127_v19 = vpack.c.bf16 %v5393_v18, %v5392_v16 }
0x2226   :  { %v4125_v22 = vmul.f32 1.442695, %v4123_v21  ;;  %v5395_v21 = vld [vmem:[%s7578_s21 + $0x38] sm:$0xff] }
0x2227   :  { %v4294_v44 = vpop.permute.xlu1 %4293 }
0x2228   :  { %6313 = vpow2.f32 %v4125_v22  ;;  %v4315_v50 = vsel %vm560_vm8, %v7279_v43, %v4294_v44  ;;  %v6339_v43 = vld [vmem:[%s7630_s24] sm:$0xff]  ;;  %v6131_v22 = vpack.c.bf16 %v5395_v21, %v5394_v45 }
0x222b   :  { %v4296_v46 = vpop.permute.xlu1 %4295 }
0x222c   :  { %v4316_v40 = vsel %vm560_vm8, %v7277_v42, %v4296_v46 }
0x222e   :  { %v6312_v23 = vpop.eup %6311 }
0x222f   :  { %v4132_v3 = vsel %vm560_vm8, %v6312_v23, 0.0  ;;  %v4304_v47 = vpop.permute.xlu1 %4303 }
0x2230   :  { %4133 = vadd.xlane.f32.xlu0 %v4132_v3  ;;  %v4318_v54 = vsel %vm195_vm3, %v4316_v40, %v4304_v47  ;;  %v6341_v3 = vld [vmem:[%s7630_s24 + $0x10] sm:$0xff] }
0x2232   :  { %v6314_v24 = vpop.eup %6313 }
0x2233   :  { %v4129_v7 = vsel %vm560_vm8, %v6314_v24, 0.0 }
0x2234   :  { %4130 = vadd.xlane.f32.xlu0 %v4129_v7  ;;  %v5385_v7 = vld [vmem:[%s7576_s19 + $0x28] sm:$0xff] }
0x224a   :  { %4215 = vrot.lane.b32.xlu0 %v7221_v1, %s7638_s10  ;;  %v5373_v1 = vld [vmem:[%s7574_s17 + $0x20] sm:$0xff] }
0x224b   :  { %v6111_v30 = vpack.c.bf16 %v5374_v29, %v5373_v1 }
0x224d   :  { %6112 = vmatprep.subr.bf16.mxu1 %v6111_v30 }
0x224e   :  { %4301 = vrot.lane.b32.xlu0 %v3881_v0, %s7640_s3 }
0x22bd   :  { %v4134_v13 = vpop.xlane.xlu0 %4133 }
0x22be   :  { %6315 = vrcp.f32 %v4134_v13  ;;  %v6342_v13 = vld [vmem:[%s7630_s24 + $0x18] sm:$0xff] }
0x22c1   :  { %v4131_v25 = vpop.xlane.xlu0 %4130 }
0x22c2   :  { %6317 = vrcp.f32 %v4131_v25 }
0x22c5   :  { %v4216_v26 = vpop.permute.xlu0 %4215 }
0x22c6   :  { %5915 = vmatpush3.msra.mxu0 %v4216_v26  ;;  %v5386_v26 = vld [vmem:[%s7576_s19 + $0x30] sm:$0xff] }
0x22c8   :  { %v6316_v9 = vpop.eup %6315 }
0x22c9   :  { %v4138_v27 = vmul.f32 %v6316_v9, %v6312_v23  ;;  %v4302_v48 = vpop.permute.xlu0 %4301  ;;  %v6340_v23 = vld [vmem:[%s7630_s24 + $0x8] sm:$0xff]  ;;  %v5387_v9 = vld [vmem:[%s7576_s19 + $0x38] sm:$0xff] }
0x22ca   :  { %v4317_v52 = vsel %vm195_vm3, %v4315_v50, %v4302_v48  ;;  %v5396_v50 = vld [vmem:[#allocation7 + $0x1] ss:$0 sm:$0xff] }
0x22cb   :  { %5917 = vmatmul.mubr.msk.f32.vlgmr.msra.gmra.mrb[40].mxu0 %vm560_vm8, %v4138_v27  ;;  %v6123_v27 = vpack.c.bf16 %v5387_v9, %v5386_v26 }
0x22cc   :  { %v6318_v28 = vpop.eup %6317 }
0x22cd   :  { %v4137_v15 = vmul.f32 %v6318_v28, %v6314_v24  ;;  %v5384_v24 = vld [vmem:[%s7576_s19 + $0x20] sm:$0xff] }
0x22ce   :  { %v6119_v25 = vpack.c.bf16 %v5385_v7, %v5384_v24 }
0x22cf   :  { %5912 = vmatmul.mubr.msk.f32.vlgmr.msra.gmra.mrb[48].mxu1 %vm560_vm8, %v4137_v15 }
0x22d0   :  { %6114 = vmatpush3.bf16.msra.mxu1 %v6111_v30  ;;  %6120 = vmatprep.subr.bf16.mxu0 %v6119_v25 }
0x22d1   :  { %6116 = vmatprep.subr.bf16.mxu1 %v6115_v37  ;;  %6122 = vmatpush3.bf16.msra.mxu0 %v6119_v25 }
0x22d2   :  { %6124 = vmatprep.subr.bf16.mxu0 %v6123_v27 }
0x22d4   :  { %6118 = vmatpush3.bf16.msra.mxu1 %v6115_v37  ;;  %v5382_v37 = vld [vmem:[%s7631_s9 + $0x1] ss:$0 sm:$0xff] }
0x22d5   :  { %6128 = vmatprep.subr.bf16.mxu1 %v6127_v19  ;;  %6126 = vmatpush3.bf16.msra.mxu0 %v6123_v27 }
0x22d6   :  { %6135 = vmatprep.subr.bf16.mxu0 %v6506_v58 }
0x239e   :  { %v4287_v35 = vpop.f32.mrb[40].mxu0 }
0x239f   :  { %4311 = vrot.lane.b32.xlu1 %v4287_v35, %s7641_s28  ;;  %v5918_v39 = vpop.f32.mrb[41].mxu0 }
0x23a0   :  { %v5383_v39 = vld [vmem:[%s7569_s12 + $0x1] ss:$0 sm:$0xff] }
0x23a2   :  { %v4211_v33 = vpop.f32.mrb[48].mxu1 }
0x23a3   :  { %4309 = vrot.lane.b32.xlu0 %v4211_v33, %s7641_s28  ;;  %v5913_v41 = vpop.f32.mrb[49].mxu1 }
0x2411   :  { %v4312_v51 = vpop.permute.xlu1 %4311 }
0x2412   :  { %v4320_v56 = vsel %vm1904_vm11, %v4318_v54, %v4312_v51 }
0x2415   :  { %v4310_v53 = vpop.permute.xlu0 %4309 }
0x2416   :  { %v4319_v55 = vsel %vm1904_vm11, %v4317_v52, %v4310_v53 }
0x2417   :  { %5927 = vmatprep.mubr.msk.f32.mxu1 %vm361_vm6, %v4319_v55 }
0x2418   :  { %5928 = vmatmul.mubr.msk.f32.vlgmr.msra.gmra.mrb[50].mxu1 %vm361_vm6, %v4320_v56 }
0x2419   :  { %5949 = vmatprep.mubr.msk.f32.mxu1 %vm361_vm6, %v6339_v43  ;;  %6130 = vmatpush3.bf16.msra.mxu1 %v6127_v19 }
0x241a   :  { %6132 = vmatprep.subr.bf16.mxu1 %v6131_v22 }
0x241d   :  { %6134 = vmatpush3.bf16.msra.mxu1 %v6131_v22 }
0x241e   :  { %6139 = vmatprep.subr.bf16.mxu1 %v6506_v58 }
0x2420   :  { %5950 = vmatmul.mubr.msk.f32.vlgmr.msra.gmra.mrb[52].mxu1 %vm361_vm6, %v6340_v23 }
0x2421   :  { %5952 = vmatprep.mubr.msk.f32.mxu1 %vm361_vm6, %v6341_v3 }
0x2424   :  { %5953 = vmatmul.mubr.msk.f32.gmra.mrb[54].mxu1 %vm361_vm6, %v6342_v13 }
0x2425   :  { %5966 = vmatprep.mubr.msk.f32.mxu1 %vm6492_vm7, %v6491_v20 }
0x24eb   :  { %v5929_v42 = vpop.f32.mrb[50].mxu1 }
0x24ec   :  { %v4408_v59 = vadd.f32 %v5929_v42, %v7213_v62  ;;  %v4398_v60 = vpop.f32.mrb[51].mxu1 }
0x24ed   :  { %v4407_v61 = vadd.f32 %v4398_v60, %v7211_v38 }
0x24ee   :  { %v4418_v63 = vadd.f32 %v5379_v57, %v4408_v59 }
0x24ef   :  { %v4417_v0 = vadd.f32 %v5379_v57, %v4407_v61  ;;  %v5389_v61 = vld [vmem:[%s7577_s20 + $0x1] ss:$0 sm:$0xff] }
0x24f0   :  { %v4426_v2 = vsel %vm361_vm6, %v4418_v63, 0.0 }
0x24f1   :  { %4427 = vadd.xlane.f32.xlu1 %v4426_v2  ;;  %v4423_v4 = vsel %vm361_vm6, %v4417_v0, 0.0 }
0x24f2   :  { %4424 = vadd.xlane.f32.xlu0 %v4423_v4 }
0x24f3   :  { %v5951_v51 = vpop.f32.mrb[52].mxu1 }
0x24f4   :  { %v4644_v40 = vadd.f32 %v5951_v51, %v5396_v50  ;;  %v4638_v52 = vpop.f32.mrb[53].mxu1 }
0x24f5   :  { %v4639_v53 = vadd.f32 %v5396_v50, %v4638_v52 }
0x24f7   :  { %v6213_v54 = vpack.i.bf16 %v4644_v40, %v4639_v53  ;;  %v6136_v55 = vpack.c.bf16 %v4644_v40, %v4639_v53  ;;  %v5954_v56 = vpop.f32.mrb[54].mxu1 }
0x24f8   :  { %v4654_v43 = vadd.f32 %v5954_v56, %v5396_v50  ;;  %v4648_v42 = vpop.f32.mrb[55].mxu1  ;;  %v5415_v56 = vld [vmem:[%s7580_s23 + $0x30] sm:$0xff] }
0x24f9   :  { %v4649_v57 = vadd.f32 %v5396_v50, %v4648_v42 }
0x24fb   :  { %v6218_v59 = vpack.i.bf16 %v4654_v43, %v4649_v57  ;;  %v6140_v60 = vpack.c.bf16 %v4654_v43, %v4649_v57  ;;  %v5416_v43 = vld [vmem:[%s7580_s23 + $0x38] sm:$0xff] }
0x24fc   :  { %v6153_v42 = vpack.c.bf16 %v5416_v43, %v5415_v56 }
0x24fd   :  { %6142 = vmatpush3.bf16.xpose.msk.msra.mxu1 %vm7092_vm12, %v6140_v60 }
0x257e   :  { %v4428_v5 = vpop.xlane.xlu1 %4427 }
0x257f   :  { %v4430_v6 = vmul.f32 0.03125, %v4428_v5  ;;  %v4425_v8 = vpop.xlane.xlu0 %4424 }
0x2580   :  { %v4429_v10 = vmul.f32 0.03125, %v4425_v8 }
0x2581   :  { %v4432_v11 = vsub.f32 %v4418_v63, %v4430_v6 }
0x2582   :  { %v4431_v12 = vsub.f32 %v4417_v0, %v4429_v10 }
0x2583   :  { %v4434_v49 = vmul.f32 %v4432_v11, %v4432_v11 }
0x2584   :  { %v4433_v14 = vmul.f32 %v4431_v12, %v4431_v12 }
0x2585   :  { %v4438_v38 = vsel %vm361_vm6, %v4434_v49, 0.0 }
0x2586   :  { %v4435_v62 = vsel %vm361_vm6, %v4433_v14, 0.0 }
0x2587   :  { %4436 = vadd.xlane.f32.xlu0 %v4435_v62 }
0x258b   :  { %4439 = vadd.xlane.f32.xlu0 %v4438_v38 }
0x2614   :  { %v4437_v28 = vpop.xlane.xlu0 %4436 }
0x2615   :  { %v4441_v15 = vmul.f32 0.03125, %v4437_v28 }
0x2617   :  { %v4443_v1 = vadd.f32 1e-05, %v4441_v15 }
0x2618   :  { %v4440_v29 = vpop.xlane.xlu0 %4439 }
0x2619   :  { %6319 = vrsqrt.f32 %v4443_v1  ;;  %v4442_v30 = vmul.f32 0.03125, %v4440_v29 }
0x261b   :  { %v4444_v31 = vadd.f32 1e-05, %v4442_v30 }
0x261d   :  { %6321 = vrsqrt.f32 %v4444_v31 }
0x2623   :  { %v6320_v36 = vpop.eup %6319 }
0x2624   :  { %v4447_v35 = vmul.f32 %v6320_v36, %v4431_v12 }
0x2626   :  { %v4455_v33 = vmul.f32 %v5382_v37, %v4447_v35 }
0x2627   :  { %v6322_v41 = vpop.eup %6321 }
0x2628   :  { %v4448_v44 = vmul.f32 %v6322_v41, %v4432_v11  ;;  %v7455_v46 = vadd.f32 %v5383_v39, %v4455_v33 }
0x262a   :  { %v4456_v47 = vmul.f32 %v5382_v37, %v4448_v44  ;;  %5938 = vmatprep.mubr.msk.f32.mxu0 %vm361_vm6, %v7455_v46 }
0x262c   :  { %v7459_v48 = vadd.f32 %v5383_v39, %v4456_v47 }
0x262e   :  { %5939 = vmatmul.mubr.msk.f32.vlgmr.msra.gmra.mrb[42].mxu0 %vm361_vm6, %v7459_v48 }
0x262f   :  { %5959 = vmatprep.mubr.msk.f32.mxu0 %vm6492_vm7, %v6491_v20  ;;  %6138 = vmatpush3.bf16.xpose.msk.msra.mxu0 %vm7092_vm12, %v6136_v55 }
0x2630   :  { %6143 = vmatprep.subr.bf16.mxu0 %v6506_v58 }
0x2701   :  { %v5940_v63 = vpop.f32.mrb[42].mxu0 }
0x2702   :  { %v4556_v0 = vadd.f32 %v5940_v63, %v5389_v61  ;;  %v4550_v2 = vpop.f32.mrb[43].mxu0 }
0x2703   :  { %v4551_v4 = vadd.f32 %v5389_v61, %v4550_v2 }
0x2704   :  { %5967 = vmatmul.mubr.msk.f32.vlgmr.msra.gmra.mrb[56].mxu1 %vm361_vm6, %v4556_v0 }
0x2705   :  { %5960 = vmatmul.mubr.msk.f32.vlgmr.msra.gmra.mrb[44].mxu0 %vm361_vm6, %v4551_v4  ;;  %v5411_v4 = vld [vmem:[%s7570_s13 + $0x1] ss:$0 sm:$0xff] }
0x2706   :  { %5973 = vmatprep.mubr.msk.f32.mxu0 %vm6492_vm7, %v6491_v20 }
0x27d7   :  { %v4811_v5 = vpop.f32.mrb[56].mxu1 }
0x27d8   :  { %v4812_v6 = vadd.f32 %v4811_v5, %v7115_v32  ;;  %v4732_v17 = vpop.f32.mrb[44].mxu0  ;;  %v5968_v8 = vpop.f32.mrb[57].mxu1 }
0x27d9   :  { %v4733_v10 = vadd.f32 %v4732_v17, %v7118_v34  ;;  %v5961_v11 = vpop.f32.mrb[45].mxu0 }
0x27da   :  { %v4818_v12 = vsel %vm195_vm3, %v4812_v6, -inf }
0x27db   :  { %4819 = vmax.xlane.f32.xlu0 %v4818_v12  ;;  %v4815_v14 = vsel %vm195_vm3, %v4733_v10, -inf }
0x27dc   :  { %4816 = vmax.xlane.f32.xlu1 %v4815_v14 }
0x2868   :  { %v4820_v62 = vpop.xlane.xlu0 %4819 }
0x2869   :  { %v4822_v49 = vsub.f32 %v4812_v6, %v4820_v62  ;;  %v4817_v38 = vpop.xlane.xlu1 %4816  ;;  %v5412_v6 = vld [vmem:[%s7571_s14 + $0x1] ss:$0 sm:$0xff] }
0x286a   :  { %v4821_v16 = vsub.f32 %v4733_v10, %v4817_v38  ;;  %v5420_v62 = vld [vmem:[%s7582_s25 + $0x40] sm:$0xff] }
0x286b   :  { %v4825_v18 = vmul.f32 1.442695, %v4822_v49  ;;  %v5421_v49 = vld [vmem:[%s7582_s25 + $0x48] sm:$0xff] }
0x286c   :  { %v4823_v19 = vmul.f32 1.442695, %v4821_v16  ;;  %v6157_v38 = vpack.c.bf16 %v5421_v49, %v5420_v62  ;;  %v5422_v16 = vld [vmem:[%s7582_s25 + $0x50] sm:$0xff] }
0x286d   :  { %6323 = vpow2.f32 %v4825_v18  ;;  %v5423_v18 = vld [vmem:[%s7582_s25 + $0x58] sm:$0xff] }
0x286e   :  { %6325 = vpow2.f32 %v4823_v19  ;;  %v6161_v19 = vpack.c.bf16 %v5423_v18, %v5422_v16 }
0x2877   :  { %v6324_v32 = vpop.eup %6323 }
0x2878   :  { %v6326_v45 = vpop.eup %6325  ;;  %v4830_v21 = vsel %vm195_vm3, %v6324_v32, 0.0 }
0x2879   :  { %4831 = vadd.xlane.f32.xlu0 %v4830_v21  ;;  %v4827_v34 = vsel %vm195_vm3, %v6326_v45, 0.0 }
0x287a   :  { %4828 = vadd.xlane.f32.xlu1 %v4827_v34  ;;  %v5426_v34 = vld [vmem:[%s7582_s25 + $0x70] sm:$0xff] }
0x288b   :  { %6214 = vrot.lane.b32.xlu1 %v6213_v54, %s6493_s7  ;;  %v5414_v54 = vld [vmem:[%s7580_s23 + $0x28] sm:$0xff] }
0x288f   :  { %6219 = vrot.lane.b32.xlu0 %v6218_v59, %s6493_s7 }
0x2906   :  { %v4832_v22 = vpop.xlane.xlu0 %4831 }
0x2907   :  { %v4829_v23 = vpop.xlane.xlu1 %4828 }
0x2908   :  { %6327 = vrcp.f32 %v4829_v23 }
0x2909   :  { %6329 = vrcp.f32 %v4832_v22  ;;  %v5427_v22 = vld [vmem:[%s7582_s25 + $0x78] sm:$0xff] }
0x290a   :  { %v6220_v13 = vpop.permute.xlu0 %6219  ;;  %v6169_v23 = vpack.c.bf16 %v5427_v22, %v5426_v34 }
0x290b   :  { %v6215_v3 = vpop.permute.xlu1 %6214  ;;  %v6222_v26 = vunpack.i.h.bf16 %v6220_v13  ;;  %v6221_v9 = vunpack.i.l.bf16 %v6220_v13 }
0x290c   :  { %v6217_v24 = vunpack.i.h.bf16 %v6215_v3  ;;  %v6216_v7 = vunpack.i.l.bf16 %v6215_v3  ;;  %v5417_v3 = vld [vmem:[#allocation8 + $0x1] ss:$0 sm:$0xff] }
0x290d   :  { %v6147_v1 = vpack.c.bf16 %v6222_v26, %v6221_v9 }
0x290e   :  { %v6144_v25 = vpack.c.bf16 %v6217_v24, %v6216_v7 }
0x2910   :  { %6145 = vmatpush3.bf16.msra.mxu0 %v6144_v25 }
0x2911   :  { %6146 = vmatprep.subr.bf16.mxu0 %v6506_v58 }
0x2912   :  { %v6328_v27 = vpop.eup %6327 }
0x2913   :  { %v4835_v28 = vmul.f32 %v6328_v27, %v6326_v45  ;;  %v6330_v15 = vpop.eup %6329  ;;  %v5425_v45 = vld [vmem:[%s7582_s25 + $0x68] sm:$0xff] }
0x2914   :  { %v4836_v29 = vmul.f32 %v6330_v15, %v6324_v32  ;;  %v5424_v32 = vld [vmem:[%s7582_s25 + $0x60] sm:$0xff]  ;;  %s6507_s25 = smov [#allocation11]  }
0x2915   :  { %5974 = vmatmul.mubr.msk.f32.vlgmr.msra.gmra.mrb[46].mxu0 %vm195_vm3, %v4835_v28  ;;  %v6165_v21 = vpack.c.bf16 %v5425_v45, %v5424_v32  ;;  %s5256_s20 = sshll.u32 %s6507_s25, 4  ;;  %s5257_s20 = int_to_ptr.vmem [resolvable:$true] %s5256_s20 }
0x2916   :  { %6148 = vmatpush3.bf16.msra.mxu0 %v6147_v1  ;;  %5980 = vmatprep.mubr.msk.f32.mxu0 %vm6492_vm7, %v6491_v20  ;;  %s6453_s7 = scalar_lea.vmem %s5257_s20, 256  ;;  %p6458_p13 = scmp.lt.s32.totalorder %s5257_s20, %s5257_s20 }
0x2917   :  { %6158 = vmatprep.subr.bf16.mxu0 %v6157_v38  ;;  %p6454_p12 = scmp.ne.s32.totalorder %s5257_s20, %s6453_s7  ;;  %p6459_p0 = scmp.lt.s32.totalorder %s6453_s7, %s6453_s7 }
0x2919   :  { %5981 = vmatmul.mubr.msk.f32.vlgmr.msra.gmra.mrb[48].mxu0 %vm195_vm3, %v4836_v29  ;;  %p6460_p1 = por %p6459_p0, %p6458_p13 }
0x291a   :  { %6160 = vmatpush3.bf16.msra.mxu0 %v6157_v38 }
0x291b   :  { %6162 = vmatprep.subr.bf16.mxu0 %v6161_v19  ;;  %p6461_p2 = pnand %p6460_p1, %p6454_p12 }
0x291e   :  { %6164 = vmatpush3.bf16.msra.mxu0 %v6161_v19 }
0x291f   :  { %6166 = vmatprep.subr.bf16.mxu0 %v6165_v21 }
0x2922   :  { %6168 = vmatpush3.bf16.msra.mxu0 %v6165_v21 }
0x2923   :  { %6170 = vmatprep.subr.bf16.mxu0 %v6169_v23 }
0x2926   :  { %6172 = vmatpush3.bf16.msra.mxu0 %v6169_v23 }
0x29e8   :  { %v4912_v30 = vpop.f32.mrb[46].mxu0 }
0x29e9   :  { %v4995_v31 = vadd.f32 %v4912_v30, %v7455_v46  ;;  %v5975_v36 = vpop.f32.mrb[47].mxu0 }
0x29eb   :  { %v5001_v37 = vsel %vm361_vm6, %v4995_v31, 0.0 }
0x29ec   :  { %5002 = vadd.xlane.f32.xlu1 %v5001_v37  ;;  %v4991_v58 = vpop.f32.mrb[48].mxu0 }
0x29ed   :  { %v4996_v35 = vadd.f32 %v4991_v58, %v7459_v48  ;;  %v5982_v39 = vpop.f32.mrb[49].mxu0  ;;  %v5413_v48 = vld [vmem:[%s7580_s23 + $0x20] sm:$0xff]  ;;  %v5430_v58 = vld [vmem:[#allocation10 + $0x1] ss:$0 sm:$0xff] }
0x29ee   :  { %v6149_v55 = vpack.c.bf16 %v5414_v54, %v5413_v48 }
0x29ef   :  { %v5004_v33 = vsel %vm361_vm6, %v4996_v35, 0.0 }
0x29f0   :  { %5005 = vadd.xlane.f32.xlu0 %v5004_v33  ;;  %6150 = vmatprep.subr.bf16.mxu1 %v6149_v55 }
0x29f1   :  { %6152 = vmatpush3.bf16.msra.mxu1 %v6149_v55 }
0x29f2   :  { %6154 = vmatprep.subr.bf16.mxu1 %v6153_v42 }
0x29f5   :  { %6156 = vmatpush3.bf16.msra.mxu1 %v6153_v42 }
0x2a79   :  { %v5003_v41 = vpop.xlane.xlu1 %5002 }
0x2a7a   :  { %v5007_v44 = vmul.f32 0.03125, %v5003_v41 }
0x2a7c   :  { %v5009_v20 = vsub.f32 %v4995_v31, %v5007_v44 }
0x2a7d   :  { %v5006_v47 = vpop.xlane.xlu0 %5005 }
0x2a7e   :  { %v5008_v50 = vmul.f32 0.03125, %v5006_v47  ;;  %v5011_v51 = vmul.f32 %v5009_v20, %v5009_v20 }
0x2a80   :  { %v5010_v40 = vsub.f32 %v4996_v35, %v5008_v50  ;;  %v5013_v46 = vsel %vm361_vm6, %v5011_v51, 0.0 }
0x2a81   :  { %5014 = vadd.xlane.f32.xlu1 %v5013_v46 }
0x2a82   :  { %v5012_v52 = vmul.f32 %v5010_v40, %v5010_v40 }
0x2a84   :  { %v5016_v53 = vsel %vm361_vm6, %v5012_v52, 0.0 }
0x2a85   :  { %5017 = vadd.xlane.f32.xlu0 %v5016_v53 }
0x2b0e   :  { %v5015_v57 = vpop.xlane.xlu1 %5014 }
0x2b0f   :  { %v5019_v59 = vmul.f32 0.03125, %v5015_v57 }
0x2b11   :  { %v5021_v60 = vadd.f32 1e-05, %v5019_v59 }
0x2b12   :  { %v5018_v61 = vpop.xlane.xlu0 %5017 }
0x2b13   :  { %6331 = vrsqrt.f32 %v5021_v60  ;;  %v5020_v63 = vmul.f32 0.03125, %v5018_v61 }
0x2b15   :  { %v5022_v0 = vadd.f32 1e-05, %v5020_v63 }
0x2b17   :  { %6333 = vrsqrt.f32 %v5022_v0 }
0x2b1d   :  { %v6332_v2 = vpop.eup %6331 }
0x2b1e   :  { %v5025_v5 = vmul.f32 %v6332_v2, %v5009_v20 }
0x2b20   :  { %v5033_v17 = vmul.f32 %v5411_v4, %v5025_v5 }
0x2b21   :  { %v6334_v8 = vpop.eup %6333 }
0x2b22   :  { %v5026_v10 = vmul.f32 %v6334_v8, %v5010_v40  ;;  %v5041_v11 = vadd.f32 %v5412_v6, %v5033_v17 }
0x2b24   :  { %v5034_v12 = vmul.f32 %v5411_v4, %v5026_v10  ;;  %5991 = vmatprep.mubr.msk.f32.mxu1 %vm361_vm6, %v5041_v11 }
0x2b26   :  { %v5042_v14 = vadd.f32 %v5412_v6, %v5034_v12 }
0x2b28   :  { %5992 = vmatmul.mubr.msk.f32.vlgmr.msra.gmra.mrb[58].mxu1 %vm361_vm6, %v5042_v14 }
0x2bfb   :  { %v5993_v24 = vpop.f32.mrb[58].mxu1 }
0x2bfc   :  { %v5134_v7 = vadd.f32 %v5993_v24, %v5417_v3  ;;  %v5128_v13 = vpop.f32.mrb[59].mxu1 }
0x2bfd   :  { %v5129_v25 = vadd.f32 %v5417_v3, %v5128_v13 }
0x2bfe   :  { %v5140_v26 = vmul.f32 0.70710677, %v5134_v7  ;;  %v5138_v30 = vmul.f32 0.5, %v5134_v7 }
0x2bff   :  { %v5139_v9 = vmul.f32 0.70710677, %v5129_v25  ;;  %v5137_v1 = vmul.f32 0.5, %v5129_v25 }
0x2c00   :  { %6335 = verf.f32 %v5140_v26 }
0x2c01   :  { %6337 = verf.f32 %v5139_v9 }
0x2c0a   :  { %v6336_v27 = vpop.eup %6335 }
0x2c0b   :  { %v6338_v28 = vpop.eup %6337  ;;  %v5144_v15 = vadd.f32 1.0, %v6336_v27 }
0x2c0c   :  { %v5143_v29 = vadd.f32 1.0, %v6338_v28 }
0x2c0d   :  { %v5146_v36 = vmul.f32 %v5144_v15, %v5138_v30 }
0x2c0e   :  { %v5145_v31 = vmul.f32 %v5143_v29, %v5137_v1 }
0x2c10   :  { %6010 = vmatprep.mubr.msk.f32.mxu0 %vm277_vm0, %v5145_v31 }
0x2c11   :  { %6011 = vmatmul.mubr.msk.f32.vlgmr.msra.gmra.mrb[50].mxu0 %vm277_vm0, %v5146_v36 }
0x2ce4   :  { %v6012_v37 = vpop.f32.mrb[50].mxu0 }
0x2ce5   :  { %v5238_v35 = vadd.f32 %v6012_v37, %v5042_v14  ;;  %v5228_v39 = vpop.f32.mrb[51].mxu0 }
0x2ce6   :  { %v5237_v33 = vadd.f32 %v5228_v39, %v5041_v11 }
0x2ce7   :  { %v5248_v41 = vadd.f32 %v5430_v58, %v5238_v35 }
0x2ce8   :  { %v5247_v44 = vadd.f32 %v5430_v58, %v5237_v33 }
0x2ce9   :  { %5250 = vst.msk [vmem:[#allocation11 + $0x8] sm:$0xff] %vm361_vm6, %v5248_v41 }
0x2cea   :  { %5249 = vst.msk [vmem:[#allocation11] sm:$0xff] %vm361_vm6, %v5247_v44 }
0x2ceb   :  { %6464 = shalt.err (!%p6461_p2)
}
0x2cec   :  { %s6465_s26 = scalar_lea.hbm %s7584_s27, 256 }
0x2ced   :  { %p6466_p3 = scmp.ne.s32.totalorder %s7584_s27, %s6465_s26  ;;  %p6469_p4 = scmp.lt.u32.totalorder %s6465_s26, %s7584_s27 }
0x2cef   :  { %p6471_p5 = pnand %p6469_p4, %p6466_p3 }
0x2cf1   :  { %6474 = shalt.err (!%p6471_p5)
}
0x2cf2   :  { %s6508_s8 = smov 128  }
0x2cf3   :  { %5262 = dma.vmem_to_hbm [thread:$0]  %s5257_s20, 256, %s7584_s27, [#allocation4], %s6508_s8, %s6508_s8, %s7639_s16  }
0x2cf4   :  { %6481 = dma.done.wait [#allocation4], 256  }
0x2cf5   :  { %6482 = vsyncadd [#allocation4], 4294967040 }
0x2cf6   :  { %5266 = vsyncpa [#allocation3], 1 }
0x2cf7   :  { %5267 = vsyncpa [#allocation6], 1 }
0x2cf8   :  { %5268 = vsyncpa [#allocation9], 1 }
0x2cf9   :  { %5269 = vsyncpa [#allocation4], 1 }

</bundles_post_ra>
